<compile_context>
chip_gen: v6e
topology: v6e:2x2x1
jax: 0.10.0
libtpu: 0.0.40
codegen_flags: <defaults>
</compile_context>

<pallas_src>
import math

import jax
import jax.numpy as jnp
from jax.experimental import pallas as pl
from jax.experimental.pallas import tpu as pltpu


# Logical layer sizes of the PyTorch Net.
DIMS = [(784, 512), (512, 216), (216, 128), (128, 64), (64, 10)]
# Lane-padded sizes used inside the kernel (multiples of 128 everywhere except
# the 784 input dim, which is passed at full extent).
PADDED_DIMS = [(784, 512), (512, 256), (256, 128), (128, 128), (128, 128)]


def _round_up(x, m):
    return -(-x // m) * m


def mlp_kernel(x_ref,
               w1_ref, b1_ref,
               w2_ref, b2_ref,
               w3_ref, b3_ref,
               w4_ref, b4_ref,
               w5_ref, b5_ref,
               o_ref):
    # f32 x is streamed in; cast to bf16 on the VPU right before the first
    # dot (hides under the MXU). bf16 operands with f32 MXU accumulation;
    # bias-add / ReLU stay in f32 (v5e has no bf16 VPU), cast back to bf16
    # only right before the next dot.
    x = x_ref[...].astype(jnp.bfloat16)

    h = jnp.dot(x, w1_ref[...],
                preferred_element_type=jnp.float32) + b1_ref[...]
    h = jnp.maximum(h, 0.0)

    h = jnp.dot(h.astype(jnp.bfloat16), w2_ref[...],
                preferred_element_type=jnp.float32) + b2_ref[...]
    h = jnp.maximum(h, 0.0)

    h = jnp.dot(h.astype(jnp.bfloat16), w3_ref[...],
                preferred_element_type=jnp.float32) + b3_ref[...]
    h = jnp.maximum(h, 0.0)

    h = jnp.dot(h.astype(jnp.bfloat16), w4_ref[...],
                preferred_element_type=jnp.float32) + b4_ref[...]
    h = jnp.maximum(h, 0.0)

    # Final layer: no activation (logits). Output tile is lane-padded to 128.
    out = jnp.dot(h.astype(jnp.bfloat16), w5_ref[...],
                  preferred_element_type=jnp.float32) + b5_ref[...]
    o_ref[...] = out.astype(o_ref.dtype)


def init_linear_params(key, in_features, out_features, pad_in, pad_out):
    """PyTorch nn.Linear default init (U(-k,k), k=1/sqrt(fan_in)), then
    zero-padded to lane-friendly sizes. Weights stored (in, out) in bf16,
    biases (1, out) in f32."""
    k = 1.0 / math.sqrt(in_features)
    wkey, bkey = jax.random.split(key)
    w = jax.random.uniform(wkey, (in_features, out_features), jnp.float32, -k, k)
    b = jax.random.uniform(bkey, (1, out_features), jnp.float32, -k, k)
    w = jnp.pad(w, ((0, pad_in - in_features), (0, pad_out - out_features)))
    b = jnp.pad(b, ((0, 0), (0, pad_out - out_features)))
    return w.astype(jnp.bfloat16), b


def _choose_batch_tile(B, tile_m):
    """Pick (tm, padded_B):
      * tm is a multiple of 16 (native bf16 sublane tile),
      * tm <= tile_m so per-step VMEM stays bounded,
      * when the batch allows it, the grid has >= 2 steps so the second
        TensorCore on v7x gets work under dimension_semantics=("parallel",).
    """
    tm = min(tile_m, _round_up(B, 16))
    padded_B = _round_up(B, tm)
    if padded_B // tm == 1 and padded_B >= 32 and padded_B % 32 == 0:
        tm = padded_B // 2          # 2 even grid steps, tm still a mult of 16
    return tm, padded_B


def net_forward(x, params, *, tile_m=512):
    """x: (B, 1, 28, 28) NCHW (or anything whose trailing dims flatten to 784).
    Returns (B, 10) f32 logits."""
    x2d = x.reshape(-1, 784).astype(jnp.float32)   # cast to bf16 happens in-kernel
    B = x2d.shape[0]

    tm, padded_B = _choose_batch_tile(B, tile_m)
    if padded_B != B:
        x2d = jnp.pad(x2d, ((0, padded_B - B), (0, 0)))

    grid = (padded_B // tm,)

    def resident_spec(arr):
        # Full-array block, constant index -> loaded once, stays in VMEM
        # across all batch-grid steps.
        return pl.BlockSpec(arr.shape, lambda i: (0, 0))

    in_specs = [pl.BlockSpec((tm, 784), lambda i: (i, 0))]
    flat_params = []
    for w, b in params:
        in_specs.append(resident_spec(w))
        in_specs.append(resident_spec(b))
        flat_params.extend((w, b))

    flops = 2 * padded_B * sum(din * dout for din, dout in PADDED_DIMS)
    weight_bytes = sum(a.size * a.dtype.itemsize for a in flat_params)
    bytes_accessed = (x2d.size * x2d.dtype.itemsize     # f32 input stream
                      + weight_bytes                    # resident weights
                      + padded_B * 128 * 4)             # f32 logit slab

    out = pl.pallas_call(
        mlp_kernel,
        out_shape=jax.ShapeDtypeStruct((padded_B, 128), jnp.float32),
        grid=grid,
        in_specs=in_specs,
        out_specs=pl.BlockSpec((tm, 128), lambda i: (i, 0)),
        compiler_params=pltpu.CompilerParams(
            dimension_semantics=("parallel",),
            # 32 MiB is the v7x-safe scoped default and leaves ample headroom
            # for tm<=1024 (f32 x double-buffers ~6.4 MB + weights ~2.3 MB
            # + out buffers ~1 MB + intermediates).
            vmem_limit_bytes=32 * 1024 * 1024,
        ),
        cost_estimate=pl.CostEstimate(
            flops=flops, transcendentals=0, bytes_accessed=bytes_accessed),
    )(x2d, *flat_params)

    # Drop batch padding and the 10->128 lane padding of the logits.
    return out[:B, :10]


if __name__ == "__main__":
    key = jax.random.PRNGKey(0)
    keys = jax.random.split(key, 6)

    params = tuple(
        init_linear_params(keys[i + 1], din, dout, pin, pout)
        for i, ((din, dout), (pin, pout)) in enumerate(zip(DIMS, PADDED_DIMS))
    )

    # MNIST-like NCHW input; B=256 exercises the batch grid (2 tiles of 128
    # after the megacore split) and stays small.
    B = 256
    x = jax.random.normal(keys[0], (B, 1, 28, 28), dtype=jnp.float32)

    out = jax.block_until_ready(net_forward(x, params))
    assert out.shape == (B, 10)

    # Pure-JAX reference with identical bf16-operand / f32-accumulate numerics.
    def ref(x, params):
        h = x.reshape(-1, 784).astype(jnp.bfloat16)
        for i, (w, b) in enumerate(params):
            h = jnp.dot(h, w, preferred_element_type=jnp.float32) + b
            if i < len(params) - 1:
                h = jnp.maximum(h, 0.0).astype(jnp.bfloat16)
        return h[:, :10]

    ref_out = ref(x, params)
    assert jnp.allclose(out, ref_out, atol=1e-2, rtol=1e-2), float(
        jnp.max(jnp.abs(out - ref_out)))

    print("KERNEL_OK")
</pallas_src>

<mosaic_0001>
module attributes {stable_mosaic.version = 11 : i64} {
  func.func @mlp_kernel(%arg0: i32, %arg1: memref<128x784xf32, #tpu.memory_space<vmem>>, %arg2: memref<784x512xbf16, #tpu.memory_space<vmem>>, %arg3: memref<1x512xf32, #tpu.memory_space<vmem>>, %arg4: memref<512x256xbf16, #tpu.memory_space<vmem>>, %arg5: memref<1x256xf32, #tpu.memory_space<vmem>>, %arg6: memref<256x128xbf16, #tpu.memory_space<vmem>>, %arg7: memref<1x128xf32, #tpu.memory_space<vmem>>, %arg8: memref<128x128xbf16, #tpu.memory_space<vmem>>, %arg9: memref<1x128xf32, #tpu.memory_space<vmem>>, %arg10: memref<128x128xbf16, #tpu.memory_space<vmem>>, %arg11: memref<1x128xf32, #tpu.memory_space<vmem>>, %arg12: memref<128x128xf32, #tpu.memory_space<vmem>>) attributes {dimension_semantics = [#tpu.dimension_semantics<parallel>], iteration_bounds = array<i64: 2>, scalar_prefetch = 0 : i64, scratch_operands = 0 : i64, tpu.core_type = #tpu.core_type<tc>, window_params = [{transform_indices = @transform_0, window_bounds = array<i64: 128, 784>}, {pipeline_mode = #tpu.pipeline_mode<synchronous>, transform_indices = @transform_1, window_bounds = array<i64: 784, 512>}, {pipeline_mode = #tpu.pipeline_mode<synchronous>, transform_indices = @transform_2, window_bounds = array<i64: 1, 512>}, {pipeline_mode = #tpu.pipeline_mode<synchronous>, transform_indices = @transform_3, window_bounds = array<i64: 512, 256>}, {pipeline_mode = #tpu.pipeline_mode<synchronous>, transform_indices = @transform_4, window_bounds = array<i64: 1, 256>}, {pipeline_mode = #tpu.pipeline_mode<synchronous>, transform_indices = @transform_5, window_bounds = array<i64: 256, 128>}, {pipeline_mode = #tpu.pipeline_mode<synchronous>, transform_indices = @transform_6, window_bounds = array<i64: 1, 128>}, {pipeline_mode = #tpu.pipeline_mode<synchronous>, transform_indices = @transform_7, window_bounds = array<i64: 128, 128>}, {pipeline_mode = #tpu.pipeline_mode<synchronous>, transform_indices = @transform_8, window_bounds = array<i64: 1, 128>}, {pipeline_mode = #tpu.pipeline_mode<synchronous>, transform_indices = @transform_9, window_bounds = array<i64: 128, 128>}, {pipeline_mode = #tpu.pipeline_mode<synchronous>, transform_indices = @transform_10, window_bounds = array<i64: 1, 128>}, {transform_indices = @transform_11, window_bounds = array<i64: 128, 128>}]} {
    %c0 = arith.constant 0 : index
    %c0_0 = arith.constant 0 : index
    %0 = vector.load %arg1[%c0, %c0_0] : memref<128x784xf32, #tpu.memory_space<vmem>>, vector<128x784xf32>
    %1 = arith.truncf %0 : vector<128x784xf32> to vector<128x784xbf16>
    %c0_1 = arith.constant 0 : index
    %c0_2 = arith.constant 0 : index
    %2 = vector.load %arg2[%c0_1, %c0_2] : memref<784x512xbf16, #tpu.memory_space<vmem>>, vector<784x512xbf16>
    %cst = arith.constant dense<0.000000e+00> : vector<128x512xf32>
    %3 = tpu.matmul %1, %2, %cst {dimension_numbers = #tpu.dot_dimension_numbers<[1], [0], [0], [1], [0, 0, 1, 1], [], []>} : vector<128x784xbf16>, vector<784x512xbf16>, vector<128x512xf32> -> vector<128x512xf32>
    %c0_3 = arith.constant 0 : index
    %c0_4 = arith.constant 0 : index
    %4 = vector.load %arg3[%c0_3, %c0_4] : memref<1x512xf32, #tpu.memory_space<vmem>>, vector<1x512xf32>
    %5 = vector.broadcast %4 : vector<1x512xf32> to vector<128x512xf32>
    %6 = arith.addf %3, %5 : vector<128x512xf32>
    %cst_5 = arith.constant 0.000000e+00 : f32
    %7 = vector.broadcast %cst_5 : f32 to vector<128x512xf32>
    %8 = arith.maximumf %6, %7 : vector<128x512xf32>
    %9 = arith.truncf %8 : vector<128x512xf32> to vector<128x512xbf16>
    %c0_6 = arith.constant 0 : index
    %c0_7 = arith.constant 0 : index
    %10 = vector.load %arg4[%c0_6, %c0_7] : memref<512x256xbf16, #tpu.memory_space<vmem>>, vector<512x256xbf16>
    %cst_8 = arith.constant dense<0.000000e+00> : vector<128x256xf32>
    %11 = tpu.matmul %9, %10, %cst_8 {dimension_numbers = #tpu.dot_dimension_numbers<[1], [0], [0], [1], [0, 0, 1, 1], [], []>} : vector<128x512xbf16>, vector<512x256xbf16>, vector<128x256xf32> -> vector<128x256xf32>
    %c0_9 = arith.constant 0 : index
    %c0_10 = arith.constant 0 : index
    %12 = vector.load %arg5[%c0_9, %c0_10] : memref<1x256xf32, #tpu.memory_space<vmem>>, vector<1x256xf32>
    %13 = vector.broadcast %12 : vector<1x256xf32> to vector<128x256xf32>
    %14 = arith.addf %11, %13 : vector<128x256xf32>
    %cst_11 = arith.constant 0.000000e+00 : f32
    %15 = vector.broadcast %cst_11 : f32 to vector<128x256xf32>
    %16 = arith.maximumf %14, %15 : vector<128x256xf32>
    %17 = arith.truncf %16 : vector<128x256xf32> to vector<128x256xbf16>
    %c0_12 = arith.constant 0 : index
    %c0_13 = arith.constant 0 : index
    %18 = vector.load %arg6[%c0_12, %c0_13] : memref<256x128xbf16, #tpu.memory_space<vmem>>, vector<256x128xbf16>
    %cst_14 = arith.constant dense<0.000000e+00> : vector<128x128xf32>
    %19 = tpu.matmul %17, %18, %cst_14 {dimension_numbers = #tpu.dot_dimension_numbers<[1], [0], [0], [1], [0, 0, 1, 1], [], []>} : vector<128x256xbf16>, vector<256x128xbf16>, vector<128x128xf32> -> vector<128x128xf32>
    %c0_15 = arith.constant 0 : index
    %c0_16 = arith.constant 0 : index
    %20 = vector.load %arg7[%c0_15, %c0_16] : memref<1x128xf32, #tpu.memory_space<vmem>>, vector<1x128xf32>
    %21 = vector.broadcast %20 : vector<1x128xf32> to vector<128x128xf32>
    %22 = arith.addf %19, %21 : vector<128x128xf32>
    %cst_17 = arith.constant 0.000000e+00 : f32
    %23 = vector.broadcast %cst_17 : f32 to vector<128x128xf32>
    %24 = arith.maximumf %22, %23 : vector<128x128xf32>
    %25 = arith.truncf %24 : vector<128x128xf32> to vector<128x128xbf16>
    %c0_18 = arith.constant 0 : index
    %c0_19 = arith.constant 0 : index
    %26 = vector.load %arg8[%c0_18, %c0_19] : memref<128x128xbf16, #tpu.memory_space<vmem>>, vector<128x128xbf16>
    %cst_20 = arith.constant dense<0.000000e+00> : vector<128x128xf32>
    %27 = tpu.matmul %25, %26, %cst_20 {dimension_numbers = #tpu.dot_dimension_numbers<[1], [0], [0], [1], [0, 0, 1, 1], [], []>} : vector<128x128xbf16>, vector<128x128xbf16>, vector<128x128xf32> -> vector<128x128xf32>
    %c0_21 = arith.constant 0 : index
    %c0_22 = arith.constant 0 : index
    %28 = vector.load %arg9[%c0_21, %c0_22] : memref<1x128xf32, #tpu.memory_space<vmem>>, vector<1x128xf32>
    %29 = vector.broadcast %28 : vector<1x128xf32> to vector<128x128xf32>
    %30 = arith.addf %27, %29 : vector<128x128xf32>
    %cst_23 = arith.constant 0.000000e+00 : f32
    %31 = vector.broadcast %cst_23 : f32 to vector<128x128xf32>
    %32 = arith.maximumf %30, %31 : vector<128x128xf32>
    %33 = arith.truncf %32 : vector<128x128xf32> to vector<128x128xbf16>
    %c0_24 = arith.constant 0 : index
    %c0_25 = arith.constant 0 : index
    %34 = vector.load %arg10[%c0_24, %c0_25] : memref<128x128xbf16, #tpu.memory_space<vmem>>, vector<128x128xbf16>
    %cst_26 = arith.constant dense<0.000000e+00> : vector<128x128xf32>
    %35 = tpu.matmul %33, %34, %cst_26 {dimension_numbers = #tpu.dot_dimension_numbers<[1], [0], [0], [1], [0, 0, 1, 1], [], []>} : vector<128x128xbf16>, vector<128x128xbf16>, vector<128x128xf32> -> vector<128x128xf32>
    %c0_27 = arith.constant 0 : index
    %c0_28 = arith.constant 0 : index
    %36 = vector.load %arg11[%c0_27, %c0_28] : memref<1x128xf32, #tpu.memory_space<vmem>>, vector<1x128xf32>
    %37 = vector.broadcast %36 : vector<1x128xf32> to vector<128x128xf32>
    %38 = arith.addf %35, %37 : vector<128x128xf32>
    %c0_29 = arith.constant 0 : index
    %c0_30 = arith.constant 0 : index
    %39 = vector.load %arg12[%c0_29, %c0_30] : memref<128x128xf32, #tpu.memory_space<vmem>>, vector<128x128xf32>
    tpu.vector_store %arg12[%c0_29, %c0_30], %38 {strides = array<i32>} : memref<128x128xf32, #tpu.memory_space<vmem>>, vector<128x128xf32>,
    return
  }
  func.func @transform_0(%arg0: i32) -> (i32, i32) {
    %c0_i32 = arith.constant 0 : i32
    %c0_i32_0 = arith.constant 0 : i32
    return %arg0, %c0_i32 : i32, i32
  }
  func.func @transform_1(%arg0: i32) -> (i32, i32) {
    %c0_i32 = arith.constant 0 : i32
    %c0_i32_0 = arith.constant 0 : i32
    %c0_i32_1 = arith.constant 0 : i32
    return %c0_i32, %c0_i32_0 : i32, i32
  }
  func.func @transform_2(%arg0: i32) -> (i32, i32) {
    %c0_i32 = arith.constant 0 : i32
    %c0_i32_0 = arith.constant 0 : i32
    %c0_i32_1 = arith.constant 0 : i32
    return %c0_i32, %c0_i32_0 : i32, i32
  }
  func.func @transform_3(%arg0: i32) -> (i32, i32) {
    %c0_i32 = arith.constant 0 : i32
    %c0_i32_0 = arith.constant 0 : i32
    %c0_i32_1 = arith.constant 0 : i32
    return %c0_i32, %c0_i32_0 : i32, i32
  }
  func.func @transform_4(%arg0: i32) -> (i32, i32) {
    %c0_i32 = arith.constant 0 : i32
    %c0_i32_0 = arith.constant 0 : i32
    %c0_i32_1 = arith.constant 0 : i32
    return %c0_i32, %c0_i32_0 : i32, i32
  }
  func.func @transform_5(%arg0: i32) -> (i32, i32) {
    %c0_i32 = arith.constant 0 : i32
    %c0_i32_0 = arith.constant 0 : i32
    %c0_i32_1 = arith.constant 0 : i32
    return %c0_i32, %c0_i32_0 : i32, i32
  }
  func.func @transform_6(%arg0: i32) -> (i32, i32) {
    %c0_i32 = arith.constant 0 : i32
    %c0_i32_0 = arith.constant 0 : i32
    %c0_i32_1 = arith.constant 0 : i32
    return %c0_i32, %c0_i32_0 : i32, i32
  }
  func.func @transform_7(%arg0: i32) -> (i32, i32) {
    %c0_i32 = arith.constant 0 : i32
    %c0_i32_0 = arith.constant 0 : i32
    %c0_i32_1 = arith.constant 0 : i32
    return %c0_i32, %c0_i32_0 : i32, i32
  }
  func.func @transform_8(%arg0: i32) -> (i32, i32) {
    %c0_i32 = arith.constant 0 : i32
    %c0_i32_0 = arith.constant 0 : i32
    %c0_i32_1 = arith.constant 0 : i32
    return %c0_i32, %c0_i32_0 : i32, i32
  }
  func.func @transform_9(%arg0: i32) -> (i32, i32) {
    %c0_i32 = arith.constant 0 : i32
    %c0_i32_0 = arith.constant 0 : i32
    %c0_i32_1 = arith.constant 0 : i32
    return %c0_i32, %c0_i32_0 : i32, i32
  }
  func.func @transform_10(%arg0: i32) -> (i32, i32) {
    %c0_i32 = arith.constant 0 : i32
    %c0_i32_0 = arith.constant 0 : i32
    %c0_i32_1 = arith.constant 0 : i32
    return %c0_i32, %c0_i32_0 : i32, i32
  }
  func.func @transform_11(%arg0: i32) -> (i32, i32) {
    %c0_i32 = arith.constant 0 : i32
    %c0_i32_0 = arith.constant 0 : i32
    return %arg0, %c0_i32 : i32, i32
  }
}

</mosaic_0001>

<bundles_post_ra>
// kernel: tpu_custom_call.1
= control target key start
LH: loop header
LB: loop body
LE: loop exit
PB: predicated region body
PF: predicated region fallthrough
CT: control target
= control target key end

     0   :  { %16 = vsyncpa [#allocation3], 0  ;;  %s7085_s0 = inlined_call_operand.vmem [shape: f32[256,784], index: 0, kind: input, shape index: {}]   ;;  %s7086_s1 = inlined_call_operand.vmem [shape: bf16[784,512], index: 1, kind: input, shape index: {}]   ;;  %s7087_s2 = inlined_call_operand.vmem [shape: f32[1,512], index: 2, kind: input, shape index: {}]   ;;  %s7088_s3 = inlined_call_operand.vmem [shape: bf16[512,256], index: 3, kind: input, shape index: {}]   ;;  %s7089_s4 = inlined_call_operand.vmem [shape: f32[1,256], index: 4, kind: input, shape index: {}]   ;;  %s7090_s5 = inlined_call_operand.vmem [shape: bf16[256,128], index: 5, kind: input, shape index: {}]   ;;  %s7091_s6 = inlined_call_operand.vmem [shape: f32[1,128], index: 6, kind: input, shape index: {}]   ;;  %s7092_s7 = inlined_call_operand.vmem [shape: bf16[128,128], index: 7, kind: input, shape index: {}]   ;;  %s7093_s8 = inlined_call_operand.vmem [shape: f32[1,128], index: 8, kind: input, shape index: {}]   ;;  %s7094_s9 = inlined_call_operand.vmem [shape: bf16[128,128], index: 9, kind: input, shape index: {}]   ;;  %s7095_s10 = inlined_call_operand.vmem [shape: f32[1,128], index: 10, kind: input, shape index: {}]   ;;  %s7096_s11 = inlined_call_operand.hbm [shape: f32[256,128], index: 11, kind: output, shape index: {}]  }
   0x1   :  { %18 = vsyncpa [#allocation3 + $0x1], 0  ;;  %s5236_s17 = smov 0   ;;  %s5238_s18 = smov 0  }
   0x2   :  { %s5240_s19 = smov 0   ;;  %s5242_s20 = smov 0  }
   0x3 LB: > { %7113 = sst [smem:[#allocation5_spill]] %s5166_s19  ;;  %s5257_s21 = sadd.s32 4294967295, %s5170_s20   ;;  %s5170_s20 = sphi %s5242_s20, %s7159_s20   ;;  %s5166_s19 = sphi %s5240_s19, %s7156_s19   ;;  %s5162_s18 = sphi %s5238_s18, %s7158_s18   ;;  %s5158_s17 = sphi %s5236_s17, %s7157_s17  }
   0x4   : > { %s4161_s22 = sadd.s32 4294967294, %s5170_s20   ;;  %s5261_s23 = sadd.s32 1, %s5170_s20  }
   0x5   : > { %s267_s24 = sadd.s32 1, %s5166_s19  ;;  %s264_s25 = ssub.s32 %s5170_s20, %s5261_s23 }
   0x6   : > { %p277_p0 = scmp.ne.s32.totalorder %s5166_s19, %s5162_s18  ;;  %p265_p1 = scmp.eq.s32.totalorder %s264_s25, 0 }
   0x7   : > { %p278_p2 = scmp.eq.s32.totalorder %s5257_s21, 1  ;;  %p283_p3 = scmp.ne.s32.totalorder %s5162_s18, %s5158_s17 }
   0x8   : > { %p284_p4 = scmp.eq.s32.totalorder %s4161_s22, 1  ;;  %p4164_p7 = scmp.ge.s32.totalorder %s5170_s20, 1 }
   0x9   : > { %s5272_s26 = scalar_select %p265_p1, %s5166_s19, %s267_s24  }
   0xa   : > { %p5274_p5 = por %p278_p2, %p277_p0  ;;  %p5278_p6 = por %p284_p4, %p283_p3 }
   0xb   : > { %7114 = sst [smem:[#allocation6_spill]] %s5272_s26  ;;  %p342_p8 = scmp.lt.s32.totalorder %s5170_s20, 3 }
   0xd   : > { %p343_p9 = pnand %p4164_p7, %p342_p8 }
   0xf   : > { %346 = sbr.rel (%p343_p9) target bundleno = 1375 (0x55f), region = 64 }
  0x14   : > { %v4688_v0 = vld [vmem:[%s7086_s1 + $0xe4] ss:$16 sps:$4 sm:$0xff]   ;;  %v4692_v2 = vld [vmem:[%s7086_s1 + $0xe0] ss:$16 sps:$4 sm:$0xff]   ;;  %s4166_s24 = sshll.u32 %s5257_s21, 4  ;;  %vm1758_vm0 = vcmask 130048  }
  0x15   : > { %v4690_v1 = vld [vmem:[%s7086_s1 + $0x2e4] ss:$16 sps:$4 sm:$0xff]   ;;  %1783 = vmatprep.subr.bf16.mxu0 %v4688_v0  ;;  %v4693_v3 = vld [vmem:[%s7086_s1 + $0x2e0] ss:$16 sps:$4 sm:$0xff]   ;;  %p384_p10 = scmp.lt.s32.totalorder %s4166_s24, 31  ;;  %s4484_s13 = sshll.u32 %s5257_s21, 11 }
  0x16   : > { %1896 = vmatprep.subr.bf16.mxu1 %v4690_v1  ;;  %v4694_v4 = vld [vmem:[%s7086_s1 + $0xc4] ss:$16 sps:$4 sm:$0xff]   ;;  %1784 = vmatpush1.bf16.msra.mxu0 %v4692_v2  ;;  %v4698_v6 = vld [vmem:[%s7086_s1 + $0xc0] ss:$16 sps:$4 sm:$0xff]   ;;  %s7037_s16 = scalar_lea.hbm %s7096_s11, %s4484_s13  ;;  %s5173_s22 = smov [#allocation2]  }
  0x17   : > { %1897 = vmatpush1.bf16.msra.mxu1 %v4693_v3  ;;  %v4696_v5 = vld [vmem:[%s7086_s1 + $0x2c4] ss:$16 sps:$4 sm:$0xff]   ;;  %1785 = vmatprep.subr.bf16.mxu0 %v4694_v4  ;;  %v4699_v7 = vld [vmem:[%s7086_s1 + $0x2c0] ss:$16 sps:$4 sm:$0xff]   ;;  %s7161_s24 = smov (!%p384_p10, %s4166_s24), 31 }
  0x18   : > { %1898 = vmatprep.subr.bf16.mxu1 %v4696_v5  ;;  %v4700_v8 = vld [vmem:[%s7086_s1 + $0xa4] ss:$16 sps:$4 sm:$0xff]   ;;  %v4704_v10 = vld [vmem:[%s7086_s1 + $0xa0] ss:$16 sps:$4 sm:$0xff]   ;;  %s4645_s29 = smul.u32 56, %s7161_s24  ;;  %s380_s24 = sand.u32 1, %s5162_s18  }
  0x19   : > { %v4702_v9 = vld [vmem:[%s7086_s1 + $0x2a4] ss:$16 sps:$4 sm:$0xff]   ;;  %v4705_v11 = vld [vmem:[%s7086_s1 + $0x2a0] ss:$16 sps:$4 sm:$0xff]   ;;  %s4165_s25 = sshll.u32 %s380_s24, 7  ;;  %s7045_s21 = scalar_lea.sflag [#allocation3], %s380_s24 }
  0x1a   : > { %1786 = vmatpush1.bf16.msra.mxu0 %v4698_v6  ;;  %v4706_v12 = vld [vmem:[%s7086_s1 + $0x84] ss:$16 sps:$4 sm:$0xff]   ;;  %v4710_v14 = vld [vmem:[%s7086_s1 + $0x80] ss:$16 sps:$4 sm:$0xff]   ;;  %s5420_s19 = scalar_lea.vmem %s7085_s0, %s4645_s29  ;;  %s7016_s12 = scalar_lea.vmem [#allocation2], %s4165_s25 }
  0x1b   : > { %1899 = vmatpush1.bf16.msra.mxu1 %v4699_v7  ;;  %1787 = vmatprep.subr.bf16.mxu0 %v4700_v8  ;;  %v4708_v13 = vld [vmem:[%s7086_s1 + $0x284] ss:$16 sps:$4 sm:$0xff]   ;;  %v4711_v15 = vld [vmem:[%s7086_s1 + $0x280] ss:$16 sps:$4 sm:$0xff]   ;;  %v393_v46 = vld [vmem:[%s5420_s19 + $0x8] sm:$0xff]  ;;  %s4099_s14 = sshll.u32 %s7016_s12, 4  ;;  %s7039_s14 = int_to_ptr.vmem [resolvable:$true] %s4099_s14 }
  0x1c   : > { %1900 = vmatprep.subr.bf16.mxu1 %v4702_v9  ;;  %v4712_v16 = vld [vmem:[%s7086_s1 + $0x64] ss:$16 sps:$4 sm:$0xff]   ;;  %v4716_v18 = vld [vmem:[%s7086_s1 + $0x60] ss:$16 sps:$4 sm:$0xff]   ;;  %v395_v48 = vld [vmem:[%s5420_s19 + $0x18] sm:$0xff]  ;;  %s5114_s25 = sshll.u32 %s5173_s22, 4  ;;  %s5115_s25 = int_to_ptr.vmem [resolvable:$false] %s5114_s25 }
  0x1d   : > { %v4714_v17 = vld [vmem:[%s7086_s1 + $0x264] ss:$16 sps:$4 sm:$0xff]   ;;  %v4717_v19 = vld [vmem:[%s7086_s1 + $0x260] ss:$16 sps:$4 sm:$0xff]   ;;  %v399_v7 = vld [vmem:[%s5420_s19 + $0x38] sm:$0xff]  ;;  %s5116_s26 = scalar_lea.vmem %s5115_s25, 4096  ;;  %p5117_p0 = scmp.lt.s32.totalorder %s7039_s14, %s5115_s25 }
  0x1e   : > { %1788 = vmatpush1.bf16.msra.mxu0 %v4704_v10  ;;  %v4718_v20 = vld [vmem:[%s7086_s1 + $0x44] ss:$16 sps:$4 sm:$0xff]   ;;  %v4722_v22 = vld [vmem:[%s7086_s1 + $0x40] ss:$16 sps:$4 sm:$0xff]   ;;  %v401_v9 = vld [vmem:[%s5420_s19 + $0x48] sm:$0xff] }
  0x1f   : > { %1901 = vmatpush1.bf16.msra.mxu1 %v4705_v11  ;;  %1789 = vmatprep.subr.bf16.mxu0 %v4706_v12  ;;  %v4720_v21 = vld [vmem:[%s7086_s1 + $0x244] ss:$16 sps:$4 sm:$0xff]   ;;  %v4723_v23 = vld [vmem:[%s7086_s1 + $0x240] ss:$16 sps:$4 sm:$0xff]  }
  0x20   : > { %1902 = vmatprep.subr.bf16.mxu1 %v4708_v13  ;;  %v4724_v24 = vld [vmem:[%s7086_s1 + $0x24] ss:$16 sps:$4 sm:$0xff]   ;;  %v4728_v26 = vld [vmem:[%s7086_s1 + $0x20] ss:$16 sps:$4 sm:$0xff]   ;;  %v407_v13 = vld [vmem:[%s5420_s19 + $0x78] sm:$0xff] }
  0x21   : > { %v4726_v25 = vld [vmem:[%s7086_s1 + $0x224] ss:$16 sps:$4 sm:$0xff]   ;;  %v4729_v27 = vld [vmem:[%s7086_s1 + $0x220] ss:$16 sps:$4 sm:$0xff]  }
  0x22   : > { %1790 = vmatpush1.bf16.msra.mxu0 %v4710_v14  ;;  %v4730_v28 = vld [vmem:[%s7086_s1 + $0x4] ss:$16 sps:$4 sm:$0xff]   ;;  %v4734_v30 = vld [vmem:[%s7086_s1] ss:$16 sps:$4 sm:$0xff]  }
  0x23   : > { %1903 = vmatpush1.bf16.msra.mxu1 %v4711_v15  ;;  %1791 = vmatprep.subr.bf16.mxu0 %v4712_v16  ;;  %v4732_v29 = vld [vmem:[%s7086_s1 + $0x204] ss:$16 sps:$4 sm:$0xff]   ;;  %v4735_v31 = vld [vmem:[%s7086_s1 + $0x200] ss:$16 sps:$4 sm:$0xff]  }
  0x24   : > { %1904 = vmatprep.subr.bf16.mxu1 %v4714_v17  ;;  %v4736_v32 = vld [vmem:[%s7086_s1 + $0x1e4] ss:$16 sps:$4 sm:$0xff]   ;;  %v4740_v34 = vld [vmem:[%s7086_s1 + $0x1e0] ss:$16 sps:$4 sm:$0xff]   ;;  %v409_v17 = vld [vmem:[%s5420_s19 + $0x88] sm:$0xff] }
  0x25   : > { %v4738_v33 = vld [vmem:[%s7086_s1 + $0x3e4] ss:$16 sps:$4 sm:$0xff]   ;;  %v4741_v35 = vld [vmem:[%s7086_s1 + $0x3e0] ss:$16 sps:$4 sm:$0xff]  }
  0x26   : > { %1792 = vmatpush1.bf16.msra.mxu0 %v4716_v18  ;;  %v4742_v36 = vld [vmem:[%s7086_s1 + $0x1c4] ss:$16 sps:$4 sm:$0xff]   ;;  %v4746_v38 = vld [vmem:[%s7086_s1 + $0x1c0] ss:$16 sps:$4 sm:$0xff]  }
  0x27   : > { %1905 = vmatpush1.bf16.msra.mxu1 %v4717_v19  ;;  %1793 = vmatprep.subr.bf16.mxu0 %v4718_v20  ;;  %v4744_v37 = vld [vmem:[%s7086_s1 + $0x3c4] ss:$16 sps:$4 sm:$0xff]   ;;  %v4747_v39 = vld [vmem:[%s7086_s1 + $0x3c0] ss:$16 sps:$4 sm:$0xff]  }
  0x28   : > { %1906 = vmatprep.subr.bf16.mxu1 %v4720_v21  ;;  %v4748_v40 = vld [vmem:[%s7086_s1 + $0x1a4] ss:$16 sps:$4 sm:$0xff]   ;;  %v4752_v42 = vld [vmem:[%s7086_s1 + $0x1a0] ss:$16 sps:$4 sm:$0xff]  }
  0x29   : > { %v4750_v41 = vld [vmem:[%s7086_s1 + $0x3a4] ss:$16 sps:$4 sm:$0xff]   ;;  %v4753_v43 = vld [vmem:[%s7086_s1 + $0x3a0] ss:$16 sps:$4 sm:$0xff]  }
  0x2a   : > { %1794 = vmatpush1.bf16.msra.mxu0 %v4722_v22  ;;  %v4754_v44 = vld [vmem:[%s7086_s1 + $0x184] ss:$16 sps:$4 sm:$0xff]   ;;  %v4758_v50 = vld [vmem:[%s7086_s1 + $0x180] ss:$16 sps:$4 sm:$0xff]  }
  0x2b   : > { %1907 = vmatpush1.bf16.msra.mxu1 %v4723_v23  ;;  %1795 = vmatprep.subr.bf16.mxu0 %v4724_v24  ;;  %v4756_v45 = vld [vmem:[%s7086_s1 + $0x384] ss:$16 sps:$4 sm:$0xff]   ;;  %v4759_v51 = vld [vmem:[%s7086_s1 + $0x380] ss:$16 sps:$4 sm:$0xff]  }
  0x2c   : > { %1908 = vmatprep.subr.bf16.mxu1 %v4726_v25  ;;  %v400_v47 = vld [vmem:[%s5420_s19 + $0x40] sm:$0xff]  ;;  %v402_v49 = vld [vmem:[%s5420_s19 + $0x50] sm:$0xff]  ;;  %v413_v25 = vld [vmem:[%s5420_s19 + $0xa8] sm:$0xff] }
  0x2d   : > { %v4760_v52 = vld [vmem:[%s7086_s1 + $0x164] ss:$16 sps:$4 sm:$0xff]   ;;  %v5441_v53 = vpack.c.bf16 %v400_v47, %v393_v46  ;;  %v5443_v54 = vpack.c.bf16 %v402_v49, %v395_v48  ;;  %v4764_v56 = vld [vmem:[%s7086_s1 + $0x160] ss:$16 sps:$4 sm:$0xff]   ;;  %v437_v47 = vld [vmem:[%s5420_s19 + $0x168] sm:$0xff] }
  0x2e   : > { %1796 = vmatpush1.bf16.msra.mxu0 %v4728_v26  ;;  %v4762_v55 = vld [vmem:[%s7086_s1 + $0x364] ss:$16 sps:$4 sm:$0xff]   ;;  %v4765_v57 = vld [vmem:[%s7086_s1 + $0x360] ss:$16 sps:$4 sm:$0xff]  }
  0x2f   : > { %1909 = vmatpush1.bf16.msra.mxu1 %v4729_v27  ;;  %1797 = vmatprep.subr.bf16.mxu0 %v4730_v28  ;;  %v4766_v58 = vld [vmem:[%s7086_s1 + $0x144] ss:$16 sps:$4 sm:$0xff]   ;;  %v4770_v60 = vld [vmem:[%s7086_s1 + $0x140] ss:$16 sps:$4 sm:$0xff]   ;;  %v415_v27 = vld [vmem:[%s5420_s19 + $0xb8] sm:$0xff] }
  0x30   : > { %1910 = vmatprep.subr.bf16.mxu1 %v4732_v29  ;;  %1815 = vmatprep.mubr.bf16.mxu0 %v5441_v53  ;;  %v4768_v59 = vld [vmem:[%s7086_s1 + $0x344] ss:$16 sps:$4 sm:$0xff]   ;;  %v4771_v61 = vld [vmem:[%s7086_s1 + $0x340] ss:$16 sps:$4 sm:$0xff]   ;;  %v421_v29 = vld [vmem:[%s5420_s19 + $0xe8] sm:$0xff] }
  0x31   : > { %1928 = vmatprep.mubr.bf16.mxu1 %v5443_v54  ;;  %v4772_v62 = vld [vmem:[%s7086_s1 + $0x124] ss:$16 sps:$4 sm:$0xff]   ;;  %v4776_v0 = vld [vmem:[%s7086_s1 + $0x120] ss:$16 sps:$4 sm:$0xff]  }
  0x32   : > { %1798 = vmatpush1.bf16.msra.mxu0 %v4734_v30  ;;  %v4774_v63 = vld [vmem:[%s7086_s1 + $0x324] ss:$16 sps:$4 sm:$0xff]   ;;  %v4777_v1 = vld [vmem:[%s7086_s1 + $0x320] ss:$16 sps:$4 sm:$0xff]  }
  0x33   : > { %1911 = vmatpush1.bf16.msra.mxu1 %v4735_v31  ;;  %1799 = vmatprep.subr.bf16.mxu0 %v4736_v32  ;;  %v4778_v2 = vld [vmem:[%s7086_s1 + $0x104] ss:$16 sps:$4 sm:$0xff]   ;;  %v4782_v4 = vld [vmem:[%s7086_s1 + $0x100] ss:$16 sps:$4 sm:$0xff]   ;;  %v423_v31 = vld [vmem:[%s5420_s19 + $0xf8] sm:$0xff] }
  0x34   : > { %1912 = vmatprep.subr.bf16.mxu1 %v4738_v33  ;;  %v4780_v3 = vld [vmem:[%s7086_s1 + $0x304] ss:$16 sps:$4 sm:$0xff]   ;;  %v4783_v5 = vld [vmem:[%s7086_s1 + $0x300] ss:$16 sps:$4 sm:$0xff]  }
  0x35   : > { %v392_v6 = vld [vmem:[%s5420_s19] sm:$0xff]  ;;  %v394_v8 = vld [vmem:[%s5420_s19 + $0x10] sm:$0xff] }
  0x36   : > { %1800 = vmatpush2.bf16.msra.mxu0 %v4740_v34  ;;  %v4786_v10 = vld [vmem:[%s7086_s1 + $0x4e4] ss:$16 sps:$4 sm:$0xff]   ;;  %v4784_v12 = vld [vmem:[%s7086_s1 + $0x4e0] ss:$16 sps:$4 sm:$0xff]   ;;  %v5507_v15 = vpack.c.bf16 %v399_v7, %v392_v6  ;;  %v5509_v16 = vpack.c.bf16 %v401_v9, %v394_v8 }
  0x37   : > { %1913 = vmatpush2.bf16.msra.mxu1 %v4741_v35  ;;  %1801 = vmatprep.subr.bf16.mxu0 %v4742_v36  ;;  %v4789_v11 = vld [vmem:[%s7086_s1 + $0x604] ss:$16 sps:$4 sm:$0xff]   ;;  %v4787_v19 = vld [vmem:[%s7086_s1 + $0x600] ss:$16 sps:$4 sm:$0xff]  }
  0x38   : > { %1914 = vmatprep.subr.bf16.mxu1 %v4744_v37  ;;  %v414_v14 = vld [vmem:[%s5420_s19 + $0xb0] sm:$0xff]  ;;  %v416_v18 = vld [vmem:[%s5420_s19 + $0xc0] sm:$0xff] }
  0x39   : > { %v4792_v20 = vld [vmem:[%s7086_s1 + $0x4c4] ss:$16 sps:$4 sm:$0xff]   ;;  %v5519_v21 = vpack.c.bf16 %v414_v14, %v407_v13  ;;  %v4790_v22 = vld [vmem:[%s7086_s1 + $0x4c0] ss:$16 sps:$4 sm:$0xff]   ;;  %v5524_v23 = vpack.c.bf16 %v416_v18, %v409_v17  ;;  %v4840_v13 = vld [vmem:[%s7086_s1 + $0x2ec] ss:$16 sps:$4 sm:$0xff]  }
  0x3a   : > { %1802 = vmatpush2.bf16.msra.mxu0 %v4746_v38  ;;  %v406_v24 = vld [vmem:[%s5420_s19 + $0x70] sm:$0xff]  ;;  %v408_v26 = vld [vmem:[%s5420_s19 + $0x80] sm:$0xff]  ;;  %v457_v14 = vld [vmem:[%s5420_s19 + $0x208] sm:$0xff] }
  0x3b   : > { %1915 = vmatpush2.bf16.msra.mxu1 %v4747_v39  ;;  %1803 = vmatprep.subr.bf16.mxu0 %v4748_v40  ;;  %v4795_v28 = vld [vmem:[%s7086_s1 + $0x4a4] ss:$16 sps:$4 sm:$0xff]   ;;  %v5541_v33 = vpack.c.bf16 %v413_v25, %v406_v24  ;;  %v5543_v34 = vpack.c.bf16 %v415_v27, %v408_v26  ;;  %v4793_v35 = vld [vmem:[%s7086_s1 + $0x4a0] ss:$16 sps:$4 sm:$0xff]   ;;  %v463_v18 = vld [vmem:[%s5420_s19 + $0x238] sm:$0xff] }
  0x3c   : > { %1916 = vmatprep.subr.bf16.mxu1 %v4750_v41  ;;  %v428_v30 = vld [vmem:[%s5420_s19 + $0x120] sm:$0xff]  ;;  %v430_v32 = vld [vmem:[%s5420_s19 + $0x130] sm:$0xff]  ;;  %v427_v41 = vld [vmem:[%s5420_s19 + $0x118] sm:$0xff] }
  0x3d   : > { %v5548_v36 = vpack.c.bf16 %v428_v30, %v421_v29  ;;  %v4798_v37 = vld [vmem:[%s7086_s1 + $0x484] ss:$16 sps:$4 sm:$0xff]   ;;  %v5553_v38 = vpack.c.bf16 %v430_v32, %v423_v31  ;;  %v4796_v39 = vld [vmem:[%s7086_s1 + $0x480] ss:$16 sps:$4 sm:$0xff]   ;;  %v469_v32 = vld [vmem:[%s5420_s19 + $0x268] sm:$0xff] }
  0x3e   : > { %1804 = vmatpush2.bf16.msra.mxu0 %v4752_v42  ;;  %v420_v40 = vld [vmem:[%s5420_s19 + $0xe0] sm:$0xff]  ;;  %v422_v42 = vld [vmem:[%s5420_s19 + $0xf0] sm:$0xff] }
  0x3f   : > { %1917 = vmatpush2.bf16.msra.mxu1 %v4753_v43  ;;  %1805 = vmatprep.subr.bf16.mxu0 %v4754_v44  ;;  %v429_v43 = vld [vmem:[%s5420_s19 + $0x128] sm:$0xff]  ;;  %v4801_v44 = vld [vmem:[%s7086_s1 + $0x464] ss:$16 sps:$4 sm:$0xff]   ;;  %v5573_v49 = vpack.c.bf16 %v427_v41, %v420_v40  ;;  %v4808_v9 = vld [vmem:[%s7086_s1 + $0x400] ss:$16 sps:$4 sm:$0xff]  }
  0x40   : > { %1918 = vmatprep.subr.bf16.mxu1 %v4756_v45  ;;  %v435_v45 = vld [vmem:[%s5420_s19 + $0x158] sm:$0xff]  ;;  %v442_v46 = vld [vmem:[%s5420_s19 + $0x190] sm:$0xff]  ;;  %v444_v48 = vld [vmem:[%s5420_s19 + $0x1a0] sm:$0xff] }
  0x41   : > { %v4810_v7 = vld [vmem:[%s7086_s1 + $0x404] ss:$16 sps:$4 sm:$0xff]   ;;  %v4811_v26 = vld [vmem:[%s7086_s1 + $0x5e0] ss:$16 sps:$4 sm:$0xff]   ;;  %v477_v40 = vld [vmem:[%s5420_s19 + $0x2a8] sm:$0xff] }
  0x42   : > { %1806 = vmatpush2.bf16.msra.mxu0 %v4758_v50  ;;  %v5575_v50 = vpack.c.bf16 %v429_v43, %v422_v42  ;;  %v4813_v17 = vld [vmem:[%s7086_s1 + $0x5e4] ss:$16 sps:$4 sm:$0xff]   ;;  %v4814_v30 = vld [vmem:[%s7086_s1 + $0x5c0] ss:$16 sps:$4 sm:$0xff]   ;;  %v479_v42 = vld [vmem:[%s5420_s19 + $0x2b8] sm:$0xff] }
  0x43   : > { %1919 = vmatpush2.bf16.msra.mxu1 %v4759_v51  ;;  %1807 = vmatprep.subr.bf16.mxu0 %v4760_v52  ;;  %v4799_v51 = vld [vmem:[%s7086_s1 + $0x460] ss:$16 sps:$4 sm:$0xff]   ;;  %v5580_v52 = vpack.c.bf16 %v442_v46, %v435_v45 }
  0x44   : > { %1920 = vmatprep.subr.bf16.mxu1 %v4762_v55  ;;  %v4804_v55 = vld [vmem:[%s7086_s1 + $0x444] ss:$16 sps:$4 sm:$0xff]   ;;  %v4817_v46 = vld [vmem:[%s7086_s1 + $0x5a0] ss:$16 sps:$4 sm:$0xff]  }
  0x45   : > { %v462_v31 = vld [vmem:[%s5420_s19 + $0x230] sm:$0xff]  ;;  %v484_v41 = vld [vmem:[%s5420_s19 + $0x2e0] sm:$0xff] }
  0x46   : > { %1808 = vmatpush2.bf16.msra.mxu0 %v4764_v56  ;;  %v5585_v56 = vpack.c.bf16 %v444_v48, %v437_v47  ;;  %v486_v43 = vld [vmem:[%s5420_s19 + $0x2f0] sm:$0xff]  ;;  %v5679_v47 = vpack.c.bf16 %v484_v41, %v477_v40  ;;  %v405_v41 = vld [vmem:[%s5420_s19 + $0x68] sm:$0xff] }
  0x47   : > { %1921 = vmatpush2.bf16.msra.mxu1 %v4765_v57  ;;  %1809 = vmatprep.subr.bf16.mxu0 %v4766_v58  ;;  %v4802_v57 = vld [vmem:[%s7086_s1 + $0x440] ss:$16 sps:$4 sm:$0xff]   ;;  %v4822_v48 = vld [vmem:[%s7086_s1 + $0x584] ss:$16 sps:$4 sm:$0xff]  }
  0x48   : > { %1922 = vmatprep.subr.bf16.mxu1 %v4768_v59  ;;  %v434_v58 = vld [vmem:[%s5420_s19 + $0x150] sm:$0xff]  ;;  %v441_v59 = vld [vmem:[%s5420_s19 + $0x188] sm:$0xff] }
  0x49   : > { %v398_v40 = vld [vmem:[%s5420_s19 + $0x30] sm:$0xff] }
  0x4a   : > { %1810 = vmatpush2.bf16.msra.mxu0 %v4770_v60  ;;  %v436_v60 = vld [vmem:[%s5420_s19 + $0x160] sm:$0xff] }
  0x4b   : > { %1923 = vmatpush2.bf16.msra.mxu1 %v4771_v61  ;;  %1811 = vmatprep.subr.bf16.mxu0 %v4772_v62  ;;  %v443_v61 = vld [vmem:[%s5420_s19 + $0x198] sm:$0xff]  ;;  %v4807_v62 = vld [vmem:[%s7086_s1 + $0x424] ss:$16 sps:$4 sm:$0xff]  }
  0x4c   : > { %1924 = vmatprep.subr.bf16.mxu1 %v4774_v63  ;;  %v449_v63 = vld [vmem:[%s5420_s19 + $0x1c8] sm:$0xff] }
  0x4e   : > { %1812 = vmatpush2.bf16.msra.mxu0 %v4776_v0  ;;  %v456_v0 = vld [vmem:[%s5420_s19 + $0x200] sm:$0xff] }
  0x4f   : > { %1925 = vmatpush2.bf16.msra.mxu1 %v4777_v1  ;;  %1813 = vmatprep.subr.bf16.mxu0 %v4778_v2  ;;  %v451_v1 = vld [vmem:[%s5420_s19 + $0x1d8] sm:$0xff]  ;;  %v458_v2 = vld [vmem:[%s5420_s19 + $0x210] sm:$0xff]  ;;  %v5612_v6 = vpack.c.bf16 %v456_v0, %v449_v63  ;;  %v493_v0 = vld [vmem:[%s5420_s19 + $0x328] sm:$0xff] }
  0x50   : > { %1926 = vmatprep.subr.bf16.mxu1 %v4780_v3  ;;  %v5605_v3 = vpack.c.bf16 %v441_v59, %v434_v58  ;;  %v5617_v8 = vpack.c.bf16 %v458_v2, %v451_v1  ;;  %v483_v58 = vld [vmem:[%s5420_s19 + $0x2d8] sm:$0xff]  ;;  %v478_v59 = vld [vmem:[%s5420_s19 + $0x2b0] sm:$0xff]  ;;  %v500_v1 = vld [vmem:[%s5420_s19 + $0x360] sm:$0xff] }
  0x51   : > { %v498_v63 = vld [vmem:[%s5420_s19 + $0x350] sm:$0xff] }
  0x52   : > { %1814 = vmatpush2.bf16.msra.mxu0 %v4782_v4  ;;  %v5607_v4 = vpack.c.bf16 %v443_v61, %v436_v60  ;;  %v485_v60 = vld [vmem:[%s5420_s19 + $0x2e8] sm:$0xff]  ;;  %v4825_v61 = vld [vmem:[%s7086_s1 + $0x564] ss:$16 sps:$4 sm:$0xff]  }
  0x53   : > { %1927 = vmatpush2.bf16.msra.mxu1 %v4783_v5  ;;  %2009 = vmatprep.subr.bf16.mxu0 %v4786_v10  ;;  %v4805_v5 = vld [vmem:[%s7086_s1 + $0x420] ss:$16 sps:$4 sm:$0xff]  }
  0x54   : > { %2136 = vmatprep.subr.bf16.mxu1 %v4789_v11  ;;  %v448_v10 = vld [vmem:[%s5420_s19 + $0x1c0] sm:$0xff]  ;;  %v455_v11 = vld [vmem:[%s5420_s19 + $0x1f8] sm:$0xff] }
  0x55   : > { %1816 = vmatmul.mubr.bf16.vlgmr.msra.gmra.mxu0 %v5507_v15  ;;  %v5640_v24 = vpack.c.bf16 %v455_v11, %v448_v10  ;;  %v4828_v10 = vld [vmem:[%s7086_s1 + $0x544] ss:$16 sps:$4 sm:$0xff]   ;;  %v5716_v11 = vpack.c.bf16 %v500_v1, %v493_v0  ;;  %v4844_v0 = vld [vmem:[%s7086_s1 + $0x2c8] ss:$16 sps:$4 sm:$0xff]  }
  0x56   : > { %1929 = vmatmul.mubr.bf16.vlgmr.msra.gmra.mxu1 %v5509_v16  ;;  %2010 = vmatpush1.bf16.msra.mxu0 %v4784_v12  ;;  %v450_v12 = vld [vmem:[%s5420_s19 + $0x1d0] sm:$0xff] }
  0x57   : > { %2137 = vmatpush1.bf16.msra.mxu1 %v4787_v19  ;;  %2011 = vmatprep.subr.bf16.mxu0 %v4792_v20  ;;  %v470_v19 = vld [vmem:[%s5420_s19 + $0x270] sm:$0xff]  ;;  %v465_v20 = vld [vmem:[%s5420_s19 + $0x248] sm:$0xff]  ;;  %v5642_v25 = vpack.c.bf16 %v457_v14, %v450_v12 }
  0x58   : > { %1825 = vmatprep.mubr.bf16.mxu0 %v5519_v21  ;;  %1938 = vmatprep.mubr.bf16.mxu1 %v5524_v23  ;;  %v5647_v27 = vpack.c.bf16 %v470_v19, %v463_v18  ;;  %v4826_v12 = vld [vmem:[%s7086_s1 + $0x540] ss:$16 sps:$4 sm:$0xff]   ;;  %v497_v14 = vld [vmem:[%s5420_s19 + $0x348] sm:$0xff]  ;;  %v499_v18 = vld [vmem:[%s5420_s19 + $0x358] sm:$0xff] }
  0x59   : > { %2348 = vmatprep.subr.bf16.mxu1 %v4840_v13  ;;  %v490_v13 = vld [vmem:[%s5420_s19 + $0x310] sm:$0xff] }
  0x5a   : > { %2012 = vmatpush1.bf16.msra.mxu0 %v4790_v22  ;;  %v472_v22 = vld [vmem:[%s5420_s19 + $0x280] sm:$0xff]  ;;  %v410_v1 = vld [vmem:[%s5420_s19 + $0x90] sm:$0xff] }
  0x5b   : > { %2013 = vmatprep.subr.bf16.mxu0 %v4795_v28  ;;  %v4816_v28 = vld [vmem:[%s7086_s1 + $0x5c4] ss:$16 sps:$4 sm:$0xff]   ;;  %v5652_v29 = vpack.c.bf16 %v472_v22, %v465_v20  ;;  %v397_v20 = vld [vmem:[%s5420_s19 + $0x28] sm:$0xff] }
  0x5c   : > { %v4831_v19 = vld [vmem:[%s7086_s1 + $0x524] ss:$16 sps:$4 sm:$0xff]  }
  0x5d   : > { %1826 = vmatmul.mubr.bf16.gmra.mxu0 %v5541_v33  ;;  %v404_v22 = vld [vmem:[%s5420_s19 + $0x60] sm:$0xff] }
  0x5e   : > { %1939 = vmatmul.mubr.bf16.gmra.mxu1 %v5543_v34  ;;  %2014 = vmatpush1.bf16.msra.mxu0 %v4793_v35  ;;  %v464_v35 = vld [vmem:[%s5420_s19 + $0x240] sm:$0xff] }
  0x5f   : > { %1835 = vmatprep.mubr.bf16.mxu0 %v5548_v36  ;;  %2015 = vmatprep.subr.bf16.mxu0 %v4798_v37  ;;  %v471_v37 = vld [vmem:[%s5420_s19 + $0x278] sm:$0xff] }
  0x60   : > { %1948 = vmatprep.mubr.bf16.mxu1 %v5553_v38  ;;  %v5674_v45 = vpack.c.bf16 %v471_v37, %v464_v35  ;;  %v4832_v35 = vld [vmem:[%s7086_s1 + $0x500] ss:$16 sps:$4 sm:$0xff]  }
  0x61   : > { %v396_v37 = vld [vmem:[%s5420_s19 + $0x20] sm:$0xff] }
  0x62   : > { %2016 = vmatpush1.bf16.msra.mxu0 %v4796_v39  ;;  %v4819_v39 = vld [vmem:[%s7086_s1 + $0x5a4] ss:$16 sps:$4 sm:$0xff]  }
  0x63   : > { %2017 = vmatprep.subr.bf16.mxu0 %v4801_v44  ;;  %v5672_v44 = vpack.c.bf16 %v469_v32, %v462_v31  ;;  %v5741_v31 = vpack.c.bf16 %v404_v22, %v397_v20  ;;  %v4834_v32 = vld [vmem:[%s7086_s1 + $0x504] ss:$16 sps:$4 sm:$0xff]   ;;  %v4847_v22 = vld [vmem:[%s7086_s1 + $0xa8] ss:$16 sps:$4 sm:$0xff]  }
  0x64   : > { %v432_v20 = vld [vmem:[%s5420_s19 + $0x140] sm:$0xff] }
  0x65   : > { %1836 = vmatmul.mubr.bf16.gmra.mxu0 %v5573_v49 }
  0x66   : > { %1949 = vmatmul.mubr.bf16.gmra.mxu1 %v5575_v50  ;;  %2018 = vmatpush1.bf16.msra.mxu0 %v4799_v51  ;;  %v5684_v51 = vpack.c.bf16 %v486_v43, %v479_v42  ;;  %v7099_v42 = vmov 0   ;;  %v4837_v43 = vld [vmem:[%s7086_s1 + $0xec] ss:$16 sps:$4 sm:$0xff]  }
  0x67   : > { %1845 = vmatprep.mubr.bf16.mxu0 %v5580_v52  ;;  %2019 = vmatprep.subr.bf16.mxu0 %v4804_v55  ;;  %v4820_v55 = vld [vmem:[%s7086_s1 + $0x580] ss:$16 sps:$4 sm:$0xff]  }
  0x68   : > { %1958 = vmatprep.mubr.bf16.mxu1 %v5585_v56 }
  0x6a   : > { %2020 = vmatpush1.bf16.msra.mxu0 %v4802_v57  ;;  %v476_v57 = vld [vmem:[%s5420_s19 + $0x2a0] sm:$0xff] }
  0x6b   : > { %2021 = vmatprep.subr.bf16.mxu0 %v4807_v62  ;;  %v491_v62 = vld [vmem:[%s5420_s19 + $0x318] sm:$0xff]  ;;  %v5704_v2 = vpack.c.bf16 %v483_v58, %v476_v57  ;;  %v5768_v57 = vpack.c.bf16 %v405_v41, %v398_v40  ;;  %v424_v41 = vld [vmem:[%s5420_s19 + $0x100] sm:$0xff] }
  0x6c   : > { %v411_v58 = vld [vmem:[%s5420_s19 + $0x98] sm:$0xff] }
  0x6d   : > { %1846 = vmatmul.mubr.bf16.gmra.mxu0 %v5605_v3 }
  0x6e   : > { %1959 = vmatmul.mubr.bf16.gmra.mxu1 %v5607_v4  ;;  %2022 = vmatpush1.bf16.msra.mxu0 %v4805_v5  ;;  %v5706_v5 = vpack.c.bf16 %v485_v60, %v478_v59  ;;  %v418_v59 = vld [vmem:[%s5420_s19 + $0xd0] sm:$0xff]  ;;  %v4843_v60 = vld [vmem:[%s7086_s1 + $0xcc] ss:$16 sps:$4 sm:$0xff]  }
  0x6f   : > { %1855 = vmatprep.mubr.bf16.mxu0 %v5612_v6  ;;  %2023 = vmatprep.subr.bf16.mxu0 %v4810_v7  ;;  %v4823_v7 = vld [vmem:[%s7086_s1 + $0x560] ss:$16 sps:$4 sm:$0xff]  }
  0x70   : > { %1968 = vmatprep.mubr.bf16.mxu1 %v5617_v8 }
  0x72   : > { %2024 = vmatpush1.bf16.msra.mxu0 %v4808_v9  ;;  %v5711_v9 = vpack.c.bf16 %v498_v63, %v491_v62  ;;  %v4841_v62 = vld [vmem:[%s7086_s1 + $0xc8] ss:$16 sps:$4 sm:$0xff]   ;;  %v5781_v63 = vpack.c.bf16 %v418_v59, %v411_v58  ;;  %v4861_v58 = vld [vmem:[%s7086_s1 + $0x6c] ss:$16 sps:$4 sm:$0xff]  }
  0x73   : > { %2025 = vmatprep.subr.bf16.mxu0 %v4813_v17  ;;  %v492_v17 = vld [vmem:[%s5420_s19 + $0x320] sm:$0xff]  ;;  %v4864_v59 = vld [vmem:[%s7086_s1 + $0x26c] ss:$16 sps:$4 sm:$0xff]  }
  0x75   : > { %1856 = vmatmul.mubr.bf16.gmra.mxu0 %v5640_v24 }
  0x76   : > { %1969 = vmatmul.mubr.bf16.gmra.mxu1 %v5642_v25  ;;  %2026 = vmatpush2.bf16.msra.mxu0 %v4811_v26  ;;  %v5734_v26 = vpack.c.bf16 %v497_v14, %v490_v13  ;;  %v4849_v13 = vld [vmem:[%s7086_s1 + $0xac] ss:$16 sps:$4 sm:$0xff]  }
  0x77   : > { %1865 = vmatprep.mubr.bf16.mxu0 %v5647_v27  ;;  %2027 = vmatprep.subr.bf16.mxu0 %v4816_v28  ;;  %v5736_v28 = vpack.c.bf16 %v499_v18, %v492_v17  ;;  %v4852_v14 = vld [vmem:[%s7086_s1 + $0x2ac] ss:$16 sps:$4 sm:$0xff]  }
  0x78   : > { %1978 = vmatprep.mubr.bf16.mxu1 %v5652_v29  ;;  %v425_v17 = vld [vmem:[%s5420_s19 + $0x108] sm:$0xff] }
  0x79   : > { %v5825_v40 = vpack.c.bf16 %v432_v20, %v425_v17  ;;  %v438_v20 = vld [vmem:[%s5420_s19 + $0x170] sm:$0xff] }
  0x7a   : > { %2028 = vmatpush2.bf16.msra.mxu0 %v4814_v30  ;;  %v4829_v30 = vld [vmem:[%s7086_s1 + $0x520] ss:$16 sps:$4 sm:$0xff]  }
  0x7b   : > { %2029 = vmatprep.subr.bf16.mxu0 %v4819_v39  ;;  %v403_v39 = vld [vmem:[%s5420_s19 + $0x58] sm:$0xff] }
  0x7d   : > { %1866 = vmatmul.mubr.bf16.gmra.mxu0 %v5672_v44 }
  0x7e   : > { %1979 = vmatmul.mubr.bf16.gmra.mxu1 %v5674_v45  ;;  %2030 = vmatpush2.bf16.msra.mxu0 %v4817_v46  ;;  %v4835_v46 = vld [vmem:[%s7086_s1 + $0xe8] ss:$16 sps:$4 sm:$0xff]  }
  0x7f   : > { %1875 = vmatprep.mubr.bf16.mxu0 %v5679_v47  ;;  %2031 = vmatprep.subr.bf16.mxu0 %v4822_v48  ;;  %v4838_v48 = vld [vmem:[%s7086_s1 + $0x2e8] ss:$16 sps:$4 sm:$0xff]  }
  0x80   : > { %1988 = vmatprep.mubr.bf16.mxu1 %v5684_v51 }
  0x82   : > { %2032 = vmatpush2.bf16.msra.mxu0 %v4820_v55  ;;  %v5766_v55 = vpack.c.bf16 %v403_v39, %v396_v37  ;;  %v4853_v37 = vld [vmem:[%s7086_s1 + $0x88] ss:$16 sps:$4 sm:$0xff]  }
  0x83   : > { %2033 = vmatprep.subr.bf16.mxu0 %v4825_v61  ;;  %v4846_v61 = vld [vmem:[%s7086_s1 + $0x2cc] ss:$16 sps:$4 sm:$0xff]   ;;  %v4856_v39 = vld [vmem:[%s7086_s1 + $0x288] ss:$16 sps:$4 sm:$0xff]  }
  0x85   : > { %1876 = vmatmul.mubr.bf16.gmra.mxu0 %v5704_v2 }
  0x86   : > { %1989 = vmatmul.mubr.bf16.gmra.mxu1 %v5706_v5  ;;  %2034 = vmatpush2.bf16.msra.mxu0 %v4823_v7  ;;  %v417_v7 = vld [vmem:[%s5420_s19 + $0xc8] sm:$0xff] }
  0x87   : > { %1885 = vmatprep.mubr.bf16.mxu0 %v5711_v9  ;;  %2035 = vmatprep.subr.bf16.mxu0 %v4828_v10  ;;  %v412_v10 = vld [vmem:[%s5420_s19 + $0xa0] sm:$0xff]  ;;  %v5802_v18 = vpack.c.bf16 %v417_v7, %v410_v1  ;;  %v439_v1 = vld [vmem:[%s5420_s19 + $0x178] sm:$0xff]  ;;  %v446_v7 = vld [vmem:[%s5420_s19 + $0x1b0] sm:$0xff] }
  0x88   : > { %1998 = vmatprep.mubr.bf16.mxu1 %v5716_v11  ;;  %v5866_v17 = vpack.c.bf16 %v446_v7, %v439_v1  ;;  %v4880_v1 = vld [vmem:[%s7086_s1 + $0x208] ss:$16 sps:$4 sm:$0xff]  }
  0x8a   : > { %2036 = vmatpush2.bf16.msra.mxu0 %v4826_v12  ;;  %v419_v12 = vld [vmem:[%s5420_s19 + $0xd8] sm:$0xff] }
  0x8b   : > { %2037 = vmatprep.subr.bf16.mxu0 %v4831_v19  ;;  %v5804_v19 = vpack.c.bf16 %v419_v12, %v412_v10  ;;  %v4867_v10 = vld [vmem:[%s7086_s1 + $0x4c] ss:$16 sps:$4 sm:$0xff]  }
  0x8c   : > { %v4870_v12 = vld [vmem:[%s7086_s1 + $0x24c] ss:$16 sps:$4 sm:$0xff]  }
  0x8d   : > { %1886 = vmatmul.mubr.bf16.gmra.mxu0 %v5734_v26 }
  0x8e   : > { %1999 = vmatmul.mubr.bf16.gmra.mxu1 %v5736_v28  ;;  %2038 = vmatpush2.bf16.msra.mxu0 %v4829_v30  ;;  %v4850_v30 = vld [vmem:[%s7086_s1 + $0x2a8] ss:$16 sps:$4 sm:$0xff]  }
  0x8f   : > { %2041 = vmatprep.mubr.bf16.mxu0 %v5741_v31  ;;  %2039 = vmatprep.subr.bf16.mxu0 %v4834_v32  ;;  %v4855_v32 = vld [vmem:[%s7086_s1 + $0x8c] ss:$16 sps:$4 sm:$0xff]  }
  0x90   : > { %2154 = vmatprep.mubr.bf16.mxu1 %v7099_v42 }
  0x92   : > { %2040 = vmatpush2.bf16.msra.mxu0 %v4832_v35  ;;  %v4858_v35 = vld [vmem:[%s7086_s1 + $0x28c] ss:$16 sps:$4 sm:$0xff]  }
  0x93   : > { %2235 = vmatprep.subr.bf16.mxu0 %v4837_v43  ;;  %v431_v43 = vld [vmem:[%s5420_s19 + $0x138] sm:$0xff] }
  0x95   : > { %2042 = vmatmul.mubr.bf16.vlgmr.msra.gmra.mxu0 %v5766_v55 }
  0x96   : > { %4364 = vmatmul.mubr.msk.bf16.vlgmr.msra.gmra.mxu1 %vm1758_vm0, %v5768_v57  ;;  %2236 = vmatpush1.bf16.msra.mxu0 %v4835_v46  ;;  %v426_v46 = vld [vmem:[%s5420_s19 + $0x110] sm:$0xff] }
  0x97   : > { %2349 = vmatpush1.bf16.msra.mxu1 %v4838_v48  ;;  %2237 = vmatprep.subr.bf16.mxu0 %v4843_v60  ;;  %v433_v48 = vld [vmem:[%s5420_s19 + $0x148] sm:$0xff] }
  0x98   : > { %2350 = vmatprep.subr.bf16.mxu1 %v4846_v61  ;;  %2051 = vmatprep.mubr.bf16.mxu0 %v5781_v63  ;;  %v4859_v60 = vld [vmem:[%s7086_s1 + $0x68] ss:$16 sps:$4 sm:$0xff]  }
  0x99   : > { %2164 = vmatprep.mubr.bf16.mxu1 %v7099_v42  ;;  %v4862_v61 = vld [vmem:[%s7086_s1 + $0x268] ss:$16 sps:$4 sm:$0xff]  }
  0x9a   : > { %2238 = vmatpush1.bf16.msra.mxu0 %v4841_v62  ;;  %v5848_v62 = vpack.c.bf16 %v431_v43, %v424_v41  ;;  %v4874_v41 = vld [vmem:[%s7086_s1 + $0x228] ss:$16 sps:$4 sm:$0xff]  }
  0x9b   : > { %2351 = vmatpush1.bf16.msra.mxu1 %v4844_v0  ;;  %2239 = vmatprep.subr.bf16.mxu0 %v4849_v13  ;;  %v5850_v0 = vpack.c.bf16 %v433_v48, %v426_v46  ;;  %v4865_v13 = vld [vmem:[%s7086_s1 + $0x48] ss:$16 sps:$4 sm:$0xff]  }
  0x9c   : > { %2352 = vmatprep.subr.bf16.mxu1 %v4852_v14  ;;  %v4868_v14 = vld [vmem:[%s7086_s1 + $0x248] ss:$16 sps:$4 sm:$0xff]  }
  0x9d   : > { %2052 = vmatmul.mubr.bf16.gmra.mxu0 %v5802_v18  ;;  %v453_v48 = vld [vmem:[%s5420_s19 + $0x1e8] sm:$0xff] }
  0x9e   : > { %4365 = vmatmul.mubr.msk.bf16.gmra.mxu1 %vm1758_vm0, %v5804_v19  ;;  %2240 = vmatpush1.bf16.msra.mxu0 %v4847_v22  ;;  %v445_v22 = vld [vmem:[%s5420_s19 + $0x1a8] sm:$0xff] }
  0x9f   : > { %2353 = vmatpush1.bf16.msra.mxu1 %v4850_v30  ;;  %2241 = vmatprep.subr.bf16.mxu0 %v4855_v32  ;;  %v440_v30 = vld [vmem:[%s5420_s19 + $0x180] sm:$0xff]  ;;  %v447_v32 = vld [vmem:[%s5420_s19 + $0x1b8] sm:$0xff]  ;;  %v5889_v43 = vpack.c.bf16 %v445_v22, %v438_v20 }
  0xa0   : > { %2354 = vmatprep.subr.bf16.mxu1 %v4858_v35  ;;  %2061 = vmatprep.mubr.bf16.mxu0 %v5825_v40  ;;  %v4873_v35 = vld [vmem:[%s7086_s1 + $0x2c] ss:$16 sps:$4 sm:$0xff]   ;;  %v5891_v46 = vpack.c.bf16 %v447_v32, %v440_v30  ;;  %v4883_v30 = vld [vmem:[%s7086_s1 + $0x1e8] ss:$16 sps:$4 sm:$0xff]  }
  0xa1   : > { %2174 = vmatprep.mubr.bf16.mxu1 %v7099_v42  ;;  %v4885_v20 = vld [vmem:[%s7086_s1 + $0x1ec] ss:$16 sps:$4 sm:$0xff]   ;;  %v4886_v32 = vld [vmem:[%s7086_s1 + $0x3e8] ss:$16 sps:$4 sm:$0xff]  }
  0xa2   : > { %2242 = vmatpush1.bf16.msra.mxu0 %v4853_v37  ;;  %v4876_v37 = vld [vmem:[%s7086_s1 + $0x22c] ss:$16 sps:$4 sm:$0xff]  }
  0xa3   : > { %2355 = vmatpush1.bf16.msra.mxu1 %v4856_v39  ;;  %2243 = vmatprep.subr.bf16.mxu0 %v4861_v58  ;;  %v4871_v39 = vld [vmem:[%s7086_s1 + $0x28] ss:$16 sps:$4 sm:$0xff]   ;;  %v460_v58 = vld [vmem:[%s5420_s19 + $0x220] sm:$0xff]  ;;  %v4888_v22 = vld [vmem:[%s7086_s1 + $0x3ec] ss:$16 sps:$4 sm:$0xff]  }
  0xa4   : > { %2356 = vmatprep.subr.bf16.mxu1 %v4864_v59  ;;  %v4879_v59 = vld [vmem:[%s7086_s1 + $0xc] ss:$16 sps:$4 sm:$0xff]   ;;  %v5907_v7 = vpack.c.bf16 %v460_v58, %v453_v48 }
  0xa5   : > { %2062 = vmatmul.mubr.bf16.gmra.mxu0 %v5848_v62  ;;  %v4891_v48 = vld [vmem:[%s7086_s1 + $0x1cc] ss:$16 sps:$4 sm:$0xff]  }
  0xa6   : > { %4366 = vmatmul.mubr.msk.bf16.gmra.mxu1 %vm1758_vm0, %v5850_v0  ;;  %2244 = vmatpush1.bf16.msra.mxu0 %v4859_v60  ;;  %v4882_v60 = vld [vmem:[%s7086_s1 + $0x20c] ss:$16 sps:$4 sm:$0xff]  }
  0xa7   : > { %2357 = vmatpush1.bf16.msra.mxu1 %v4862_v61  ;;  %2245 = vmatprep.subr.bf16.mxu0 %v4867_v10  ;;  %v4877_v61 = vld [vmem:[%s7086_s1 + $0x8] ss:$16 sps:$4 sm:$0xff]   ;;  %v452_v10 = vld [vmem:[%s5420_s19 + $0x1e0] sm:$0xff]  ;;  %v4894_v58 = vld [vmem:[%s7086_s1 + $0x3cc] ss:$16 sps:$4 sm:$0xff]  }
  0xa8   : > { %2358 = vmatprep.subr.bf16.mxu1 %v4870_v12  ;;  %2071 = vmatprep.mubr.bf16.mxu0 %v5866_v17  ;;  %v459_v12 = vld [vmem:[%s5420_s19 + $0x218] sm:$0xff] }
  0xa9   : > { %2184 = vmatprep.mubr.bf16.mxu1 %v7099_v42 }
  0xaa   : > { %2246 = vmatpush1.bf16.msra.mxu0 %v4865_v13  ;;  %v454_v13 = vld [vmem:[%s5420_s19 + $0x1f0] sm:$0xff] }
  0xab   : > { %2359 = vmatpush1.bf16.msra.mxu1 %v4868_v14  ;;  %2247 = vmatprep.subr.bf16.mxu0 %v4873_v35  ;;  %v461_v14 = vld [vmem:[%s5420_s19 + $0x228] sm:$0xff]  ;;  %v5930_v35 = vpack.c.bf16 %v459_v12, %v452_v10  ;;  %v468_v12 = vld [vmem:[%s5420_s19 + $0x260] sm:$0xff] }
  0xac   : > { %2360 = vmatprep.subr.bf16.mxu1 %v4876_v37  ;;  %v5932_v37 = vpack.c.bf16 %v461_v14, %v454_v13  ;;  %v473_v10 = vld [vmem:[%s5420_s19 + $0x288] sm:$0xff]  ;;  %v475_v13 = vld [vmem:[%s5420_s19 + $0x298] sm:$0xff] }
  0xad   : > { %2072 = vmatmul.mubr.bf16.gmra.mxu0 %v5889_v43  ;;  %v4897_v14 = vld [vmem:[%s7086_s1 + $0x1ac] ss:$16 sps:$4 sm:$0xff]  }
  0xae   : > { %4367 = vmatmul.mubr.msk.bf16.gmra.mxu1 %vm1758_vm0, %v5891_v46  ;;  %2248 = vmatpush1.bf16.msra.mxu0 %v4871_v39  ;;  %v467_v39 = vld [vmem:[%s5420_s19 + $0x258] sm:$0xff] }
  0xaf   : > { %2361 = vmatpush1.bf16.msra.mxu1 %v4874_v41  ;;  %2249 = vmatprep.subr.bf16.mxu0 %v4879_v59  ;;  %v474_v41 = vld [vmem:[%s5420_s19 + $0x290] sm:$0xff]  ;;  %v4889_v59 = vld [vmem:[%s7086_s1 + $0x1c8] ss:$16 sps:$4 sm:$0xff]  }
  0xb0   : > { %2362 = vmatprep.subr.bf16.mxu1 %v4882_v60  ;;  %2081 = vmatprep.mubr.bf16.mxu0 %v5907_v7  ;;  %v4892_v60 = vld [vmem:[%s7086_s1 + $0x3c8] ss:$16 sps:$4 sm:$0xff]  }
  0xb1   : > { %2194 = vmatprep.mubr.bf16.mxu1 %v7099_v42 }
  0xb2   : > { %2250 = vmatpush1.bf16.msra.mxu0 %v4877_v61  ;;  %v5948_v61 = vpack.c.bf16 %v474_v41, %v467_v39  ;;  %v481_v39 = vld [vmem:[%s5420_s19 + $0x2c8] sm:$0xff]  ;;  %v488_v41 = vld [vmem:[%s5420_s19 + $0x300] sm:$0xff] }
  0xb3   : > { %2363 = vmatpush1.bf16.msra.mxu1 %v4880_v1  ;;  %2251 = vmatprep.subr.bf16.mxu0 %v4885_v20  ;;  %v466_v1 = vld [vmem:[%s5420_s19 + $0x250] sm:$0xff]  ;;  %v4900_v20 = vld [vmem:[%s7086_s1 + $0x3ac] ss:$16 sps:$4 sm:$0xff]  }
  0xb4   : > { %2364 = vmatprep.subr.bf16.mxu1 %v4888_v22  ;;  %v4895_v22 = vld [vmem:[%s7086_s1 + $0x1a8] ss:$16 sps:$4 sm:$0xff]  }
  0xb5   : > { %2082 = vmatmul.mubr.bf16.gmra.mxu0 %v5930_v35 }
  0xb6   : > { %4368 = vmatmul.mubr.msk.bf16.gmra.mxu1 %vm1758_vm0, %v5932_v37  ;;  %2252 = vmatpush2.bf16.msra.mxu0 %v4883_v30  ;;  %v5968_v30 = vpack.c.bf16 %v473_v10, %v466_v1  ;;  %v4906_v1 = vld [vmem:[%s7086_s1 + $0x38c] ss:$16 sps:$4 sm:$0xff]   ;;  %v5989_v10 = vpack.c.bf16 %v488_v41, %v481_v39 }
  0xb7   : > { %2365 = vmatpush2.bf16.msra.mxu1 %v4886_v32  ;;  %2253 = vmatprep.subr.bf16.mxu0 %v4891_v48  ;;  %v5970_v32 = vpack.c.bf16 %v475_v13, %v468_v12  ;;  %v4898_v48 = vld [vmem:[%s7086_s1 + $0x3a8] ss:$16 sps:$4 sm:$0xff]   ;;  %v480_v12 = vld [vmem:[%s5420_s19 + $0x2c0] sm:$0xff]  ;;  %v4909_v39 = vld [vmem:[%s7086_s1 + $0x16c] ss:$16 sps:$4 sm:$0xff]  }
  0xb8   : > { %2366 = vmatprep.subr.bf16.mxu1 %v4894_v58  ;;  %2091 = vmatprep.mubr.bf16.mxu0 %v5948_v61  ;;  %7117 = vst [vmem:[#allocation7_spill] sm:$0xff] %v5968_v30  ;;  %v4903_v58 = vld [vmem:[%s7086_s1 + $0x18c] ss:$16 sps:$4 sm:$0xff]   ;;  %7119 = vst [vmem:[#allocation9_spill] sm:$0xff] %v5989_v10 }
  0xb9   : > { %2204 = vmatprep.mubr.bf16.mxu1 %v7099_v42  ;;  %7118 = vst [vmem:[#allocation8_spill] sm:$0xff] %v5970_v32  ;;  %v487_v13 = vld [vmem:[%s5420_s19 + $0x2f8] sm:$0xff] }
  0xba   : > { %2254 = vmatpush2.bf16.msra.mxu0 %v4889_v59  ;;  %v4901_v59 = vld [vmem:[%s7086_s1 + $0x188] ss:$16 sps:$4 sm:$0xff]   ;;  %v4912_v41 = vld [vmem:[%s7086_s1 + $0x36c] ss:$16 sps:$4 sm:$0xff]  }
  0xbb   : > { %2367 = vmatpush2.bf16.msra.mxu1 %v4892_v60  ;;  %2255 = vmatprep.subr.bf16.mxu0 %v4897_v14  ;;  %v4904_v60 = vld [vmem:[%s7086_s1 + $0x388] ss:$16 sps:$4 sm:$0xff]   ;;  %v482_v14 = vld [vmem:[%s5420_s19 + $0x2d0] sm:$0xff] }
  0xbc   : > { %2368 = vmatprep.subr.bf16.mxu1 %v4900_v20  ;;  %v489_v20 = vld [vmem:[%s5420_s19 + $0x308] sm:$0xff] }
  0xbd   : > { %2092 = vmatmul.mubr.bf16.gmra.mxu0 %v5968_v30  ;;  %v4921_v30 = vld [vmem:[%s7086_s1 + $0x12c] ss:$16 sps:$4 sm:$0xff]  }
  0xbe   : > { %4369 = vmatmul.mubr.msk.bf16.gmra.mxu1 %vm1758_vm0, %v5970_v32  ;;  %2256 = vmatpush2.bf16.msra.mxu0 %v4895_v22  ;;  %v4907_v22 = vld [vmem:[%s7086_s1 + $0x168] ss:$16 sps:$4 sm:$0xff]   ;;  %v502_v32 = vld [vmem:[%s5420_s19 + $0x370] sm:$0xff] }
  0xbf   : > { %2369 = vmatpush2.bf16.msra.mxu1 %v4898_v48  ;;  %2257 = vmatprep.subr.bf16.mxu0 %v4903_v58  ;;  %v495_v48 = vld [vmem:[%s5420_s19 + $0x338] sm:$0xff]  ;;  %v6010_v58 = vpack.c.bf16 %v487_v13, %v480_v12 }
  0xc0   : > { %2370 = vmatprep.subr.bf16.mxu1 %v4906_v1  ;;  %2101 = vmatprep.mubr.bf16.mxu0 %v5989_v10  ;;  %v6012_v1 = vpack.c.bf16 %v489_v20, %v482_v14  ;;  %v4915_v10 = vld [vmem:[%s7086_s1 + $0x14c] ss:$16 sps:$4 sm:$0xff]   ;;  %v4913_v13 = vld [vmem:[%s7086_s1 + $0x148] ss:$16 sps:$4 sm:$0xff]   ;;  %v494_v14 = vld [vmem:[%s5420_s19 + $0x330] sm:$0xff] }
  0xc1   : > { %2214 = vmatprep.mubr.bf16.mxu1 %v7099_v42  ;;  %7120 = vst [vmem:[#allocation10_spill] sm:$0xff] %v6010_v58  ;;  %v4910_v42 = vld [vmem:[%s7086_s1 + $0x368] ss:$16 sps:$4 sm:$0xff]   ;;  %v4918_v12 = vld [vmem:[%s7086_s1 + $0x34c] ss:$16 sps:$4 sm:$0xff]  }
  0xc2   : > { %7121 = vst [vmem:[#allocation11_spill] sm:$0xff] %v6012_v1  ;;  %2258 = vmatpush2.bf16.msra.mxu0 %v4901_v59  ;;  %v4916_v59 = vld [vmem:[%s7086_s1 + $0x348] ss:$16 sps:$4 sm:$0xff]  }
  0xc3   : > { %2371 = vmatpush2.bf16.msra.mxu1 %v4904_v60  ;;  %2259 = vmatprep.subr.bf16.mxu0 %v4909_v39  ;;  %v6030_v60 = vpack.c.bf16 %v502_v32, %v495_v48  ;;  %v501_v20 = vld [vmem:[%s5420_s19 + $0x368] sm:$0xff]  ;;  %v496_v39 = vld [vmem:[%s5420_s19 + $0x340] sm:$0xff]  ;;  %v7123_v48 = vmov 0  }
  0xc4   : > { %2372 = vmatprep.subr.bf16.mxu1 %v4912_v41  ;;  %v503_v41 = vld [vmem:[%s5420_s19 + $0x378] sm:$0xff]  ;;  %s5110_s19 = scalar_lea.vmem %s7039_s14, 2048 }
  0xc5   : > { %7122 = vst [vmem:[#allocation12_spill] sm:$0xff] %v6030_v60  ;;  %2102 = vmatmul.mubr.bf16.gmra.mxu0 %v6010_v58  ;;  %v4924_v32 = vld [vmem:[%s7086_s1 + $0x32c] ss:$16 sps:$4 sm:$0xff]   ;;  %v4925_v58 = vld [vmem:[%s7086_s1 + $0x108] ss:$16 sps:$4 sm:$0xff]   ;;  %p5111_p11 = scmp.ne.s32.totalorder %s7039_s14, %s5110_s19  ;;  %p5118_p1 = scmp.lt.s32.totalorder %s5116_s26, %s5110_s19 }
  0xc6   : > { %4370 = vmatmul.mubr.msk.bf16.gmra.mxu1 %vm1758_vm0, %v6012_v1  ;;  %2260 = vmatpush2.bf16.msra.mxu0 %v4907_v22  ;;  %v4919_v1 = vld [vmem:[%s7086_s1 + $0x128] ss:$16 sps:$4 sm:$0xff]   ;;  %v6053_v22 = vpack.c.bf16 %v501_v20, %v494_v14 }
  0xc7   : > { %2373 = vmatpush2.bf16.msra.mxu1 %v4910_v42  ;;  %2261 = vmatprep.subr.bf16.mxu0 %v4915_v10  ;;  %v4922_v42 = vld [vmem:[%s7086_s1 + $0x328] ss:$16 sps:$4 sm:$0xff]   ;;  %v6055_v10 = vpack.c.bf16 %v503_v41, %v496_v39  ;;  %v6214_v39 = vld [vmem:[%s7087_s2] sm:$0xf]  ;;  %p5112_p12 = pnand %p5111_p11, %p5274_p5  ;;  %p5119_p2 = por %p5118_p1, %p5117_p0 }
  0xc8   : > { %2374 = vmatprep.subr.bf16.mxu1 %v4918_v12  ;;  %2111 = vmatprep.mubr.bf16.mxu0 %v6030_v60  ;;  %v4927_v12 = vld [vmem:[%s7086_s1 + $0x10c] ss:$16 sps:$4 sm:$0xff]   ;;  %v4928_v14 = vld [vmem:[%s7086_s1 + $0x308] ss:$16 sps:$4 sm:$0xff]   ;;  %7125 = vst [vmem:[#allocation14_spill] sm:$0xff] %v6214_v39 }
  0xc9   : > { %2224 = vmatprep.mubr.bf16.mxu1 %v7123_v48  ;;  %v4930_v60 = vld [vmem:[%s7086_s1 + $0x30c] ss:$16 sps:$4 sm:$0xff]   ;;  %v4934_v20 = vld [vmem:[%s7086_s1 + $0x608] ss:$16 sps:$4 sm:$0xff]   ;;  %p5113_p13 = pneg %p5112_p12 }
  0xca   : > { %2262 = vmatpush2.bf16.msra.mxu0 %v4913_v13  ;;  %v4936_v13 = vld [vmem:[%s7086_s1 + $0x60c] ss:$16 sps:$4 sm:$0xff]   ;;  %v4982_v41 = vld [vmem:[%s7088_s3 + $0x70] ss:$8 sps:$4 sm:$0xff]  }
  0xcb   : > { %2375 = vmatpush2.bf16.msra.mxu1 %v4916_v59  ;;  %2263 = vmatprep.subr.bf16.mxu0 %v4921_v30  ;;  %v4933_v30 = vld [vmem:[%s7086_s1 + $0x4ec] ss:$16 sps:$4 sm:$0xff]   ;;  %v4931_v59 = vld [vmem:[%s7086_s1 + $0x4e8] ss:$16 sps:$4 sm:$0xff]   ;;  %p5120_p3 = pnand %p5119_p2, %p5113_p13 }
  0xcc   : > { %2376 = vmatprep.subr.bf16.mxu1 %v4924_v32 }
  0xcd   : > { %2112 = vmatmul.mubr.bf16.gmra.mxu0 %v6053_v22 }
  0xce   : > { %4371 = vmatmul.mubr.msk.bf16.gmra.mxu1 %vm1758_vm0, %v6055_v10  ;;  %2264 = vmatpush2.bf16.msra.mxu0 %v4919_v1  ;;  %v4939_v1 = vld [vmem:[%s7086_s1 + $0x4cc] ss:$16 sps:$4 sm:$0xff]  }
  0xcf   : > { %2377 = vmatpush2.bf16.msra.mxu1 %v4922_v42  ;;  %2265 = vmatprep.subr.bf16.mxu0 %v4927_v12  ;;  %v4987_v42 = vld [vmem:[%s7088_s3 + $0x64] ss:$8 sps:$4 sm:$0xff]  }
  0xd0   : > { %2378 = vmatprep.subr.bf16.mxu1 %v4930_v60  ;;  %2267 = vmatprep.mubr.bf16.mxu0 %v5441_v53  ;;  %v4937_v53 = vld [vmem:[%s7086_s1 + $0x4c8] ss:$16 sps:$4 sm:$0xff]  }
  0xd1   : > { %2380 = vmatprep.mubr.bf16.mxu1 %v5443_v54  ;;  %v4942_v54 = vld [vmem:[%s7086_s1 + $0x4ac] ss:$16 sps:$4 sm:$0xff]  }
  0xd2   : > { %2266 = vmatpush2.bf16.msra.mxu0 %v4925_v58  ;;  %v4940_v58 = vld [vmem:[%s7086_s1 + $0x4a8] ss:$16 sps:$4 sm:$0xff]  }
  0xd3   : > { %2379 = vmatpush2.bf16.msra.mxu1 %v4928_v14  ;;  %2461 = vmatprep.subr.bf16.mxu0 %v4933_v30 }
  0xd4   : > { %2588 = vmatprep.subr.bf16.mxu1 %v4936_v13 }
  0xd5   : > { %2268 = vmatmul.mubr.bf16.vlgmr.msra.gmra.mxu0 %v5507_v15  ;;  %v4945_v15 = vld [vmem:[%s7086_s1 + $0x48c] ss:$16 sps:$4 sm:$0xff]  }
  0xd6   : > { %2381 = vmatmul.mubr.bf16.vlgmr.msra.gmra.mxu1 %v5509_v16  ;;  %2462 = vmatpush1.bf16.msra.mxu0 %v4931_v59  ;;  %v4943_v16 = vld [vmem:[%s7086_s1 + $0x488] ss:$16 sps:$4 sm:$0xff]  }
  0xd7   : > { %2589 = vmatpush1.bf16.msra.mxu1 %v4934_v20  ;;  %2463 = vmatprep.subr.bf16.mxu0 %v4939_v1  ;;  %v4985_v20 = vld [vmem:[%s7088_s3 + $0x60] ss:$8 sps:$4 sm:$0xff]  }
  0xd8   : > { %2277 = vmatprep.mubr.bf16.mxu0 %v5519_v21  ;;  %2390 = vmatprep.mubr.bf16.mxu1 %v5524_v23  ;;  %v4948_v21 = vld [vmem:[%s7086_s1 + $0x46c] ss:$16 sps:$4 sm:$0xff]   ;;  %v4946_v23 = vld [vmem:[%s7086_s1 + $0x468] ss:$16 sps:$4 sm:$0xff]  }
  0xda   : > { %2464 = vmatpush1.bf16.msra.mxu0 %v4937_v53 }
  0xdb   : > { %2465 = vmatprep.subr.bf16.mxu0 %v4942_v54 }
  0xdd   : > { %2278 = vmatmul.mubr.bf16.gmra.mxu0 %v5541_v33  ;;  %v4951_v33 = vld [vmem:[%s7086_s1 + $0x44c] ss:$16 sps:$4 sm:$0xff]  }
  0xde   : > { %2391 = vmatmul.mubr.bf16.gmra.mxu1 %v5543_v34  ;;  %2466 = vmatpush1.bf16.msra.mxu0 %v4940_v58  ;;  %v4949_v34 = vld [vmem:[%s7086_s1 + $0x448] ss:$16 sps:$4 sm:$0xff]  }
  0xdf   : > { %2287 = vmatprep.mubr.bf16.mxu0 %v5548_v36  ;;  %2467 = vmatprep.subr.bf16.mxu0 %v4945_v15  ;;  %v4954_v36 = vld [vmem:[%s7086_s1 + $0x42c] ss:$16 sps:$4 sm:$0xff]  }
  0xe0   : > { %2400 = vmatprep.mubr.bf16.mxu1 %v5553_v38  ;;  %v4952_v38 = vld [vmem:[%s7086_s1 + $0x428] ss:$16 sps:$4 sm:$0xff]  }
  0xe2   : > { %2468 = vmatpush1.bf16.msra.mxu0 %v4943_v16  ;;  %v4988_v16 = vld [vmem:[%s7088_s3 + $0x50] ss:$8 sps:$4 sm:$0xff]  }
  0xe3   : > { %2469 = vmatprep.subr.bf16.mxu0 %v4948_v21  ;;  %v4993_v21 = vld [vmem:[%s7088_s3 + $0x44] ss:$8 sps:$4 sm:$0xff]  }
  0xe5   : > { %2288 = vmatmul.mubr.bf16.gmra.mxu0 %v5573_v49  ;;  %v4957_v49 = vld [vmem:[%s7086_s1 + $0x40c] ss:$16 sps:$4 sm:$0xff]  }
  0xe6   : > { %2401 = vmatmul.mubr.bf16.gmra.mxu1 %v5575_v50  ;;  %2470 = vmatpush1.bf16.msra.mxu0 %v4946_v23  ;;  %v4955_v50 = vld [vmem:[%s7086_s1 + $0x408] ss:$16 sps:$4 sm:$0xff]  }
  0xe7   : > { %2297 = vmatprep.mubr.bf16.mxu0 %v5580_v52  ;;  %2471 = vmatprep.subr.bf16.mxu0 %v4951_v33  ;;  %v4960_v52 = vld [vmem:[%s7086_s1 + $0x5ec] ss:$16 sps:$4 sm:$0xff]  }
  0xe8   : > { %2410 = vmatprep.mubr.bf16.mxu1 %v5585_v56  ;;  %v4958_v56 = vld [vmem:[%s7086_s1 + $0x5e8] ss:$16 sps:$4 sm:$0xff]  }
  0xea   : > { %2472 = vmatpush1.bf16.msra.mxu0 %v4949_v34 }
  0xeb   : > { %2473 = vmatprep.subr.bf16.mxu0 %v4954_v36 }
  0xed   : > { %2298 = vmatmul.mubr.bf16.gmra.mxu0 %v5605_v3  ;;  %v4963_v3 = vld [vmem:[%s7086_s1 + $0x5cc] ss:$16 sps:$4 sm:$0xff]  }
  0xee   : > { %2411 = vmatmul.mubr.bf16.gmra.mxu1 %v5607_v4  ;;  %2474 = vmatpush1.bf16.msra.mxu0 %v4952_v38  ;;  %v4961_v4 = vld [vmem:[%s7086_s1 + $0x5c8] ss:$16 sps:$4 sm:$0xff]  }
  0xef   : > { %2307 = vmatprep.mubr.bf16.mxu0 %v5612_v6  ;;  %2475 = vmatprep.subr.bf16.mxu0 %v4957_v49  ;;  %v4966_v6 = vld [vmem:[%s7086_s1 + $0x5ac] ss:$16 sps:$4 sm:$0xff]   ;;  %v4991_v49 = vld [vmem:[%s7088_s3 + $0x40] ss:$8 sps:$4 sm:$0xff]  }
  0xf0   : > { %2420 = vmatprep.mubr.bf16.mxu1 %v5617_v8  ;;  %v4964_v8 = vld [vmem:[%s7086_s1 + $0x5a8] ss:$16 sps:$4 sm:$0xff]  }
  0xf2   : > { %2476 = vmatpush1.bf16.msra.mxu0 %v4955_v50 }
  0xf3   : > { %2477 = vmatprep.subr.bf16.mxu0 %v4960_v52 }
  0xf5   : > { %2308 = vmatmul.mubr.bf16.gmra.mxu0 %v5640_v24  ;;  %v4969_v24 = vld [vmem:[%s7086_s1 + $0x58c] ss:$16 sps:$4 sm:$0xff]  }
  0xf6   : > { %2421 = vmatmul.mubr.bf16.gmra.mxu1 %v5642_v25  ;;  %2478 = vmatpush2.bf16.msra.mxu0 %v4958_v56  ;;  %v4967_v25 = vld [vmem:[%s7086_s1 + $0x588] ss:$16 sps:$4 sm:$0xff]  }
  0xf7   : > { %2317 = vmatprep.mubr.bf16.mxu0 %v5647_v27  ;;  %2479 = vmatprep.subr.bf16.mxu0 %v4963_v3  ;;  %v4972_v27 = vld [vmem:[%s7086_s1 + $0x56c] ss:$16 sps:$4 sm:$0xff]  }
  0xf8   : > { %2430 = vmatprep.mubr.bf16.mxu1 %v5652_v29  ;;  %v4970_v29 = vld [vmem:[%s7086_s1 + $0x568] ss:$16 sps:$4 sm:$0xff]  }
  0xfa   : > { %2480 = vmatpush2.bf16.msra.mxu0 %v4961_v4 }
  0xfb   : > { %2481 = vmatprep.subr.bf16.mxu0 %v4966_v6  ;;  %v4994_v6 = vld [vmem:[%s7088_s3 + $0x30] ss:$8 sps:$4 sm:$0xff]  }
  0xfd   : > { %2318 = vmatmul.mubr.bf16.gmra.mxu0 %v5672_v44  ;;  %v4975_v44 = vld [vmem:[%s7086_s1 + $0x54c] ss:$16 sps:$4 sm:$0xff]  }
  0xfe   : > { %2431 = vmatmul.mubr.bf16.gmra.mxu1 %v5674_v45  ;;  %2482 = vmatpush2.bf16.msra.mxu0 %v4964_v8  ;;  %v4973_v45 = vld [vmem:[%s7086_s1 + $0x548] ss:$16 sps:$4 sm:$0xff]   ;;  %v5032_v8 = vld [vmem:[%s7088_s3 + $0x174] ss:$8 sps:$4 sm:$0xff]  }
  0xff   : > { %2327 = vmatprep.mubr.bf16.mxu0 %v5679_v47  ;;  %2483 = vmatprep.subr.bf16.mxu0 %v4969_v24  ;;  %v758_v47 = vlaneseq  ;;  %v4999_v24 = vld [vmem:[%s7088_s3 + $0x24] ss:$8 sps:$4 sm:$0xff]  }
 0x100   : > { %2440 = vmatprep.mubr.bf16.mxu1 %v5684_v51  ;;  %v4978_v51 = vld [vmem:[%s7086_s1 + $0x52c] ss:$16 sps:$4 sm:$0xff]   ;;  %3292 = vmatprep.subr.bf16.mxu1 %v5032_v8 }
 0x101   : > { %v5044_v8 = vld [vmem:[%s7088_s3 + $0x134] ss:$8 sps:$4 sm:$0xff]  }
 0x102   : > { %2484 = vmatpush2.bf16.msra.mxu0 %v4967_v25  ;;  %v5030_v25 = vld [vmem:[%s7088_s3 + $0x170] ss:$8 sps:$4 sm:$0xff]  }
 0x103   : > { %2485 = vmatprep.subr.bf16.mxu0 %v4972_v27 }
 0x105   : > { %2328 = vmatmul.mubr.bf16.gmra.mxu0 %v5704_v2  ;;  %v4976_v2 = vld [vmem:[%s7086_s1 + $0x528] ss:$16 sps:$4 sm:$0xff]  }
 0x106   : > { %2441 = vmatmul.mubr.bf16.gmra.mxu1 %v5706_v5  ;;  %2486 = vmatpush2.bf16.msra.mxu0 %v4970_v29  ;;  %v6198_v5 = vshrl.u32 %v758_v47, 7 }
 0x107   : > { %2337 = vmatprep.mubr.bf16.mxu0 %v5711_v9  ;;  %2487 = vmatprep.subr.bf16.mxu0 %v4975_v44  ;;  %v4981_v9 = vld [vmem:[%s7086_s1 + $0x50c] ss:$16 sps:$4 sm:$0xff]  }
 0x108   : > { %2450 = vmatprep.mubr.bf16.mxu1 %v5716_v11  ;;  %7124 = vst [vmem:[#allocation13_spill] sm:$0xff] %v6198_v5  ;;  %v4979_v11 = vld [vmem:[%s7086_s1 + $0x508] ss:$16 sps:$4 sm:$0xff]   ;;  %v7106_v60 = vsub.s32 0, %v6198_v5 }
 0x10a   : > { %2488 = vmatpush2.bf16.msra.mxu0 %v4973_v45 }
 0x10b   : > { %2489 = vmatprep.subr.bf16.mxu0 %v4978_v51  ;;  %v4997_v51 = vld [vmem:[%s7088_s3 + $0x20] ss:$8 sps:$4 sm:$0xff]  }
 0x10d   : > { %2338 = vmatmul.mubr.bf16.gmra.mxu0 %v5734_v26  ;;  %v4984_v26 = vld [vmem:[%s7088_s3 + $0x74] ss:$8 sps:$4 sm:$0xff]  }
 0x10e   : > { %2451 = vmatmul.mubr.bf16.gmra.mxu1 %v5736_v28  ;;  %2490 = vmatpush2.bf16.msra.mxu0 %v4976_v2  ;;  %v7107_v28 = vsub.s32 1, %v6198_v5 }
 0x10f   : > { %2493 = vmatprep.mubr.bf16.mxu0 %v5741_v31  ;;  %2491 = vmatprep.subr.bf16.mxu0 %v4981_v9  ;;  %v6223_v31 = vrot.slane %v6214_v39, %v7106_v60  ;;  %v5033_v9 = vld [vmem:[%s7088_s3 + $0x160] ss:$8 sps:$4 sm:$0xff]  }
 0x110   : > { %2606 = vmatprep.mubr.bf16.mxu1 %v7123_v48  ;;  %v6231_v32 = vrot.slane %v6214_v39, %v7107_v28 }
 0x112   : > { %2492 = vmatpush2.bf16.msra.mxu0 %v4979_v11 }
 0x113   : > { %3179 = vmatprep.subr.bf16.mxu0 %v4984_v26 }
 0x115   : > { %v1817_v12 = vpop.f32.mrf.mxu0  ;;  %2494 = vmatmul.mubr.bf16.vlgmr.msra.gmra.mxu0 %v5766_v55 }
 0x116   : > { %v1930_v14 = vpop.f32.mrf.mxu1  ;;  %4372 = vmatmul.mubr.msk.bf16.vlgmr.msra.gmra.mxu1 %vm1758_vm0, %v5768_v57  ;;  %v1818_v30 = vadd.f32 %v1817_v12, %v6223_v31  ;;  %2503 = vmatprep.mubr.bf16.mxu0 %v5781_v63  ;;  %v4990_v57 = vld [vmem:[%s7088_s3 + $0x54] ss:$8 sps:$4 sm:$0xff]  }
 0x117   : > { %2616 = vmatprep.mubr.bf16.mxu1 %v7123_v48  ;;  %v1819_v13 = vpop.f32.mrf.mxu0  ;;  %3180 = vmatpush1.bf16.msra.mxu0 %v4982_v41 }
 0x118   : > { %v1932_v59 = vpop.f32.mrf.mxu1  ;;  %v6245_v1 = vadd.f32 %v1930_v14, %v1818_v30  ;;  %v1820_v55 = vadd.f32 %v1819_v13, %v6231_v32  ;;  %3181 = vmatprep.subr.bf16.mxu0 %v4987_v42  ;;  %3293 = vmatpush1.bf16.msra.mxu1 %v5030_v25  ;;  %v5000_v14 = vld [vmem:[%s7088_s3 + $0x10] ss:$8 sps:$4 sm:$0xff]   ;;  %v5038_v30 = vld [vmem:[%s7088_s3 + $0x154] ss:$8 sps:$4 sm:$0xff]   ;;  %v5005_v13 = vld [vmem:[%s7088_s3 + $0x4] ss:$8 sps:$4 sm:$0xff]  }
 0x119   : > { %v6251_v53 = vpop.f32.mrf.mxu0  ;;  %v5042_v25 = vld [vmem:[%s7088_s3 + $0x130] ss:$8 sps:$4 sm:$0xff]  }
 0x11a   : > { %v6253_v63 = vpop.f32.mrf.mxu1  ;;  %v6255_v54 = vadd.f32 %v1932_v59, %v1820_v55  ;;  %v5036_v59 = vld [vmem:[%s7088_s3 + $0x150] ss:$8 sps:$4 sm:$0xff]  }
 0x11b   : > { %v6257_v58 = vpop.f32.mrf.mxu0  ;;  %3182 = vmatpush1.bf16.msra.mxu0 %v4985_v20 }
 0x11c   : > { %v6259_v15 = vpop.f32.mrf.mxu1  ;;  %3183 = vmatprep.subr.bf16.mxu0 %v4990_v57 }
 0x11d   : > { %v1827_v23 = vpop.f32.mrf.mxu0  ;;  %2504 = vmatmul.mubr.bf16.gmra.mxu0 %v5802_v18 }
 0x11e   : > { %v1940_v33 = vpop.f32.mrf.mxu1  ;;  %4373 = vmatmul.mubr.msk.bf16.gmra.mxu1 %vm1758_vm0, %v5804_v19  ;;  %v1828_v34 = vadd.f32 %v1827_v23, %v6223_v31  ;;  %2513 = vmatprep.mubr.bf16.mxu0 %v5825_v40  ;;  %v4996_v19 = vld [vmem:[%s7088_s3 + $0x34] ss:$8 sps:$4 sm:$0xff]   ;;  %v5003_v23 = vld [vmem:[%s7088_s3] ss:$8 sps:$4 sm:$0xff]  }
 0x11f   : > { %2626 = vmatprep.mubr.bf16.mxu1 %v7123_v48  ;;  %v1829_v36 = vpop.f32.mrf.mxu0  ;;  %3184 = vmatpush1.bf16.msra.mxu0 %v4988_v16 }
 0x120   : > { %v1942_v38 = vpop.f32.mrf.mxu1  ;;  %v6276_v50 = vadd.f32 %v1940_v33, %v1828_v34  ;;  %v1830_v18 = vadd.f32 %v1829_v36, %v6231_v32  ;;  %3185 = vmatprep.subr.bf16.mxu0 %v4993_v21  ;;  %v5039_v34 = vld [vmem:[%s7088_s3 + $0x140] ss:$8 sps:$4 sm:$0xff]  }
 0x121   : > { %v6282_v52 = vpop.f32.mrf.mxu0 }
 0x122   : > { %v6284_v40 = vpop.f32.mrf.mxu1  ;;  %v6286_v56 = vadd.f32 %v1942_v38, %v1830_v18 }
 0x123   : > { %v6288_v3 = vpop.f32.mrf.mxu0  ;;  %3186 = vmatpush1.bf16.msra.mxu0 %v4991_v49 }
 0x124   : > { %v6290_v4 = vpop.f32.mrf.mxu1  ;;  %3187 = vmatprep.subr.bf16.mxu0 %v4996_v19 }
 0x125   : > { %v1837_v27 = vpop.f32.mrf.mxu0  ;;  %2514 = vmatmul.mubr.bf16.gmra.mxu0 %v5848_v62  ;;  %v5035_v62 = vld [vmem:[%s7088_s3 + $0x164] ss:$8 sps:$4 sm:$0xff]  }
 0x126   : > { %v1950_v29 = vpop.f32.mrf.mxu1  ;;  %4374 = vmatmul.mubr.msk.bf16.gmra.mxu1 %vm1758_vm0, %v5850_v0  ;;  %v1838_v44 = vadd.f32 %v1837_v27, %v6223_v31  ;;  %2523 = vmatprep.mubr.bf16.mxu0 %v5866_v17  ;;  %v5002_v17 = vld [vmem:[%s7088_s3 + $0x14] ss:$8 sps:$4 sm:$0xff]  }
 0x127   : > { %2636 = vmatprep.mubr.bf16.mxu1 %v7123_v48  ;;  %v1839_v45 = vpop.f32.mrf.mxu0  ;;  %3188 = vmatpush1.bf16.msra.mxu0 %v4994_v6  ;;  %v5006_v6 = vld [vmem:[%s7088_s3 + $0xf0] ss:$8 sps:$4 sm:$0xff]  }
 0x128   : > { %v1952_v47 = vpop.f32.mrf.mxu1  ;;  %v6316_v2 = vadd.f32 %v1950_v29, %v1838_v44  ;;  %v1840_v0 = vadd.f32 %v1839_v45, %v6231_v32  ;;  %3189 = vmatprep.subr.bf16.mxu0 %v4999_v24  ;;  %3294 = vmatprep.subr.bf16.mxu1 %v5035_v62  ;;  %v5011_v24 = vld [vmem:[%s7088_s3 + $0xe4] ss:$8 sps:$4 sm:$0xff]  }
 0x129   : > { %v6325_v11 = vpop.f32.mrf.mxu0  ;;  %3295 = vmatpush1.bf16.msra.mxu1 %v5033_v9 }
 0x12a   : > { %v6327_v26 = vpop.f32.mrf.mxu1  ;;  %v6329_v41 = vadd.f32 %v1952_v47, %v1840_v0  ;;  %3296 = vmatprep.subr.bf16.mxu1 %v5038_v30  ;;  %v5045_v0 = vld [vmem:[%s7088_s3 + $0x120] ss:$8 sps:$4 sm:$0xff]  }
 0x12b   : > { %v6331_v42 = vpop.f32.mrf.mxu0  ;;  %3190 = vmatpush1.bf16.msra.mxu0 %v4997_v51  ;;  %v5009_v51 = vld [vmem:[%s7088_s3 + $0xe0] ss:$8 sps:$4 sm:$0xff]  }
 0x12c   : > { %v6333_v12 = vpop.f32.mrf.mxu1  ;;  %3191 = vmatprep.subr.bf16.mxu0 %v5002_v17 }
 0x12d   : > { %v1847_v20 = vpop.f32.mrf.mxu0  ;;  %2524 = vmatmul.mubr.bf16.gmra.mxu0 %v5889_v43  ;;  %v5041_v43 = vld [vmem:[%s7088_s3 + $0x144] ss:$8 sps:$4 sm:$0xff]   ;;  %3297 = vmatpush1.bf16.msra.mxu1 %v5036_v59  ;;  %v5012_v59 = vld [vmem:[%s7088_s3 + $0xd0] ss:$8 sps:$4 sm:$0xff]  }
 0x12e   : > { %v1960_v55 = vpop.f32.mrf.mxu1  ;;  %4375 = vmatmul.mubr.msk.bf16.gmra.mxu1 %vm1758_vm0, %v5891_v46  ;;  %v1848_v57 = vadd.f32 %v1847_v20, %v6223_v31  ;;  %2533 = vmatprep.mubr.bf16.mxu0 %v5907_v7  ;;  %v5008_v7 = vld [vmem:[%s7088_s3 + $0xf4] ss:$8 sps:$4 sm:$0xff]  }
 0x12f   : > { %2646 = vmatprep.mubr.bf16.mxu1 %v7123_v48  ;;  %v1849_v16 = vpop.f32.mrf.mxu0  ;;  %3192 = vmatpush1.bf16.msra.mxu0 %v5000_v14  ;;  %v5050_v20 = vld [vmem:[%s7088_s3 + $0x114] ss:$8 sps:$4 sm:$0xff]  }
 0x130   : > { %v1962_v21 = vpop.f32.mrf.mxu1  ;;  %v6359_v33 = vadd.f32 %v1960_v55, %v1848_v57  ;;  %v1850_v46 = vadd.f32 %v1849_v16, %v6231_v32  ;;  %3193 = vmatprep.subr.bf16.mxu0 %v5005_v13  ;;  %3298 = vmatprep.subr.bf16.mxu1 %v5041_v43  ;;  %v5017_v55 = vld [vmem:[%s7088_s3 + $0xc4] ss:$8 sps:$4 sm:$0xff]   ;;  %v5048_v57 = vld [vmem:[%s7088_s3 + $0x110] ss:$8 sps:$4 sm:$0xff]  }
 0x131   : > { %v6368_v36 = vpop.f32.mrf.mxu0  ;;  %3299 = vmatpush1.bf16.msra.mxu1 %v5039_v34  ;;  %v7127_v43 = vld [vmem:[#allocation8_spill] sm:$0xff] }
 0x132   : > { %v6370_v38 = vpop.f32.mrf.mxu1  ;;  %v6372_v49 = vadd.f32 %v1962_v21, %v1850_v46  ;;  %3300 = vmatprep.subr.bf16.mxu1 %v5044_v8  ;;  %v5015_v8 = vld [vmem:[%s7088_s3 + $0xc0] ss:$8 sps:$4 sm:$0xff]  }
 0x133   : > { %v6374_v18 = vpop.f32.mrf.mxu0  ;;  %3194 = vmatpush1.bf16.msra.mxu0 %v5003_v23  ;;  %v7126_v23 = vld [vmem:[#allocation7_spill] sm:$0xff] }
 0x134   : > { %v6376_v19 = vpop.f32.mrf.mxu1  ;;  %3195 = vmatprep.subr.bf16.mxu0 %v5008_v7  ;;  %v7128_v7 = vld [vmem:[#allocation9_spill] sm:$0xff] }
 0x135   : > { %v1857_v27 = vpop.f32.mrf.mxu0  ;;  %2534 = vmatmul.mubr.bf16.gmra.mxu0 %v5930_v35  ;;  %v5047_v35 = vld [vmem:[%s7088_s3 + $0x124] ss:$8 sps:$4 sm:$0xff]   ;;  %3301 = vmatpush1.bf16.msra.mxu1 %v5042_v25 }
 0x136   : > { %v1970_v29 = vpop.f32.mrf.mxu1  ;;  %4376 = vmatmul.mubr.msk.bf16.gmra.mxu1 %vm1758_vm0, %v5932_v37  ;;  %v1858_v44 = vadd.f32 %v1857_v27, %v6223_v31  ;;  %2543 = vmatprep.mubr.bf16.mxu0 %v5948_v61  ;;  %v5014_v61 = vld [vmem:[%s7088_s3 + $0xd4] ss:$8 sps:$4 sm:$0xff]  }
 0x137   : > { %2656 = vmatprep.mubr.bf16.mxu1 %v7123_v48  ;;  %v1859_v45 = vpop.f32.mrf.mxu0  ;;  %3196 = vmatpush2.bf16.msra.mxu0 %v5006_v6 }
 0x138   : > { %v1972_v47 = vpop.f32.mrf.mxu1  ;;  %v6402_v62 = vadd.f32 %v1970_v29, %v1858_v44  ;;  %v1860_v37 = vadd.f32 %v1859_v45, %v6231_v32  ;;  %3197 = vmatprep.subr.bf16.mxu0 %v5011_v24  ;;  %3302 = vmatprep.subr.bf16.mxu1 %v5047_v35  ;;  %v5053_v24 = vld [vmem:[%s7088_s3 + $0x104] ss:$8 sps:$4 sm:$0xff]   ;;  %v5020_v29 = vld [vmem:[%s7088_s3 + $0xb4] ss:$8 sps:$4 sm:$0xff]   ;;  %v5051_v44 = vld [vmem:[%s7088_s3 + $0x100] ss:$8 sps:$4 sm:$0xff]  }
 0x139   : > { %v6411_v17 = vpop.f32.mrf.mxu0  ;;  %3303 = vmatpush1.bf16.msra.mxu1 %v5045_v0  ;;  %v5056_v0 = vld [vmem:[%s7088_s3 + $0x1f4] ss:$8 sps:$4 sm:$0xff]  }
 0x13a   : > { %v6413_v9 = vpop.f32.mrf.mxu1  ;;  %v6415_v14 = vadd.f32 %v1972_v47, %v1860_v37  ;;  %3304 = vmatprep.subr.bf16.mxu1 %v5050_v20  ;;  %v5054_v20 = vld [vmem:[%s7088_s3 + $0x1f0] ss:$8 sps:$4 sm:$0xff]  }
 0x13b   : > { %v6417_v30 = vpop.f32.mrf.mxu0  ;;  %3198 = vmatpush2.bf16.msra.mxu0 %v5009_v51 }
 0x13c   : > { %v6419_v13 = vpop.f32.mrf.mxu1  ;;  %3199 = vmatprep.subr.bf16.mxu0 %v5014_v61  ;;  %v5018_v61 = vld [vmem:[%s7088_s3 + $0xb0] ss:$8 sps:$4 sm:$0xff]  }
 0x13d   : > { %v1867_v16 = vpop.f32.mrf.mxu0  ;;  %2544 = vmatmul.mubr.bf16.gmra.mxu0 %v7126_v23  ;;  %3305 = vmatpush1.bf16.msra.mxu1 %v5048_v57 }
 0x13e   : > { %v1980_v21 = vpop.f32.mrf.mxu1  ;;  %4377 = vmatmul.mubr.msk.bf16.gmra.mxu1 %vm1758_vm0, %v7127_v43  ;;  %v1868_v46 = vadd.f32 %v1867_v16, %v6223_v31  ;;  %2553 = vmatprep.mubr.bf16.mxu0 %v7128_v7  ;;  %v7129_v16 = vld [vmem:[#allocation10_spill] sm:$0xff]  ;;  %v7131_v43 = vld [vmem:[#allocation12_spill] sm:$0xff] }
 0x13f   : > { %2666 = vmatprep.mubr.bf16.mxu1 %v7123_v48  ;;  %v1869_v34 = vpop.f32.mrf.mxu0  ;;  %3200 = vmatpush2.bf16.msra.mxu0 %v5012_v59  ;;  %v5023_v59 = vld [vmem:[%s7088_s3 + $0xa4] ss:$8 sps:$4 sm:$0xff]  }
 0x140   : > { %v1982_v6 = vpop.f32.mrf.mxu1  ;;  %v6445_v25 = vadd.f32 %v1980_v21, %v1868_v46  ;;  %v1870_v27 = vadd.f32 %v1869_v34, %v6231_v32  ;;  %3201 = vmatprep.subr.bf16.mxu0 %v5017_v55  ;;  %3306 = vmatprep.subr.bf16.mxu1 %v5053_v24  ;;  %v7130_v21 = vld [vmem:[#allocation11_spill] sm:$0xff] }
 0x141   : > { %v6454_v45 = vpop.f32.mrf.mxu0  ;;  %3307 = vmatpush1.bf16.msra.mxu1 %v5051_v44  ;;  %v5021_v34 = vld [vmem:[%s7088_s3 + $0xa0] ss:$8 sps:$4 sm:$0xff]  }
 0x142   : > { %v6456_v47 = vpop.f32.mrf.mxu1  ;;  %v6458_v51 = vadd.f32 %v1982_v6, %v1870_v27  ;;  %3308 = vmatprep.subr.bf16.mxu1 %v5056_v0  ;;  %v5059_v6 = vld [vmem:[%s7088_s3 + $0x1e4] ss:$8 sps:$4 sm:$0xff]   ;;  %v5057_v27 = vld [vmem:[%s7088_s3 + $0x1e0] ss:$8 sps:$4 sm:$0xff]  }
 0x143   : > { %v6460_v35 = vpop.f32.mrf.mxu0  ;;  %3202 = vmatpush2.bf16.msra.mxu0 %v5015_v8 }
 0x144   : > { %v6462_v37 = vpop.f32.mrf.mxu1  ;;  %3203 = vmatprep.subr.bf16.mxu0 %v5020_v29 }
 0x145   : > { %v1877_v55 = vpop.f32.mrf.mxu0  ;;  %2554 = vmatmul.mubr.bf16.gmra.mxu0 %v7129_v16  ;;  %3309 = vmatpush2.bf16.msra.mxu1 %v5054_v20  ;;  %v5062_v20 = vld [vmem:[%s7088_s3 + $0x1d4] ss:$8 sps:$4 sm:$0xff]   ;;  %v5060_v16 = vld [vmem:[%s7088_s3 + $0x1d0] ss:$8 sps:$4 sm:$0xff]  }
 0x146   : > { %v1990_v57 = vpop.f32.mrf.mxu1  ;;  %4378 = vmatmul.mubr.msk.bf16.gmra.mxu1 %vm1758_vm0, %v7130_v21  ;;  %v1878_v23 = vadd.f32 %v1877_v55, %v6223_v31  ;;  %2563 = vmatprep.mubr.bf16.mxu0 %v7131_v43 }
 0x147   : > { %2676 = vmatprep.mubr.bf16.mxu1 %v7123_v48  ;;  %v1879_v46 = vpop.f32.mrf.mxu0  ;;  %3204 = vmatpush2.bf16.msra.mxu0 %v5018_v61  ;;  %v5026_v48 = vld [vmem:[%s7088_s3 + $0x94] ss:$8 sps:$4 sm:$0xff]  }
 0x148   : > { %v1992_v7 = vpop.f32.mrf.mxu1  ;;  %v6488_v8 = vadd.f32 %v1990_v57, %v1878_v23  ;;  %v1880_v24 = vadd.f32 %v1879_v46, %v6231_v32  ;;  %3205 = vmatprep.subr.bf16.mxu0 %v5023_v59  ;;  %3310 = vmatprep.subr.bf16.mxu1 %v5059_v6  ;;  %v5024_v59 = vld [vmem:[%s7088_s3 + $0x90] ss:$8 sps:$4 sm:$0xff]   ;;  %v5029_v57 = vld [vmem:[%s7088_s3 + $0x84] ss:$8 sps:$4 sm:$0xff]  }
 0x149   : > { %v6497_v29 = vpop.f32.mrf.mxu0  ;;  %3311 = vmatpush2.bf16.msra.mxu1 %v5057_v27  ;;  %v5065_v6 = vld [vmem:[%s7088_s3 + $0x1c4] ss:$8 sps:$4 sm:$0xff]  }
 0x14a   : > { %v6499_v44 = vpop.f32.mrf.mxu1  ;;  %v6501_v61 = vadd.f32 %v1992_v7, %v1880_v24  ;;  %3312 = vmatprep.subr.bf16.mxu1 %v5062_v20 }
 0x14b   : > { %v6503_v0 = vpop.f32.mrf.mxu0  ;;  %3206 = vmatpush2.bf16.msra.mxu0 %v5021_v34  ;;  %v5027_v34 = vld [vmem:[%s7088_s3 + $0x80] ss:$8 sps:$4 sm:$0xff]  }
 0x14c   : > { %v6505_v55 = vpop.f32.mrf.mxu1  ;;  %3207 = vmatprep.subr.bf16.mxu0 %v5026_v48 }
 0x14d   : > { %v1887_v21 = vpop.f32.mrf.mxu0  ;;  %2564 = vmatmul.mubr.bf16.gmra.mxu0 %v6053_v22  ;;  %3313 = vmatpush2.bf16.msra.mxu1 %v5060_v16  ;;  %v1822_v16 = vadd.f32 %v6251_v53, %v6223_v31 }
 0x14e   : > { %v2000_v23 = vpop.f32.mrf.mxu1  ;;  %4379 = vmatmul.mubr.msk.bf16.gmra.mxu1 %vm1758_vm0, %v6055_v10  ;;  %v1888_v43 = vadd.f32 %v1887_v21, %v6223_v31  ;;  %v5063_v10 = vld [vmem:[%s7088_s3 + $0x1c0] ss:$8 sps:$4 sm:$0xff]   ;;  %3314 = vmatprep.subr.bf16.mxu1 %v5065_v6 }
 0x14f   : > { %v1889_v46 = vpop.f32.mrf.mxu0  ;;  %3208 = vmatpush2.bf16.msra.mxu0 %v5024_v59  ;;  %v1935_v60 = vadd.f32 %v6253_v63, %v1822_v16  ;;  %v5074_v63 = vld [vmem:[%s7088_s3 + $0x194] ss:$8 sps:$4 sm:$0xff]  }
 0x150   : > { %v2002_v7 = vpop.f32.mrf.mxu1  ;;  %v6529_v24 = vadd.f32 %v2000_v23, %v1888_v43  ;;  %v1890_v22 = vadd.f32 %v1889_v46, %v6231_v32  ;;  %3209 = vmatprep.subr.bf16.mxu0 %v5029_v57  ;;  %v5068_v57 = vld [vmem:[%s7088_s3 + $0x1b4] ss:$8 sps:$4 sm:$0xff]   ;;  %v5066_v23 = vld [vmem:[%s7088_s3 + $0x1b0] ss:$8 sps:$4 sm:$0xff]  }
 0x151   : > { %v6535_v48 = vpop.f32.mrf.mxu0  ;;  %3315 = vmatpush2.bf16.msra.mxu1 %v5063_v10  ;;  %v5069_v10 = vld [vmem:[%s7088_s3 + $0x1a0] ss:$8 sps:$4 sm:$0xff]  }
 0x152   : > { %7132 = vst [vmem:[#allocation7_spill] sm:$0xff] %v6529_v24  ;;  %v6537_v27 = vpop.f32.mrf.mxu1  ;;  %v6539_v59 = vadd.f32 %v2002_v7, %v1890_v22  ;;  %3316 = vmatprep.subr.bf16.mxu1 %v5068_v57  ;;  %v1824_v7 = vadd.f32 %v6257_v58, %v6231_v32  ;;  %v5071_v22 = vld [vmem:[%s7088_s3 + $0x1a4] ss:$8 sps:$4 sm:$0xff]  }
 0x153   : > { %7133 = vst [vmem:[#allocation8_spill] sm:$0xff] %v6537_v27  ;;  %v6541_v20 = vpop.f32.mrf.mxu0  ;;  %3210 = vmatpush2.bf16.msra.mxu0 %v5027_v34 }
 0x154   : > { %7134 = vst [vmem:[#allocation9_spill] sm:$0xff] %v6539_v59  ;;  %v6543_v21 = vpop.f32.mrf.mxu1  ;;  %v1937_v58 = vadd.f32 %v6259_v15, %v1824_v7 }
 0x155   : > { %7135 = vst [vmem:[#allocation10_spill] sm:$0xff] %v6543_v21  ;;  %v2043_v43 = vpop.f32.mrf.mxu0  ;;  %3317 = vmatpush2.bf16.msra.mxu1 %v5066_v23 }
 0x156   : > { %v2156_v46 = vpop.f32.mrf.mxu1  ;;  %v2044_v57 = vadd.f32 %v2043_v43, %v6245_v1  ;;  %3318 = vmatprep.subr.bf16.mxu1 %v5071_v22  ;;  %v5072_v1 = vld [vmem:[%s7088_s3 + $0x190] ss:$8 sps:$4 sm:$0xff]  }
 0x157   : > { %v2045_v6 = vpop.f32.mrf.mxu0 }
 0x158   : > { %v2158_v34 = vpop.f32.mrf.mxu1  ;;  %v2046_v53 = vadd.f32 %v2045_v6, %v6255_v54  ;;  %v1832_v54 = vadd.f32 %v6282_v52, %v6223_v31  ;;  %v2157_v43 = vadd.f32 %v2156_v46, %v2044_v57 }
 0x159   : > { %v2047_v28 = vpop.f32.mrf.mxu0  ;;  %3319 = vmatpush2.bf16.msra.mxu1 %v5069_v10 }
 0x15a   : > { %v2160_v39 = vpop.f32.mrf.mxu1  ;;  %v2048_v21 = vadd.f32 %v2047_v28, %v1935_v60  ;;  %v2159_v16 = vadd.f32 %v2158_v34, %v2046_v53  ;;  %3320 = vmatprep.subr.bf16.mxu1 %v5074_v63  ;;  %v1834_v28 = vadd.f32 %v6288_v3, %v6231_v32  ;;  %v1945_v52 = vadd.f32 %v6284_v40, %v1832_v54  ;;  %v5075_v34 = vld [vmem:[%s7088_s3 + $0x180] ss:$8 sps:$4 sm:$0xff]  }
 0x15b   : > { %v2049_v24 = vpop.f32.mrf.mxu0  ;;  %v2687_v3 = vmax.f32 %v2157_v43, 0.0  ;;  %v1842_v40 = vadd.f32 %v6325_v11, %v6223_v31 }
 0x15c   : > { %v2162_v59 = vpop.f32.mrf.mxu1  ;;  %v2161_v23 = vadd.f32 %v2160_v39, %v2048_v21  ;;  %v2050_v6 = vadd.f32 %v2049_v24, %v1937_v58  ;;  %v5077_v39 = vld [vmem:[%s7088_s3 + $0x184] ss:$8 sps:$4 sm:$0xff]   ;;  %v2688_v24 = vmax.f32 %v2159_v16, 0.0  ;;  %v1947_v57 = vadd.f32 %v6290_v4, %v1834_v28 }
 0x15d   : > { %v2053_v15 = vpop.f32.mrf.mxu0  ;;  %3321 = vmatpush2.bf16.msra.mxu1 %v5072_v1  ;;  %v1844_v4 = vadd.f32 %v6331_v42, %v6231_v32  ;;  %v1955_v11 = vadd.f32 %v6327_v26, %v1842_v40 }
 0x15e   : > { %v2166_v60 = vpop.f32.mrf.mxu1  ;;  %v2163_v7 = vadd.f32 %v2162_v59, %v2050_v6  ;;  %v2691_v22 = vmax.f32 %v2161_v23, 0.0  ;;  %v2054_v59 = vadd.f32 %v2053_v15, %v6276_v50  ;;  %3322 = vmatprep.subr.bf16.mxu1 %v5077_v39 }
 0x15f   : > { %v2055_v27 = vpop.f32.mrf.mxu0 }
 0x160   : > { %v2168_v5 = vpop.f32.mrf.mxu1  ;;  %v2692_v21 = vmax.f32 %v2163_v7, 0.0  ;;  %v2056_v46 = vadd.f32 %v2055_v27, %v6286_v56  ;;  %v2751_v54 = vpack.c.bf16 %v2691_v22, %v2687_v3  ;;  %v2167_v1 = vadd.f32 %v2166_v60, %v2054_v59 }
 0x161   : > { %v2057_v53 = vpop.f32.mrf.mxu0  ;;  %3323 = vmatpush2.bf16.msra.mxu1 %v5075_v34  ;;  %v1957_v34 = vadd.f32 %v6333_v12, %v1844_v4 }
 0x162   : > { %v2170_v10 = vpop.f32.mrf.mxu1  ;;  %v2058_v58 = vadd.f32 %v2057_v53, %v1945_v52  ;;  %v2752_v63 = vpack.c.bf16 %v2692_v21, %v2688_v24  ;;  %v2169_v16 = vadd.f32 %v2168_v5, %v2056_v46  ;;  %v2695_v24 = vmax.f32 %v2167_v1, 0.0 }
 0x163   : > { %v2059_v56 = vpop.f32.mrf.mxu0 }
 0x164   : > { %v2172_v27 = vpop.f32.mrf.mxu1  ;;  %v2171_v23 = vadd.f32 %v2170_v10, %v2058_v58  ;;  %v2060_v6 = vadd.f32 %v2059_v56, %v1947_v57  ;;  %3211 = vmatprep.mubr.bf16.mxu0 %v2752_v63  ;;  %v2696_v22 = vmax.f32 %v2169_v16, 0.0  ;;  %v1852_v57 = vadd.f32 %v6368_v36, %v6223_v31 }
 0x165   : > { %v2063_v50 = vpop.f32.mrf.mxu0  ;;  %3212 = vmatmul.mubr.bf16.vlgmr.msra.gmra.mxu0 %v2751_v54 }
 0x166   : > { %v2176_v43 = vpop.f32.mrf.mxu1  ;;  %v2173_v15 = vadd.f32 %v2172_v27, %v2060_v6  ;;  %v2699_v28 = vmax.f32 %v2171_v23, 0.0  ;;  %v2064_v21 = vadd.f32 %v2063_v50, %v6316_v2  ;;  %v1854_v2 = vadd.f32 %v6374_v18, %v6231_v32 }
 0x167   : > { %v2065_v7 = vpop.f32.mrf.mxu0  ;;  %v1965_v23 = vadd.f32 %v6370_v38, %v1852_v57 }
 0x168   : > { %v2178_v39 = vpop.f32.mrf.mxu1  ;;  %v2700_v52 = vmax.f32 %v2173_v15, 0.0  ;;  %v2066_v5 = vadd.f32 %v2065_v7, %v6329_v41  ;;  %v2755_v42 = vpack.c.bf16 %v2699_v28, %v2695_v24  ;;  %v2177_v41 = vadd.f32 %v2176_v43, %v2064_v21 }
 0x169   : > { %v2067_v60 = vpop.f32.mrf.mxu0  ;;  %v1967_v28 = vadd.f32 %v6376_v19, %v1854_v2 }
 0x16a   : > { %v2180_v46 = vpop.f32.mrf.mxu1  ;;  %v2068_v3 = vadd.f32 %v2067_v60, %v1955_v11  ;;  %v2756_v59 = vpack.c.bf16 %v2700_v52, %v2696_v22  ;;  %v2179_v26 = vadd.f32 %v2178_v39, %v2066_v5  ;;  %v2703_v50 = vmax.f32 %v2177_v41, 0.0 }
 0x16b   : > { %v2069_v53 = vpop.f32.mrf.mxu0  ;;  %v1862_v52 = vadd.f32 %v6411_v17, %v6223_v31 }
 0x16c   : > { %v2182_v10 = vpop.f32.mrf.mxu1  ;;  %v2181_v58 = vadd.f32 %v2180_v46, %v2068_v3  ;;  %v2070_v63 = vadd.f32 %v2069_v53, %v1957_v34  ;;  %3221 = vmatprep.mubr.bf16.mxu0 %v2756_v59  ;;  %v2704_v6 = vmax.f32 %v2179_v26, 0.0 }
 0x16d   : > { %v2073_v40 = vpop.f32.mrf.mxu0  ;;  %3222 = vmatmul.mubr.bf16.gmra.mxu0 %v2755_v42  ;;  %v1975_v59 = vadd.f32 %v6413_v9, %v1862_v52 }
 0x16e   : > { %v2186_v54 = vpop.f32.mrf.mxu1  ;;  %v2183_v12 = vadd.f32 %v2182_v10, %v2070_v63  ;;  %v2707_v56 = vmax.f32 %v2181_v58, 0.0  ;;  %v2074_v4 = vadd.f32 %v2073_v40, %v6359_v33  ;;  %v1864_v33 = vadd.f32 %v6417_v30, %v6231_v32 }
 0x16f   : > { %v2075_v27 = vpop.f32.mrf.mxu0 }
 0x170   : > { %v2188_v16 = vpop.f32.mrf.mxu1  ;;  %v2708_v1 = vmax.f32 %v2183_v12, 0.0  ;;  %v2076_v36 = vadd.f32 %v2075_v27, %v6372_v49  ;;  %v2759_v18 = vpack.c.bf16 %v2707_v56, %v2703_v50  ;;  %v2187_v49 = vadd.f32 %v2186_v54, %v2074_v4 }
 0x171   : > { %v2077_v43 = vpop.f32.mrf.mxu0  ;;  %v1977_v63 = vadd.f32 %v6419_v13, %v1864_v33  ;;  %v1872_v12 = vadd.f32 %v6454_v45, %v6223_v31 }
 0x172   : > { %v2190_v15 = vpop.f32.mrf.mxu1  ;;  %v2078_v7 = vadd.f32 %v2077_v43, %v1965_v23  ;;  %v2760_v39 = vpack.c.bf16 %v2708_v1, %v2704_v6  ;;  %v2189_v38 = vadd.f32 %v2188_v16, %v2076_v36  ;;  %v2711_v10 = vmax.f32 %v2187_v49, 0.0 }
 0x173   : > { %v2079_v11 = vpop.f32.mrf.mxu0  ;;  %v1985_v50 = vadd.f32 %v6456_v47, %v1872_v12 }
 0x174   : > { %v2192_v22 = vpop.f32.mrf.mxu1  ;;  %v2191_v5 = vadd.f32 %v2190_v15, %v2078_v7  ;;  %v2080_v24 = vadd.f32 %v2079_v11, %v1967_v28  ;;  %3231 = vmatprep.mubr.bf16.mxu0 %v2760_v39  ;;  %v2712_v42 = vmax.f32 %v2189_v38, 0.0 }
 0x175   : > { %v2083_v21 = vpop.f32.mrf.mxu0  ;;  %3232 = vmatmul.mubr.bf16.gmra.mxu0 %v2759_v18 }
 0x176   : > { %v2196_v60 = vpop.f32.mrf.mxu1  ;;  %v2193_v19 = vadd.f32 %v2192_v22, %v2080_v24  ;;  %v2715_v46 = vmax.f32 %v2191_v5, 0.0  ;;  %v2084_v57 = vadd.f32 %v2083_v21, %v6402_v62  ;;  %v1874_v62 = vadd.f32 %v6460_v35, %v6231_v32 }
 0x177   : > { %v2085_v34 = vpop.f32.mrf.mxu0  ;;  %v1882_v5 = vadd.f32 %v6497_v29, %v6223_v31 }
 0x178   : > { %v2198_v3 = vpop.f32.mrf.mxu1  ;;  %v2716_v53 = vmax.f32 %v2193_v19, 0.0  ;;  %v2086_v17 = vadd.f32 %v2085_v34, %v6415_v14  ;;  %v2763_v30 = vpack.c.bf16 %v2715_v46, %v2711_v10  ;;  %v2197_v14 = vadd.f32 %v2196_v60, %v2084_v57 }
 0x179   : > { %v2087_v26 = vpop.f32.mrf.mxu0  ;;  %v1987_v18 = vadd.f32 %v6462_v37, %v1874_v62  ;;  %v1995_v34 = vadd.f32 %v6499_v44, %v1882_v5 }
 0x17a   : > { %v2200_v58 = vpop.f32.mrf.mxu1  ;;  %v2088_v41 = vadd.f32 %v2087_v26, %v1975_v59  ;;  %v2764_v40 = vpack.c.bf16 %v2716_v53, %v2712_v42  ;;  %v2199_v9 = vadd.f32 %v2198_v3, %v2086_v17  ;;  %v2719_v15 = vmax.f32 %v2197_v14, 0.0 }
 0x17b   : > { %v2089_v54 = vpop.f32.mrf.mxu0 }
 0x17c   : > { %v2202_v2 = vpop.f32.mrf.mxu1  ;;  %v2201_v56 = vadd.f32 %v2200_v58, %v2088_v41  ;;  %v2090_v27 = vadd.f32 %v2089_v54, %v1977_v63  ;;  %3241 = vmatprep.mubr.bf16.mxu0 %v2764_v40  ;;  %v2720_v4 = vmax.f32 %v2199_v9, 0.0  ;;  %v1892_v40 = vadd.f32 %v6535_v48, %v6223_v31  ;;  %v7136_v9 = vld [vmem:[#allocation13_spill] sm:$0xff]  ;;  %v7137_v31 = vld [vmem:[#allocation8_spill] sm:$0xff] }
 0x17d   : > { %v2093_v16 = vpop.f32.mrf.mxu0  ;;  %3242 = vmatmul.mubr.bf16.gmra.mxu0 %v2763_v30 }
 0x17e   : > { %v2206_v23 = vpop.f32.mrf.mxu1  ;;  %v2203_v13 = vadd.f32 %v2202_v2, %v2090_v27  ;;  %v2723_v6 = vmax.f32 %v2201_v56, 0.0  ;;  %v2094_v28 = vadd.f32 %v2093_v16, %v6445_v25  ;;  %v1884_v25 = vadd.f32 %v6503_v0, %v6231_v32 }
 0x17f   : > { %v2095_v1 = vpop.f32.mrf.mxu0  ;;  %v768_v56 = vsub.s32 2, %v7136_v9  ;;  %v2005_v48 = vadd.f32 %v7137_v31, %v1892_v40 }
 0x180   : > { %v2208_v36 = vpop.f32.mrf.mxu1  ;;  %v2724_v43 = vmax.f32 %v2203_v13, 0.0  ;;  %v2096_v45 = vadd.f32 %v2095_v1, %v6458_v51  ;;  %v2767_v35 = vpack.c.bf16 %v2723_v6, %v2719_v15  ;;  %v2207_v51 = vadd.f32 %v2206_v23, %v2094_v28  ;;  %v7138_v6 = vld [vmem:[#allocation9_spill] sm:$0xff] }
 0x181   : > { %v2097_v7 = vpop.f32.mrf.mxu0  ;;  %v1997_v57 = vadd.f32 %v6505_v55, %v1884_v25  ;;  %v772_v23 = vsub.s32 3, %v7136_v9 }
 0x182   : > { %v2210_v39 = vpop.f32.mrf.mxu1  ;;  %v2098_v11 = vadd.f32 %v2097_v7, %v1985_v50  ;;  %v2768_v22 = vpack.c.bf16 %v2724_v43, %v2720_v4  ;;  %v2209_v47 = vadd.f32 %v2208_v36, %v2096_v45  ;;  %v2727_v42 = vmax.f32 %v2207_v51, 0.0  ;;  %v7139_v50 = vld [vmem:[#allocation7_spill] sm:$0xff]  ;;  %v7141_v7 = vld [vmem:[#allocation14_spill] sm:$0xff] }
 0x183   : > { %v2099_v52 = vpop.f32.mrf.mxu0  ;;  %v6639_v5 = vrot.slane %v7141_v7, %v772_v23 }
 0x184   : > { %v2212_v38 = vpop.f32.mrf.mxu1  ;;  %v2211_v24 = vadd.f32 %v2210_v39, %v2098_v11  ;;  %v2100_v49 = vadd.f32 %v2099_v52, %v1987_v18  ;;  %3251 = vmatprep.mubr.bf16.mxu0 %v2768_v22  ;;  %v2728_v3 = vmax.f32 %v2209_v47, 0.0  ;;  %v6636_v39 = vrot.slane %v7141_v7, %v768_v56 }
 0x185   : > { %v2103_v21 = vpop.f32.mrf.mxu0  ;;  %3252 = vmatmul.mubr.bf16.gmra.mxu0 %v2767_v35 }
 0x186   : > { %v2216_v60 = vpop.f32.mrf.mxu1  ;;  %v2213_v37 = vadd.f32 %v2212_v38, %v2100_v49  ;;  %v2731_v33 = vmax.f32 %v2211_v24, 0.0  ;;  %v2104_v53 = vadd.f32 %v2103_v21, %v6488_v8  ;;  %v1894_v8 = vadd.f32 %v6541_v20, %v6231_v32  ;;  %v7140_v32 = vld [vmem:[#allocation10_spill] sm:$0xff] }
 0x187   : > { %v2105_v19 = vpop.f32.mrf.mxu0 }
 0x188   : > { %v2218_v46 = vpop.f32.mrf.mxu1  ;;  %v2732_v59 = vmax.f32 %v2213_v37, 0.0  ;;  %v2106_v29 = vadd.f32 %v2105_v19, %v6501_v61  ;;  %v2771_v0 = vpack.c.bf16 %v2731_v33, %v2727_v42  ;;  %v2217_v61 = vadd.f32 %v2216_v60, %v2104_v53 }
 0x189   : > { %v2107_v17 = vpop.f32.mrf.mxu0  ;;  %v2007_v20 = vadd.f32 %v7140_v32, %v1894_v8 }
 0x18a   : > { %v2220_v10 = vpop.f32.mrf.mxu1  ;;  %v2108_v26 = vadd.f32 %v2107_v17, %v1995_v34  ;;  %v2772_v58 = vpack.c.bf16 %v2732_v59, %v2728_v3  ;;  %v2219_v44 = vadd.f32 %v2218_v46, %v2106_v29  ;;  %v2735_v36 = vmax.f32 %v2217_v61, 0.0 }
 0x18b   : > { %v2109_v63 = vpop.f32.mrf.mxu0 }
 0x18c   : > { %v2222_v41 = vpop.f32.mrf.mxu1  ;;  %v2221_v30 = vadd.f32 %v2220_v10, %v2108_v26  ;;  %v2110_v54 = vadd.f32 %v2109_v63, %v1997_v57  ;;  %3261 = vmatprep.mubr.bf16.mxu0 %v2772_v58  ;;  %v2736_v62 = vmax.f32 %v2219_v44, 0.0 }
 0x18d   : > { %v2113_v2 = vpop.f32.mrf.mxu0  ;;  %3262 = vmatmul.mubr.bf16.gmra.mxu0 %v2771_v0 }
 0x18e   : > { %v2226_v12 = vpop.f32.mrf.mxu1  ;;  %v2223_v55 = vadd.f32 %v2222_v41, %v2110_v54  ;;  %v2739_v27 = vmax.f32 %v2221_v30, 0.0  ;;  %v2114_v4 = vadd.f32 %v2113_v2, %v7139_v50 }
 0x18f   : > { %v2115_v14 = vpop.f32.mrf.mxu0 }
 0x190   : > { %v2228_v16 = vpop.f32.mrf.mxu1  ;;  %v2740_v13 = vmax.f32 %v2223_v55, 0.0  ;;  %v2116_v1 = vadd.f32 %v2115_v14, %v7138_v6  ;;  %v2775_v18 = vpack.c.bf16 %v2739_v27, %v2735_v36  ;;  %v2227_v47 = vadd.f32 %v2226_v12, %v2114_v4 }
 0x191   : > { %v2117_v43 = vpop.f32.mrf.mxu0 }
 0x192   : > { %v2230_v45 = vpop.f32.mrf.mxu1  ;;  %v2118_v15 = vadd.f32 %v2117_v43, %v2005_v48  ;;  %v2776_v28 = vpack.c.bf16 %v2740_v13, %v2736_v62  ;;  %v2229_v35 = vadd.f32 %v2228_v16, %v2116_v1  ;;  %v2743_v3 = vmax.f32 %v2227_v47, 0.0 }
 0x193   : > { %v2119_v11 = vpop.f32.mrf.mxu0 }
 0x194   : > { %v2232_v22 = vpop.f32.mrf.mxu1  ;;  %v2231_v52 = vadd.f32 %v2230_v45, %v2118_v15  ;;  %v2120_v38 = vadd.f32 %v2119_v11, %v2007_v20  ;;  %3271 = vmatprep.mubr.bf16.mxu0 %v2776_v28  ;;  %v2744_v33 = vmax.f32 %v2229_v35, 0.0 }
 0x195   : > { %v2269_v24 = vpop.f32.mrf.mxu0  ;;  %3272 = vmatmul.mubr.bf16.gmra.mxu0 %v2775_v18 }
 0x196   : > { %v2382_v49 = vpop.f32.mrf.mxu1  ;;  %v2233_v51 = vadd.f32 %v2232_v22, %v2120_v38  ;;  %v2270_v21 = vadd.f32 %v2269_v24, %v6636_v39  ;;  %v2747_v60 = vmax.f32 %v2231_v52, 0.0 }
 0x197   : > { %v2271_v25 = vpop.f32.mrf.mxu0 }
 0x198   : > { %v2384_v37 = vpop.f32.mrf.mxu1  ;;  %v2748_v19 = vmax.f32 %v2233_v51, 0.0  ;;  %v6642_v46 = vadd.f32 %v2382_v49, %v2270_v21  ;;  %v2272_v34 = vadd.f32 %v2271_v25, %v6639_v5  ;;  %v2779_v17 = vpack.c.bf16 %v2747_v60, %v2743_v3 }
 0x199   : > { %v6645_v59 = vpop.f32.mrf.mxu0 }
 0x19a   : > { %v6647_v29 = vpop.f32.mrf.mxu1  ;;  %v6649_v42 = vadd.f32 %v2384_v37, %v2272_v34  ;;  %v2780_v53 = vpack.c.bf16 %v2748_v19, %v2744_v33 }
 0x19b   : > { %v6651_v10 = vpop.f32.mrf.mxu0 }
 0x19c   : > { %v6653_v57 = vpop.f32.mrf.mxu1  ;;  %3281 = vmatprep.mubr.bf16.mxu0 %v2780_v53 }
 0x19d   : > { %v2279_v26 = vpop.f32.mrf.mxu0  ;;  %3282 = vmatmul.mubr.bf16.gmra.mxu0 %v2779_v17 }
 0x19e   : > { %v2392_v58 = vpop.f32.mrf.mxu1  ;;  %v2280_v0 = vadd.f32 %v2279_v26, %v6636_v39 }
 0x19f   : > { %v2281_v63 = vpop.f32.mrf.mxu0 }
 0x1a0   : > { %v2394_v41 = vpop.f32.mrf.mxu1  ;;  %v6656_v40 = vadd.f32 %v2392_v58, %v2280_v0  ;;  %v2282_v44 = vadd.f32 %v2281_v63, %v6639_v5 }
 0x1a1   : > { %v6659_v30 = vpop.f32.mrf.mxu0 }
 0x1a2   : > { %v6661_v54 = vpop.f32.mrf.mxu1  ;;  %v6663_v61 = vadd.f32 %v2394_v41, %v2282_v44 }
 0x1a3   : > { %v6665_v2 = vpop.f32.mrf.mxu0 }
 0x1a4   : > { %v6667_v12 = vpop.f32.mrf.mxu1 }
 0x1a5   : > { %v2289_v8 = vpop.f32.mrf.mxu0 }
 0x1a6   : > { %v2402_v55 = vpop.f32.mrf.mxu1  ;;  %v2290_v56 = vadd.f32 %v2289_v8, %v6636_v39 }
 0x1a7   : > { %v2291_v27 = vpop.f32.mrf.mxu0 }
 0x1a8   : > { %v2404_v14 = vpop.f32.mrf.mxu1  ;;  %v6670_v16 = vadd.f32 %v2402_v55, %v2290_v56  ;;  %v2292_v23 = vadd.f32 %v2291_v27, %v6639_v5 }
 0x1a9   : > { %v6673_v31 = vpop.f32.mrf.mxu0 }
 0x1aa   : > { %v6675_v48 = vpop.f32.mrf.mxu1  ;;  %v6677_v62 = vadd.f32 %v2404_v14, %v2292_v23 }
 0x1ab   : > { %v6679_v13 = vpop.f32.mrf.mxu0 }
 0x1ac   : > { %v6681_v6 = vpop.f32.mrf.mxu1 }
 0x1ad   : > { %v2299_v1 = vpop.f32.mrf.mxu0 }
 0x1ae   : > { %v2412_v36 = vpop.f32.mrf.mxu1  ;;  %v2300_v50 = vadd.f32 %v2299_v1, %v6636_v39 }
 0x1af   : > { %v2301_v4 = vpop.f32.mrf.mxu0 }
 0x1b0   : > { %v2414_v43 = vpop.f32.mrf.mxu1  ;;  %v6684_v45 = vadd.f32 %v2412_v36, %v2300_v50  ;;  %v2302_v32 = vadd.f32 %v2301_v4, %v6639_v5 }
 0x1b1   : > { %v6687_v20 = vpop.f32.mrf.mxu0 }
 0x1b2   : > { %v6689_v15 = vpop.f32.mrf.mxu1  ;;  %v6691_v28 = vadd.f32 %v2414_v43, %v2302_v32 }
 0x1b3   : > { %v6693_v7 = vpop.f32.mrf.mxu0 }
 0x1b4   : > { %v6695_v18 = vpop.f32.mrf.mxu1 }
 0x1b5   : > { %v2309_v11 = vpop.f32.mrf.mxu0 }
 0x1b6   : > { %v2422_v22 = vpop.f32.mrf.mxu1  ;;  %v2310_v35 = vadd.f32 %v2309_v11, %v6636_v39 }
 0x1b7   : > { %v2311_v52 = vpop.f32.mrf.mxu0 }
 0x1b8   : > { %v2424_v38 = vpop.f32.mrf.mxu1  ;;  %v6698_v47 = vadd.f32 %v2422_v22, %v2310_v35  ;;  %v2312_v24 = vadd.f32 %v2311_v52, %v6639_v5 }
 0x1b9   : > { %v6701_v49 = vpop.f32.mrf.mxu0 }
 0x1ba   : > { %v6703_v51 = vpop.f32.mrf.mxu1  ;;  %v6705_v21 = vadd.f32 %v2424_v38, %v2312_v24 }
 0x1bb   : > { %v6707_v60 = vpop.f32.mrf.mxu0 }
 0x1bc   : > { %v6709_v25 = vpop.f32.mrf.mxu1 }
 0x1bd   : > { %v2319_v37 = vpop.f32.mrf.mxu0 }
 0x1be   : > { %v2432_v33 = vpop.f32.mrf.mxu1  ;;  %v2320_v19 = vadd.f32 %v2319_v37, %v6636_v39 }
 0x1bf   : > { %v2321_v34 = vpop.f32.mrf.mxu0 }
 0x1c0   : > { %v2434_v3 = vpop.f32.mrf.mxu1  ;;  %v6712_v53 = vadd.f32 %v2432_v33, %v2320_v19  ;;  %v2322_v17 = vadd.f32 %v2321_v34, %v6639_v5 }
 0x1c1   : > { %v6715_v26 = vpop.f32.mrf.mxu0 }
 0x1c2   : > { %v6717_v58 = vpop.f32.mrf.mxu1  ;;  %v6719_v0 = vadd.f32 %v2434_v3, %v2322_v17  ;;  %v2274_v17 = vadd.f32 %v6645_v59, %v6636_v39 }
 0x1c3   : > { %v6721_v63 = vpop.f32.mrf.mxu0 }
 0x1c4   : > { %v6723_v41 = vpop.f32.mrf.mxu1 }
 0x1c5   : > { %v2329_v44 = vpop.f32.mrf.mxu0 }
 0x1c6   : > { %v2442_v8 = vpop.f32.mrf.mxu1  ;;  %v2330_v55 = vadd.f32 %v2329_v44, %v6636_v39 }
 0x1c7   : > { %v2331_v56 = vpop.f32.mrf.mxu0 }
 0x1c8   : > { %v2444_v27 = vpop.f32.mrf.mxu1  ;;  %v6726_v14 = vadd.f32 %v2442_v8, %v2330_v55  ;;  %v2332_v23 = vadd.f32 %v2331_v56, %v6639_v5  ;;  %v2276_v55 = vadd.f32 %v6651_v10, %v6639_v5 }
 0x1c9   : > { %v6729_v1 = vpop.f32.mrf.mxu0 }
 0x1ca   : > { %v6731_v36 = vpop.f32.mrf.mxu1  ;;  %v6733_v50 = vadd.f32 %v2444_v27, %v2332_v23  ;;  %v2387_v23 = vadd.f32 %v6647_v29, %v2274_v17 }
 0x1cb   : > { %v6735_v4 = vpop.f32.mrf.mxu0 }
 0x1cc   : > { %v6737_v43 = vpop.f32.mrf.mxu1 }
 0x1cd   : > { %v2339_v32 = vpop.f32.mrf.mxu0 }
 0x1ce   : > { %v2452_v11 = vpop.f32.mrf.mxu1  ;;  %v2340_v22 = vadd.f32 %v2339_v32, %v6636_v39 }
 0x1cf   : > { %v2341_v35 = vpop.f32.mrf.mxu0 }
 0x1d0   : > { %v2454_v52 = vpop.f32.mrf.mxu1  ;;  %v6740_v38 = vadd.f32 %v2452_v11, %v2340_v22  ;;  %v2342_v24 = vadd.f32 %v2341_v35, %v6639_v5 }
 0x1d1   : > { %v6743_v37 = vpop.f32.mrf.mxu0 }
 0x1d2   : > { %7142 = vst [vmem:[#allocation11_spill] sm:$0xff] %v6740_v38  ;;  %v6745_v33 = vpop.f32.mrf.mxu1  ;;  %v6747_v19 = vadd.f32 %v2454_v52, %v2342_v24  ;;  %v2389_v52 = vadd.f32 %v6653_v57, %v2276_v55 }
 0x1d3   : > { %7143 = vst [vmem:[#allocation12_spill] sm:$0xff] %v6745_v33  ;;  %v6749_v34 = vpop.f32.mrf.mxu0 }
 0x1d4   : > { %7144 = vst [vmem:[#allocation8_spill] sm:$0xff] %v6747_v19  ;;  %7145 = vst [vmem:[#allocation9_spill] sm:$0xff] %v6749_v34  ;;  %v6751_v3 = vpop.f32.mrf.mxu1 }
 0x1d5   : > { %7146 = vst [vmem:[#allocation7_spill] sm:$0xff] %v6751_v3  ;;  %v2495_v44 = vpop.f32.mrf.mxu0  ;;  %v2284_v3 = vadd.f32 %v6659_v30, %v6636_v39 }
 0x1d6   : > { %v2608_v8 = vpop.f32.mrf.mxu1  ;;  %v2496_v11 = vadd.f32 %v2495_v44, %v6642_v46 }
 0x1d7   : > { %v2497_v56 = vpop.f32.mrf.mxu0  ;;  %v2397_v57 = vadd.f32 %v6661_v54, %v2284_v3 }
 0x1d8   : > { %v2610_v27 = vpop.f32.mrf.mxu1  ;;  %v2498_v32 = vadd.f32 %v2497_v56, %v6649_v42  ;;  %v2609_v33 = vadd.f32 %v2608_v8, %v2496_v11  ;;  %v2286_v42 = vadd.f32 %v6665_v2, %v6639_v5 }
 0x1d9   : > { %v2499_v22 = vpop.f32.mrf.mxu0 }
 0x1da   : > { %v2612_v35 = vpop.f32.mrf.mxu1  ;;  %v2500_v24 = vadd.f32 %v2499_v22, %v2387_v23  ;;  %v2611_v38 = vadd.f32 %v2610_v27, %v2498_v32  ;;  %v2689_v30 = vmax.f32 %v2609_v33, 0.0  ;;  %v2399_v32 = vadd.f32 %v6667_v12, %v2286_v42  ;;  %v5080_v12 = vld [vmem:[%s7090_s5 + $0x70] sm:$0xff]  }
 0x1db   : > { %v2501_v9 = vpop.f32.mrf.mxu0 }
 0x1dc   : > { %v2614_v59 = vpop.f32.mrf.mxu1  ;;  %v2613_v10 = vadd.f32 %v2612_v35, %v2500_v24  ;;  %v2502_v19 = vadd.f32 %v2501_v9, %v2389_v52  ;;  %v2690_v55 = vmax.f32 %v2611_v38, 0.0  ;;  %v2294_v24 = vadd.f32 %v6673_v31, %v6636_v39 }
 0x1dd   : > { %v2505_v34 = vpop.f32.mrf.mxu0  ;;  %v2296_v31 = vadd.f32 %v6679_v13, %v6639_v5  ;;  %v5082_v13 = vld [vmem:[%s7090_s5 + $0x68] sm:$0xff]  }
 0x1de   : > { %v2618_v29 = vpop.f32.mrf.mxu1  ;;  %v2615_v46 = vadd.f32 %v2614_v59, %v2502_v19  ;;  %v2693_v17 = vmax.f32 %v2613_v10, 0.0  ;;  %v2506_v27 = vadd.f32 %v2505_v34, %v6656_v40  ;;  %v5078_v40 = vld [vmem:[%s7090_s5 + $0x78] sm:$0xff]  }
 0x1df   : > { %v2507_v44 = vpop.f32.mrf.mxu0  ;;  %4485 = vmatprep.subr.bf16.mxu0 %v5078_v40 }
 0x1e0   : > { %v2620_v56 = vpop.f32.mrf.mxu1  ;;  %v2694_v23 = vmax.f32 %v2615_v46, 0.0  ;;  %v2508_v22 = vadd.f32 %v2507_v44, %v6663_v61  ;;  %v2753_v2 = vpack.c.bf16 %v2693_v17, %v2689_v30  ;;  %v5079_v61 = vld [vmem:[%s7090_s5 + $0x38] sm:$0xff]   ;;  %v2619_v33 = vadd.f32 %v2618_v29, %v2506_v27  ;;  %v5081_v44 = vld [vmem:[%s7090_s5 + $0x30] sm:$0xff]  }
 0x1e1   : > { %v2509_v9 = vpop.f32.mrf.mxu0  ;;  %4486 = vmatpush3.bf16.msra.mxu0 %v5079_v61 }
 0x1e2   : > { %v2622_v8 = vpop.f32.mrf.mxu1  ;;  %v2754_v11 = vpack.c.bf16 %v2694_v23, %v2690_v55  ;;  %v2510_v35 = vadd.f32 %v2509_v9, %v2397_v57  ;;  %v2621_v54 = vadd.f32 %v2620_v56, %v2508_v22  ;;  %v2407_v56 = vadd.f32 %v6675_v48, %v2294_v24  ;;  %4487 = vmatprep.subr.bf16.mxu0 %v5080_v12 }
 0x1e3   : > { %v2511_v19 = vpop.f32.mrf.mxu0  ;;  %v2697_v23 = vmax.f32 %v2619_v33, 0.0  ;;  %v2409_v9 = vadd.f32 %v6681_v6, %v2296_v31  ;;  %v2304_v48 = vadd.f32 %v6687_v20, %v6636_v39  ;;  %v5084_v6 = vld [vmem:[%s7090_s5 + $0x60] sm:$0xff]  }
 0x1e4   : > { %v2624_v52 = vpop.f32.mrf.mxu1  ;;  %v2623_v38 = vadd.f32 %v2622_v8, %v2510_v35  ;;  %v2512_v3 = vadd.f32 %v2511_v19, %v2399_v32  ;;  %3324 = vmatprep.mubr.bf16.mxu1 %v2754_v11  ;;  %v2698_v57 = vmax.f32 %v2621_v54, 0.0  ;;  %v5085_v33 = vld [vmem:[%s7090_s5 + $0x20] sm:$0xff]  }
 0x1e5   : > { %v2515_v34 = vpop.f32.mrf.mxu0  ;;  %3325 = vmatmul.mubr.bf16.vlgmr.msra.gmra.mxu1 %v2753_v2  ;;  %4488 = vmatpush3.bf16.msra.mxu0 %v5081_v44  ;;  %v5083_v2 = vld [vmem:[%s7090_s5 + $0x28] sm:$0xff]  }
 0x1e6   : > { %v2628_v59 = vpop.f32.mrf.mxu1  ;;  %v2625_v10 = vadd.f32 %v2624_v52, %v2512_v3  ;;  %v2701_v42 = vmax.f32 %v2623_v38, 0.0  ;;  %v2516_v22 = vadd.f32 %v2515_v34, %v6670_v16  ;;  %4489 = vmatprep.subr.bf16.mxu0 %v5082_v13  ;;  %v2306_v38 = vadd.f32 %v6693_v7, %v6639_v5  ;;  %v5086_v7 = vld [vmem:[%s7090_s5 + $0x58] sm:$0xff]  }
 0x1e7   : > { %v2517_v46 = vpop.f32.mrf.mxu0  ;;  %v2417_v34 = vadd.f32 %v6689_v15, %v2304_v48  ;;  %v2314_v15 = vadd.f32 %v6701_v49, %v6636_v39 }
 0x1e8   : > { %v2630_v17 = vpop.f32.mrf.mxu1  ;;  %v2702_v29 = vmax.f32 %v2625_v10, 0.0  ;;  %v2518_v55 = vadd.f32 %v2517_v46, %v6677_v62  ;;  %v2757_v11 = vpack.c.bf16 %v2701_v42, %v2697_v23  ;;  %v2629_v24 = vadd.f32 %v2628_v59, %v2516_v22  ;;  %v5087_v23 = vld [vmem:[%s7090_s5 + $0x18] sm:$0xff]  }
 0x1e9   : > { %v2519_v30 = vpop.f32.mrf.mxu0  ;;  %4490 = vmatpush3.bf16.msra.mxu0 %v5083_v2  ;;  %v2427_v2 = vadd.f32 %v6703_v51, %v2314_v15  ;;  %v2324_v51 = vadd.f32 %v6715_v26, %v6636_v39  ;;  %v2326_v26 = vadd.f32 %v6721_v63, %v6639_v5 }
 0x1ea   : > { %v2632_v27 = vpop.f32.mrf.mxu1  ;;  %v2758_v8 = vpack.c.bf16 %v2702_v29, %v2698_v57  ;;  %v2520_v32 = vadd.f32 %v2519_v30, %v2407_v56  ;;  %v2631_v19 = vadd.f32 %v2630_v17, %v2518_v55  ;;  %4491 = vmatprep.subr.bf16.mxu0 %v5084_v6  ;;  %v2705_v42 = vmax.f32 %v2629_v24, 0.0 }
 0x1eb   : > { %v2521_v35 = vpop.f32.mrf.mxu0  ;;  %v2419_v56 = vadd.f32 %v6695_v18, %v2306_v38  ;;  %v5088_v18 = vld [vmem:[%s7090_s5 + $0x50] sm:$0xff]  }
 0x1ec   : > { %v2634_v62 = vpop.f32.mrf.mxu1  ;;  %v2633_v52 = vadd.f32 %v2632_v27, %v2520_v32  ;;  %v2522_v16 = vadd.f32 %v2521_v35, %v2409_v9  ;;  %3334 = vmatprep.mubr.bf16.mxu1 %v2758_v8  ;;  %v2706_v31 = vmax.f32 %v2631_v19, 0.0  ;;  %v2316_v8 = vadd.f32 %v6707_v60, %v6639_v5  ;;  %v5090_v60 = vld [vmem:[%s7090_s5 + $0x48] sm:$0xff]  }
 0x1ed   : > { %v2525_v54 = vpop.f32.mrf.mxu0  ;;  %3335 = vmatmul.mubr.bf16.gmra.mxu1 %v2757_v11  ;;  %4492 = vmatpush3.bf16.msra.mxu0 %v5085_v33  ;;  %v5091_v33 = vld [vmem:[%s7090_s5 + $0x8] sm:$0xff]  }
 0x1ee   : > { %v2638_v20 = vpop.f32.mrf.mxu1  ;;  %v2635_v3 = vadd.f32 %v2634_v62, %v2522_v16  ;;  %v2709_v40 = vmax.f32 %v2633_v52, 0.0  ;;  %v2526_v46 = vadd.f32 %v2525_v54, %v6684_v45  ;;  %4493 = vmatprep.subr.bf16.mxu0 %v5086_v7  ;;  %v5089_v62 = vld [vmem:[%s7090_s5 + $0x10] sm:$0xff]   ;;  %v2429_v38 = vadd.f32 %v6709_v25, %v2316_v8 }
 0x1ef   : > { %v2527_v61 = vpop.f32.mrf.mxu0 }
 0x1f0   : > { %v2640_v12 = vpop.f32.mrf.mxu1  ;;  %v2710_v10 = vmax.f32 %v2635_v3, 0.0  ;;  %v2528_v59 = vadd.f32 %v2527_v61, %v6691_v28  ;;  %v2761_v55 = vpack.c.bf16 %v2709_v40, %v2705_v42  ;;  %v2639_v27 = vadd.f32 %v2638_v20, %v2526_v46 }
 0x1f1   : > { %v2529_v17 = vpop.f32.mrf.mxu0  ;;  %4494 = vmatpush3.bf16.msra.mxu0 %v5087_v23  ;;  %v2439_v23 = vadd.f32 %v6723_v41, %v2326_v26 }
 0x1f2   : > { %v2642_v44 = vpop.f32.mrf.mxu1  ;;  %v2762_v57 = vpack.c.bf16 %v2710_v10, %v2706_v31  ;;  %v2530_v29 = vadd.f32 %v2529_v17, %v2417_v34  ;;  %v2641_v22 = vadd.f32 %v2640_v12, %v2528_v59  ;;  %4495 = vmatprep.subr.bf16.mxu0 %v5088_v18  ;;  %v2713_v6 = vmax.f32 %v2639_v27, 0.0 }
 0x1f3   : > { %v2531_v13 = vpop.f32.mrf.mxu0  ;;  %v2334_v27 = vadd.f32 %v6729_v1, %v6636_v39 }
 0x1f4   : > { %v2644_v28 = vpop.f32.mrf.mxu1  ;;  %v2643_v30 = vadd.f32 %v2642_v44, %v2530_v29  ;;  %v2532_v45 = vadd.f32 %v2531_v13, %v2419_v56  ;;  %3344 = vmatprep.mubr.bf16.mxu1 %v2762_v57  ;;  %v2714_v19 = vmax.f32 %v2641_v22, 0.0  ;;  %v2437_v44 = vadd.f32 %v6717_v58, %v2324_v51 }
 0x1f5   : > { %v2535_v9 = vpop.f32.mrf.mxu0  ;;  %3345 = vmatmul.mubr.bf16.gmra.mxu1 %v2761_v55  ;;  %4496 = vmatpush3.bf16.msra.mxu0 %v5089_v62  ;;  %v2447_v62 = vadd.f32 %v6731_v36, %v2334_v27 }
 0x1f6   : > { %v2648_v49 = vpop.f32.mrf.mxu1  ;;  %v2645_v32 = vadd.f32 %v2644_v28, %v2532_v45  ;;  %v2717_v48 = vmax.f32 %v2643_v30, 0.0  ;;  %v2536_v24 = vadd.f32 %v2535_v9, %v6698_v47  ;;  %4497 = vmatprep.subr.bf16.mxu0 %v5090_v60 }
 0x1f7   : > { %v2537_v11 = vpop.f32.mrf.mxu0 }
 0x1f8   : > { %v2650_v35 = vpop.f32.mrf.mxu1  ;;  %v2718_v52 = vmax.f32 %v2645_v32, 0.0  ;;  %v2538_v16 = vadd.f32 %v2537_v11, %v6705_v21  ;;  %v2765_v61 = vpack.c.bf16 %v2717_v48, %v2713_v6  ;;  %v2649_v10 = vadd.f32 %v2648_v49, %v2536_v24 }
 0x1f9   : > { %v2539_v54 = vpop.f32.mrf.mxu0  ;;  %4498 = vmatpush3.bf16.msra.mxu0 %v5091_v33 }
 0x1fa   : > { %v2652_v20 = vpop.f32.mrf.mxu1  ;;  %v2766_v3 = vpack.c.bf16 %v2718_v52, %v2714_v19  ;;  %v2540_v40 = vadd.f32 %v2539_v54, %v2427_v2  ;;  %v2651_v34 = vadd.f32 %v2650_v35, %v2538_v16  ;;  %v2721_v15 = vmax.f32 %v2649_v10, 0.0  ;;  %v7148_v10 = vld [vmem:[#allocation12_spill] sm:$0xff] }
 0x1fb   : > { %v2541_v12 = vpop.f32.mrf.mxu0 }
 0x1fc   : > { %v2654_v21 = vpop.f32.mrf.mxu1  ;;  %v2653_v31 = vadd.f32 %v2652_v20, %v2540_v40  ;;  %v2542_v47 = vadd.f32 %v2541_v12, %v2429_v38  ;;  %3354 = vmatprep.mubr.bf16.mxu1 %v2766_v3  ;;  %v2722_v56 = vmax.f32 %v2651_v34, 0.0  ;;  %v2344_v40 = vadd.f32 %v6743_v37, %v6636_v39  ;;  %v7149_v39 = vld [vmem:[#allocation8_spill] sm:$0xff] }
 0x1fd   : > { %v2545_v25 = vpop.f32.mrf.mxu0  ;;  %3355 = vmatmul.mubr.bf16.gmra.mxu1 %v2765_v61 }
 0x1fe   : > { %v2658_v59 = vpop.f32.mrf.mxu1  ;;  %v2655_v7 = vadd.f32 %v2654_v21, %v2542_v47  ;;  %v2725_v42 = vmax.f32 %v2653_v31, 0.0  ;;  %v2546_v55 = vadd.f32 %v2545_v25, %v6712_v53  ;;  %v2336_v53 = vadd.f32 %v6735_v4, %v6639_v5 }
 0x1ff   : > { %v2547_v46 = vpop.f32.mrf.mxu0  ;;  %v2457_v25 = vadd.f32 %v7148_v10, %v2344_v40 }
 0x200   : > { %v2660_v17 = vpop.f32.mrf.mxu1  ;;  %v2726_v57 = vmax.f32 %v2655_v7, 0.0  ;;  %v2548_v29 = vadd.f32 %v2547_v46, %v6719_v0  ;;  %v2769_v30 = vpack.c.bf16 %v2725_v42, %v2721_v15  ;;  %v2659_v0 = vadd.f32 %v2658_v59, %v2546_v55  ;;  %v7150_v42 = vld [vmem:[#allocation11_spill] sm:$0xff] }
 0x201   : > { %v2549_v13 = vpop.f32.mrf.mxu0  ;;  %v2449_v24 = vadd.f32 %v6737_v43, %v2336_v53 }
 0x202   : > { %v2662_v28 = vpop.f32.mrf.mxu1  ;;  %v2770_v22 = vpack.c.bf16 %v2726_v57, %v2722_v56  ;;  %v2550_v63 = vadd.f32 %v2549_v13, %v2437_v44  ;;  %v2661_v58 = vadd.f32 %v2660_v17, %v2548_v29  ;;  %v2729_v52 = vmax.f32 %v2659_v0, 0.0  ;;  %v7151_v56 = vld [vmem:[#allocation7_spill] sm:$0xff] }
 0x203   : > { %v2551_v45 = vpop.f32.mrf.mxu0  ;;  %v5092_v0 = vld [vmem:[%s7090_s5 + $0x40] sm:$0xff]  }
 0x204   : > { %v2664_v18 = vpop.f32.mrf.mxu1  ;;  %v2663_v9 = vadd.f32 %v2662_v28, %v2550_v63  ;;  %v2552_v49 = vadd.f32 %v2551_v45, %v2439_v23  ;;  %3364 = vmatprep.mubr.bf16.mxu1 %v2770_v22  ;;  %v2730_v2 = vmax.f32 %v2661_v58, 0.0  ;;  %4499 = vmatprep.subr.bf16.mxu0 %v5092_v0 }
 0x205   : > { %v2555_v8 = vpop.f32.mrf.mxu0  ;;  %3365 = vmatmul.mubr.bf16.gmra.mxu1 %v2769_v30 }
 0x206   : > { %v2668_v32 = vpop.f32.mrf.mxu1  ;;  %v2665_v41 = vadd.f32 %v2664_v18, %v2552_v49  ;;  %v2733_v48 = vmax.f32 %v2663_v9, 0.0  ;;  %v2556_v16 = vadd.f32 %v2555_v8, %v6726_v14  ;;  %v7147_v14 = vld [vmem:[#allocation9_spill] sm:$0xff]  ;;  %v5093_v8 = vld [vmem:[%s7090_s5] sm:$0xff]  }
 0x207   : > { %v2557_v11 = vpop.f32.mrf.mxu0  ;;  %v2346_v33 = vadd.f32 %v7147_v14, %v6639_v5  ;;  %4500 = vmatpush3.bf16.msra.mxu0 %v5093_v8 }
 0x208   : > { %v2670_v35 = vpop.f32.mrf.mxu1  ;;  %v2734_v19 = vmax.f32 %v2665_v41, 0.0  ;;  %v2558_v1 = vadd.f32 %v2557_v11, %v6733_v50  ;;  %v2773_v4 = vpack.c.bf16 %v2733_v48, %v2729_v52  ;;  %v2669_v50 = vadd.f32 %v2668_v32, %v2556_v16  ;;  %v5094_v48 = vld [vmem:[%s7092_s7 + $0x38] sm:$0xff]   ;;  %v5095_v11 = vld [vmem:[%s7092_s7 + $0x30] sm:$0xff]  }
 0x209   : > { %v2559_v60 = vpop.f32.mrf.mxu0  ;;  %v2459_v57 = vadd.f32 %v7151_v56, %v2346_v33  ;;  %4581 = vmatprep.subr.bf16.mxu1 %v5094_v48 }
 0x20a   : > { %v2672_v6 = vpop.f32.mrf.mxu1  ;;  %v2774_v54 = vpack.c.bf16 %v2734_v19, %v2730_v2  ;;  %v2560_v20 = vadd.f32 %v2559_v60, %v2447_v62  ;;  %v2671_v36 = vadd.f32 %v2670_v35, %v2558_v1  ;;  %v2737_v7 = vmax.f32 %v2669_v50, 0.0  ;;  %4582 = vmatpush3.bf16.msra.mxu1 %v5094_v48  ;;  %v5096_v62 = vld [vmem:[%s7092_s7 + $0x28] sm:$0xff]  }
 0x20b   : > { %v2561_v38 = vpop.f32.mrf.mxu0  ;;  %4583 = vmatprep.subr.bf16.mxu1 %v5095_v11 }
 0x20c   : > { %v2674_v3 = vpop.f32.mrf.mxu1  ;;  %v2673_v51 = vadd.f32 %v2672_v6, %v2560_v20  ;;  %v2562_v61 = vadd.f32 %v2561_v38, %v2449_v24  ;;  %3374 = vmatprep.mubr.bf16.mxu1 %v2774_v54  ;;  %v2738_v59 = vmax.f32 %v2671_v36, 0.0  ;;  %v7152_v36 = vld [vmem:[#allocation13_spill] sm:$0xff] }
 0x20d   : > { %v2565_v12 = vpop.f32.mrf.mxu0  ;;  %3375 = vmatmul.mubr.bf16.gmra.mxu1 %v2773_v4  ;;  %v7154_v50 = vsub.s32 0, %v7152_v36 }
 0x20e   : > { %v2678_v21 = vpop.f32.mrf.mxu1  ;;  %v2675_v43 = vadd.f32 %v2674_v3, %v2562_v61  ;;  %v2741_v34 = vmax.f32 %v2673_v51, 0.0  ;;  %v2566_v46 = vadd.f32 %v2565_v12, %v7150_v42  ;;  %4584 = vmatpush3.bf16.msra.mxu1 %v5095_v11  ;;  %v2847_v3 = vld [vmem:[%s7089_s4] sm:$0x3]  ;;  %v7153_v51 = vsub.s32 1, %v7152_v36 }
 0x20f   : > { %v2567_v31 = vpop.f32.mrf.mxu0  ;;  %4585 = vmatprep.subr.bf16.mxu1 %v5096_v62  ;;  %v6893_v12 = vrot.slane %v2847_v3, %v7154_v50 }
 0x210   : > { %v2680_v47 = vpop.f32.mrf.mxu1  ;;  %v2742_v26 = vmax.f32 %v2675_v43, 0.0  ;;  %v2568_v37 = vadd.f32 %v2567_v31, %v7149_v39  ;;  %v2777_v5 = vpack.c.bf16 %v2741_v34, %v2737_v7  ;;  %v2679_v22 = vadd.f32 %v2678_v21, %v2566_v46 }
 0x211   : > { %v2569_v17 = vpop.f32.mrf.mxu0  ;;  %v6889_v61 = vrot.slane %v2847_v3, %v7153_v51 }
 0x212   : > { %v2682_v44 = vpop.f32.mrf.mxu1  ;;  %v2778_v29 = vpack.c.bf16 %v2742_v26, %v2738_v59  ;;  %v2570_v15 = vadd.f32 %v2569_v17, %v2457_v25  ;;  %v2681_v13 = vadd.f32 %v2680_v47, %v2568_v37  ;;  %v2745_v58 = vmax.f32 %v2679_v22, 0.0  ;;  %4586 = vmatpush3.bf16.msra.mxu1 %v5096_v62 }
 0x213   : > { %v2571_v55 = vpop.f32.mrf.mxu0 }
 0x214   : > { %v2683_v28 = vadd.f32 %v2682_v44, %v2570_v15  ;;  %v2572_v23 = vadd.f32 %v2571_v55, %v2459_v57  ;;  %3384 = vmatprep.mubr.bf16.mxu1 %v2778_v29  ;;  %v2684_v63 = vpop.f32.mrf.mxu1  ;;  %v2746_v18 = vmax.f32 %v2681_v13, 0.0 }
 0x215   : > { %3385 = vmatmul.mubr.bf16.gmra.mxu1 %v2777_v5 }
 0x216   : > { %v2685_v30 = vadd.f32 %v2684_v63, %v2572_v23  ;;  %v2749_v45 = vmax.f32 %v2683_v28, 0.0 }
 0x218   : > { %v2750_v27 = vmax.f32 %v2685_v30, 0.0  ;;  %v2781_v49 = vpack.c.bf16 %v2749_v45, %v2745_v58 }
 0x21a   : > { %v2782_v9 = vpack.c.bf16 %v2750_v27, %v2746_v18 }
 0x21c   : > { %3394 = vmatprep.mubr.bf16.mxu1 %v2782_v9 }
 0x21d   : > { %3395 = vmatmul.mubr.bf16.gmra.mxu1 %v2781_v49 }
 0x225   : > { %v3213_v32 = vpop.f32.mrf.mxu0 }
 0x226   : > { %v3214_v31 = vadd.f32 %v3213_v32, %v6893_v12 }
 0x227   : > { %v3215_v53 = vpop.f32.mrf.mxu0 }
 0x228   : > { %v3216_v43 = vadd.f32 %v3215_v53, %v6889_v61 }
 0x229   : > { %v3217_v41 = vpop.f32.mrf.mxu0 }
 0x22a   : > { %v3218_v34 = vadd.f32 %v3217_v41, %v6893_v12 }
 0x22b   : > { %v3219_v35 = vpop.f32.mrf.mxu0 }
 0x22c   : > { %v3220_v10 = vadd.f32 %v3219_v35, %v6889_v61 }
 0x22d   : > { %v3223_v2 = vpop.f32.mrf.mxu0 }
 0x22e   : > { %v3224_v13 = vadd.f32 %v3223_v2, %v6893_v12 }
 0x22f   : > { %v3225_v19 = vpop.f32.mrf.mxu0 }
 0x230   : > { %v3226_v15 = vadd.f32 %v3225_v19, %v6889_v61 }
 0x231   : > { %v3227_v1 = vpop.f32.mrf.mxu0 }
 0x232   : > { %v3228_v5 = vadd.f32 %v3227_v1, %v6893_v12 }
 0x233   : > { %v3229_v52 = vpop.f32.mrf.mxu0 }
 0x234   : > { %v3230_v22 = vadd.f32 %v3229_v52, %v6889_v61 }
 0x235   : > { %v3233_v16 = vpop.f32.mrf.mxu0 }
 0x236   : > { %v3234_v62 = vadd.f32 %v3233_v16, %v6893_v12 }
 0x237   : > { %v3235_v60 = vpop.f32.mrf.mxu0 }
 0x238   : > { %v3236_v48 = vadd.f32 %v3235_v60, %v6889_v61 }
 0x239   : > { %v3237_v6 = vpop.f32.mrf.mxu0 }
 0x23a   : > { %v3238_v11 = vadd.f32 %v3237_v6, %v6893_v12 }
 0x23b   : > { %v3239_v24 = vpop.f32.mrf.mxu0 }
 0x23c   : > { %v3240_v1 = vadd.f32 %v3239_v24, %v6889_v61 }
 0x23d   : > { %v6874_v54 = vpop.f32.mrf.mxu0 }
 0x23f   : > { %v6876_v20 = vpop.f32.mrf.mxu0 }
 0x240   : > { %v3246_v16 = vadd.f32 %v6876_v20, %v6889_v61 }
 0x241   : > { %v6878_v4 = vpop.f32.mrf.mxu0 }
 0x242   : > { %v3248_v24 = vadd.f32 %v6878_v4, %v6893_v12 }
 0x243   : > { %v6880_v38 = vpop.f32.mrf.mxu0 }
 0x245   : > { %v6885_v40 = vpop.f32.mrf.mxu0 }
 0x247   : > { %v6895_v14 = vpop.f32.mrf.mxu0 }
 0x249   : > { %v6901_v26 = vpop.f32.mrf.mxu0 }
 0x24b   : > { %v6903_v56 = vpop.f32.mrf.mxu0 }
 0x24d   : > { %v6909_v45 = vpop.f32.mrf.mxu0 }
 0x24f   : > { %v6911_v32 = vpop.f32.mrf.mxu0 }
 0x251   : > { %v3267_v36 = vpop.f32.mrf.mxu0 }
 0x253   : > { %v3269_v6 = vpop.f32.mrf.mxu0 }
 0x2a5   : > { %v3326_v21 = vpop.f32.mrf.mxu1 }
 0x2a6   : > { %v3327_v39 = vadd.f32 %v3326_v21, %v3214_v31 }
 0x2a7   : > { %v3328_v33 = vpop.f32.mrf.mxu1 }
 0x2a8   : > { %v3329_v25 = vadd.f32 %v3328_v33, %v3216_v43  ;;  %v3405_v57 = vmax.f32 %v3327_v39, 0.0 }
 0x2a9   : > { %v3330_v47 = vpop.f32.mrf.mxu1 }
 0x2aa   : > { %v3331_v59 = vadd.f32 %v3330_v47, %v3218_v34  ;;  %v3406_v17 = vmax.f32 %v3329_v25, 0.0  ;;  %v3244_v25 = vadd.f32 %v6874_v54, %v6893_v12 }
 0x2ab   : > { %v3332_v37 = vpop.f32.mrf.mxu1 }
 0x2ac   : > { %v3333_v7 = vadd.f32 %v3332_v37, %v3220_v10  ;;  %v3407_v42 = vmax.f32 %v3331_v59, 0.0  ;;  %v3250_v37 = vadd.f32 %v6880_v38, %v6889_v61  ;;  %v3258_v38 = vadd.f32 %v6901_v26, %v6893_v12 }
 0x2ad   : > { %v3336_v46 = vpop.f32.mrf.mxu1 }
 0x2ae   : > { %v3408_v44 = vmax.f32 %v3333_v7, 0.0  ;;  %v3437_v28 = vpack.c.bf16 %v3407_v42, %v3405_v57  ;;  %v3337_v18 = vadd.f32 %v3336_v46, %v3224_v13  ;;  %v3273_v46 = vpop.f32.mrf.mxu0  ;;  %v3256_v13 = vadd.f32 %v6895_v14, %v6889_v61 }
 0x2af   : > { %v3338_v29 = vpop.f32.mrf.mxu1 }
 0x2b0   : > { %v3438_v55 = vpack.c.bf16 %v3408_v44, %v3406_v17  ;;  %v3339_v63 = vadd.f32 %v3338_v29, %v3226_v15  ;;  %v3409_v53 = vmax.f32 %v3337_v18, 0.0 }
 0x2b1   : > { %v3340_v23 = vpop.f32.mrf.mxu1 }
 0x2b2   : > { %v3341_v30 = vadd.f32 %v3340_v23, %v3228_v5  ;;  %3620 = vmatprep.mubr.bf16.mxu0 %v3438_v55  ;;  %v3410_v0 = vmax.f32 %v3339_v63, 0.0  ;;  %v3275_v5 = vpop.f32.mrf.mxu0  ;;  %v3254_v23 = vadd.f32 %v6885_v40, %v6893_v12 }
 0x2b3   : > { %v3342_v27 = vpop.f32.mrf.mxu1  ;;  %3621 = vmatmul.mubr.bf16.vlgmr.msra.gmra.mxu0 %v3437_v28 }
 0x2b4   : > { %v3343_v58 = vadd.f32 %v3342_v27, %v3230_v22  ;;  %v3411_v9 = vmax.f32 %v3341_v30, 0.0  ;;  %v3260_v30 = vadd.f32 %v6903_v56, %v6889_v61  ;;  %v3268_v56 = vadd.f32 %v3267_v36, %v6893_v12 }
 0x2b5   : > { %v3346_v49 = vpop.f32.mrf.mxu1 }
 0x2b6   : > { %v3412_v8 = vmax.f32 %v3343_v58, 0.0  ;;  %v3439_v2 = vpack.c.bf16 %v3411_v9, %v3409_v53  ;;  %v3347_v51 = vadd.f32 %v3346_v49, %v3234_v62  ;;  %v3277_v58 = vpop.f32.mrf.mxu0  ;;  %v3264_v62 = vadd.f32 %v6909_v45, %v6893_v12 }
 0x2b7   : > { %v3348_v41 = vpop.f32.mrf.mxu1  ;;  %v3276_v45 = vadd.f32 %v3275_v5, %v6889_v61 }
 0x2b8   : > { %v3440_v35 = vpack.c.bf16 %v3412_v8, %v3410_v0  ;;  %v3349_v52 = vadd.f32 %v3348_v41, %v3236_v48  ;;  %v3413_v31 = vmax.f32 %v3347_v51, 0.0  ;;  %v3279_v41 = vpop.f32.mrf.mxu0 }
 0x2b9   : > { %v3350_v19 = vpop.f32.mrf.mxu1 }
 0x2ba   : > { %v3351_v3 = vadd.f32 %v3350_v19, %v3238_v11  ;;  %3628 = vmatprep.mubr.bf16.mxu0 %v3440_v35  ;;  %v3414_v60 = vmax.f32 %v3349_v52, 0.0  ;;  %v3266_v11 = vadd.f32 %v6911_v32, %v6889_v61  ;;  %v3283_v51 = vpop.f32.mrf.mxu0 }
 0x2bb   : > { %v3352_v50 = vpop.f32.mrf.mxu1  ;;  %3629 = vmatmul.mubr.bf16.gmra.mxu0 %v3439_v2 }
 0x2bc   : > { %v3353_v21 = vadd.f32 %v3352_v50, %v3240_v1  ;;  %v3415_v33 = vmax.f32 %v3351_v3, 0.0  ;;  %v3270_v1 = vadd.f32 %v3269_v6, %v6889_v61 }
 0x2bd   : > { %v3356_v43 = vpop.f32.mrf.mxu1 }
 0x2be   : > { %v3416_v34 = vmax.f32 %v3353_v21, 0.0  ;;  %v3441_v59 = vpack.c.bf16 %v3415_v33, %v3413_v31  ;;  %v3357_v17 = vadd.f32 %v3356_v43, %v3244_v25 }
 0x2bf   : > { %v3358_v47 = vpop.f32.mrf.mxu1 }
 0x2c0   : > { %v3442_v10 = vpack.c.bf16 %v3416_v34, %v3414_v60  ;;  %v3359_v7 = vadd.f32 %v3358_v47, %v3246_v16  ;;  %v3417_v55 = vmax.f32 %v3357_v17, 0.0  ;;  %v3285_v34 = vpop.f32.mrf.mxu0  ;;  %v3278_v16 = vadd.f32 %v3277_v58, %v6893_v12 }
 0x2c1   : > { %v3360_v39 = vpop.f32.mrf.mxu1 }
 0x2c2   : > { %v3361_v42 = vadd.f32 %v3360_v39, %v3248_v24  ;;  %3636 = vmatprep.mubr.bf16.mxu0 %v3442_v10  ;;  %v3418_v4 = vmax.f32 %v3359_v7, 0.0  ;;  %v3274_v24 = vadd.f32 %v3273_v46, %v6893_v12  ;;  %v3287_v7 = vpop.f32.mrf.mxu0  ;;  %v3286_v46 = vadd.f32 %v3285_v34, %v6889_v61 }
 0x2c3   : > { %v3362_v44 = vpop.f32.mrf.mxu1  ;;  %3637 = vmatmul.mubr.bf16.gmra.mxu0 %v3441_v59  ;;  %v3280_v59 = vadd.f32 %v3279_v41, %v6889_v61  ;;  %v5100_v41 = vld [vmem:[%s7092_s7 + $0x8] sm:$0xff]  }
 0x2c4   : > { %v3363_v20 = vadd.f32 %v3362_v44, %v3250_v37  ;;  %v3419_v57 = vmax.f32 %v3361_v42, 0.0 }
 0x2c5   : > { %v3366_v29 = vpop.f32.mrf.mxu1 }
 0x2c6   : > { %v3420_v15 = vmax.f32 %v3363_v20, 0.0  ;;  %v3443_v22 = vpack.c.bf16 %v3419_v57, %v3417_v55  ;;  %v3367_v9 = vadd.f32 %v3366_v29, %v3254_v23 }
 0x2c7   : > { %v3368_v54 = vpop.f32.mrf.mxu1 }
 0x2c8   : > { %v3444_v28 = vpack.c.bf16 %v3420_v15, %v3418_v4  ;;  %v3369_v18 = vadd.f32 %v3368_v54, %v3256_v13  ;;  %v3421_v48 = vmax.f32 %v3367_v9, 0.0  ;;  %v3289_v15 = vpop.f32.mrf.mxu0  ;;  %v3288_v54 = vadd.f32 %v3287_v7, %v6893_v12 }
 0x2c9   : > { %v3370_v63 = vpop.f32.mrf.mxu1 }
 0x2ca   : > { %v3371_v27 = vadd.f32 %v3370_v63, %v3258_v38  ;;  %3644 = vmatprep.mubr.bf16.mxu0 %v3444_v28  ;;  %v3422_v26 = vmax.f32 %v3369_v18, 0.0  ;;  %v3284_v38 = vadd.f32 %v3283_v51, %v6893_v12  ;;  %v5097_v12 = vld [vmem:[%s7092_s7 + $0x20] sm:$0xff]  }
 0x2cb   : > { %v3372_v49 = vpop.f32.mrf.mxu1  ;;  %3645 = vmatmul.mubr.bf16.gmra.mxu0 %v3443_v22  ;;  %v3290_v22 = vadd.f32 %v3289_v15, %v6889_v61  ;;  %4587 = vmatprep.subr.bf16.mxu1 %v5097_v12  ;;  %v5098_v61 = vld [vmem:[%s7092_s7 + $0x18] sm:$0xff]  }
 0x2cc   : > { %v3373_v14 = vadd.f32 %v3372_v49, %v3260_v30  ;;  %v3423_v0 = vmax.f32 %v3371_v27, 0.0  ;;  %4588 = vmatpush3.bf16.msra.mxu1 %v5097_v12 }
 0x2cd   : > { %v3376_v8 = vpop.f32.mrf.mxu1  ;;  %4589 = vmatprep.subr.bf16.mxu1 %v5098_v61 }
 0x2ce   : > { %v3424_v53 = vmax.f32 %v3373_v14, 0.0  ;;  %v3445_v2 = vpack.c.bf16 %v3423_v0, %v3421_v48  ;;  %v3377_v50 = vadd.f32 %v3376_v8, %v3264_v62  ;;  %v5101_v48 = vld [vmem:[%s7092_s7] sm:$0xff]  }
 0x2cf   : > { %v3378_v40 = vpop.f32.mrf.mxu1  ;;  %v6968_v62 = vld [vmem:[%s7091_s6] ss:$0 sm:$0xff] }
 0x2d0   : > { %v3446_v35 = vpack.c.bf16 %v3424_v53, %v3422_v26  ;;  %v3379_v52 = vadd.f32 %v3378_v40, %v3266_v11  ;;  %v3425_v31 = vmax.f32 %v3377_v50, 0.0  ;;  %4590 = vmatpush3.bf16.msra.mxu1 %v5098_v61  ;;  %v5099_v53 = vld [vmem:[%s7092_s7 + $0x10] sm:$0xff]   ;;  %v5102_v40 = vld [vmem:[%s7094_s9 + $0x38] sm:$0xff]  }
 0x2d1   : > { %v3380_v19 = vpop.f32.mrf.mxu1  ;;  %4591 = vmatprep.subr.bf16.mxu1 %v5099_v53 }
 0x2d2   : > { %v3381_v3 = vadd.f32 %v3380_v19, %v3268_v56  ;;  %3652 = vmatprep.mubr.bf16.mxu0 %v3446_v35  ;;  %v3426_v60 = vmax.f32 %v3379_v52, 0.0 }
 0x2d3   : > { %v3382_v21 = vpop.f32.mrf.mxu1  ;;  %3653 = vmatmul.mubr.bf16.gmra.mxu0 %v3445_v2 }
 0x2d4   : > { %v3383_v33 = vadd.f32 %v3382_v21, %v3270_v1  ;;  %v3427_v43 = vmax.f32 %v3381_v3, 0.0  ;;  %4592 = vmatpush3.bf16.msra.mxu1 %v5099_v53 }
 0x2d5   : > { %v3386_v32 = vpop.f32.mrf.mxu1  ;;  %4593 = vmatprep.subr.bf16.mxu1 %v5100_v41 }
 0x2d6   : > { %v3428_v36 = vmax.f32 %v3383_v33, 0.0  ;;  %v3447_v10 = vpack.c.bf16 %v3427_v43, %v3425_v31  ;;  %v3387_v42 = vadd.f32 %v3386_v32, %v3274_v24 }
 0x2d7   : > { %v3388_v47 = vpop.f32.mrf.mxu1 }
 0x2d8   : > { %v3448_v6 = vpack.c.bf16 %v3428_v36, %v3426_v60  ;;  %v3389_v39 = vadd.f32 %v3388_v47, %v3276_v45  ;;  %v3429_v5 = vmax.f32 %v3387_v42, 0.0  ;;  %4594 = vmatpush3.bf16.msra.mxu1 %v5100_v41 }
 0x2d9   : > { %v3390_v25 = vpop.f32.mrf.mxu1  ;;  %4595 = vmatprep.subr.bf16.mxu1 %v5101_v48 }
 0x2da   : > { %v3391_v37 = vadd.f32 %v3390_v25, %v3278_v16  ;;  %3660 = vmatprep.mubr.bf16.mxu0 %v3448_v6  ;;  %v3430_v29 = vmax.f32 %v3389_v39, 0.0  ;;  %v5103_v39 = vld [vmem:[%s7094_s9 + $0x30] sm:$0xff]  }
 0x2db   : > { %v3392_v17 = vpop.f32.mrf.mxu1  ;;  %3661 = vmatmul.mubr.bf16.gmra.mxu0 %v3447_v10 }
 0x2dc   : > { %v3393_v44 = vadd.f32 %v3392_v17, %v3280_v59  ;;  %v3431_v20 = vmax.f32 %v3391_v37, 0.0  ;;  %4596 = vmatpush3.bf16.msra.mxu1 %v5101_v48 }
 0x2dd   : > { %v3396_v57 = vpop.f32.mrf.mxu1  ;;  %4613 = vmatprep.subr.bf16.mxu1 %v5102_v40 }
 0x2de   : > { %v3432_v4 = vmax.f32 %v3393_v44, 0.0  ;;  %v3449_v28 = vpack.c.bf16 %v3431_v20, %v3429_v5  ;;  %v3397_v18 = vadd.f32 %v3396_v57, %v3284_v38  ;;  %v5104_v20 = vld [vmem:[%s7094_s9 + $0x28] sm:$0xff]  }
 0x2df   : > { %v3398_v55 = vpop.f32.mrf.mxu1 }
 0x2e0   : > { %v3450_v13 = vpack.c.bf16 %v3432_v4, %v3430_v29  ;;  %v3399_v63 = vadd.f32 %v3398_v55, %v3286_v46  ;;  %v3433_v0 = vmax.f32 %v3397_v18, 0.0  ;;  %v5105_v46 = vld [vmem:[%s7094_s9 + $0x20] sm:$0xff]  }
 0x2e1   : > { %v3400_v23 = vpop.f32.mrf.mxu1 }
 0x2e2   : > { %v3401_v30 = vadd.f32 %v3400_v23, %v3288_v54  ;;  %3668 = vmatprep.mubr.bf16.mxu0 %v3450_v13  ;;  %v3434_v49 = vmax.f32 %v3399_v63, 0.0 }
 0x2e3   : > { %v3402_v27 = vpop.f32.mrf.mxu1  ;;  %3669 = vmatmul.mubr.bf16.gmra.mxu0 %v3449_v28 }
 0x2e4   : > { %v3403_v58 = vadd.f32 %v3402_v27, %v3290_v22  ;;  %v3435_v9 = vmax.f32 %v3401_v30, 0.0  ;;  %v5106_v22 = vld [vmem:[%s7094_s9 + $0x18] sm:$0xff]  }
 0x2e6   : > { %v3436_v14 = vmax.f32 %v3403_v58, 0.0  ;;  %v3451_v26 = vpack.c.bf16 %v3435_v9, %v3433_v0 }
 0x2e8   : > { %v3452_v8 = vpack.c.bf16 %v3436_v14, %v3434_v49 }
 0x2ea   : > { %3676 = vmatprep.mubr.bf16.mxu0 %v3452_v8 }
 0x2eb   : > { %3677 = vmatmul.mubr.bf16.gmra.mxu0 %v3451_v26 }
 0x373   : > { %v4501_v11 = vpop.f32.mrf.mxu0 }
 0x375   : > { %v4502_v56 = vpop.f32.mrf.mxu0 }
 0x376   : > { %v4503_v35 = vadd.f32 %v4502_v56, %v4501_v11 }
 0x377   : > { %v4504_v2 = vpop.f32.mrf.mxu0 }
 0x378   : > { %v3623_v1 = vadd.f32 %v4503_v35, %v6968_v62 }
 0x379   : > { %v4505_v19 = vpop.f32.mrf.mxu0 }
 0x37a   : > { %v4506_v52 = vadd.f32 %v4505_v19, %v4504_v2  ;;  %v3685_v21 = vmax.f32 %v3623_v1, 0.0 }
 0x37b   : > { %v4507_v3 = vpop.f32.mrf.mxu0 }
 0x37c   : > { %v3626_v51 = vadd.f32 %v4506_v52, %v6968_v62 }
 0x37d   : > { %v4508_v50 = vpop.f32.mrf.mxu0 }
 0x37e   : > { %v3686_v33 = vmax.f32 %v3626_v51, 0.0  ;;  %v4509_v43 = vadd.f32 %v4508_v50, %v4507_v3 }
 0x37f   : > { %v4510_v32 = vpop.f32.mrf.mxu0 }
 0x380   : > { %v3701_v60 = vpack.c.bf16 %v3686_v33, %v3685_v21  ;;  %v3631_v34 = vadd.f32 %v4509_v43, %v6968_v62 }
 0x381   : > { %v4511_v36 = vpop.f32.mrf.mxu0 }
 0x382   : > { %v4512_v31 = vadd.f32 %v4511_v36, %v4510_v32  ;;  %4597 = vmatprep.mubr.bf16.mxu1 %v3701_v60  ;;  %v3687_v6 = vmax.f32 %v3631_v34, 0.0 }
 0x383   : > { %v4513_v47 = vpop.f32.mrf.mxu0 }
 0x384   : > { %v3634_v45 = vadd.f32 %v4512_v31, %v6968_v62 }
 0x385   : > { %v4514_v16 = vpop.f32.mrf.mxu0 }
 0x386   : > { %v3688_v24 = vmax.f32 %v3634_v45, 0.0  ;;  %v4515_v10 = vadd.f32 %v4514_v16, %v4513_v47 }
 0x387   : > { %v4516_v25 = vpop.f32.mrf.mxu0 }
 0x388   : > { %v3702_v59 = vpack.c.bf16 %v3688_v24, %v3687_v6  ;;  %v3639_v7 = vadd.f32 %v4515_v10, %v6968_v62 }
 0x389   : > { %v4517_v37 = vpop.f32.mrf.mxu0 }
 0x38a   : > { %v4518_v42 = vadd.f32 %v4517_v37, %v4516_v25  ;;  %4598 = vmatmul.mubr.bf16.vlgmr.msra.gmra.mxu1 %v3702_v59  ;;  %v3689_v29 = vmax.f32 %v3639_v7, 0.0 }
 0x38b   : > { %v4519_v17 = vpop.f32.mrf.mxu0  ;;  %4614 = vmatpush3.bf16.msra.mxu1 %v5102_v40 }
 0x38c   : > { %v3642_v44 = vadd.f32 %v4518_v42, %v6968_v62  ;;  %4615 = vmatprep.subr.bf16.mxu1 %v5103_v39  ;;  %v5107_v42 = vld [vmem:[%s7094_s9 + $0x10] sm:$0xff]  }
 0x38d   : > { %v4520_v57 = vpop.f32.mrf.mxu0 }
 0x38e   : > { %v3690_v4 = vmax.f32 %v3642_v44, 0.0  ;;  %v4521_v15 = vadd.f32 %v4520_v57, %v4519_v17  ;;  %v5108_v17 = vld [vmem:[%s7094_s9 + $0x8] sm:$0xff]   ;;  %v4461_v57 = vld [vmem:[%s7093_s8] ss:$0 sm:$0xff] }
 0x38f   : > { %v4522_v5 = vpop.f32.mrf.mxu0  ;;  %4616 = vmatpush3.bf16.msra.mxu1 %v5103_v39 }
 0x390   : > { %v3703_v55 = vpack.c.bf16 %v3690_v4, %v3689_v29  ;;  %4617 = vmatprep.subr.bf16.mxu1 %v5104_v20  ;;  %v3647_v13 = vadd.f32 %v4521_v15, %v6968_v62 }
 0x391   : > { %v4523_v54 = vpop.f32.mrf.mxu0 }
 0x392   : > { %v4524_v38 = vadd.f32 %v4523_v54, %v4522_v5  ;;  %4601 = vmatprep.mubr.bf16.mxu1 %v3703_v55  ;;  %v3691_v30 = vmax.f32 %v3647_v13, 0.0 }
 0x393   : > { %v4525_v28 = vpop.f32.mrf.mxu0  ;;  %4618 = vmatpush3.bf16.msra.mxu1 %v5104_v20 }
 0x394   : > { %v3650_v23 = vadd.f32 %v4524_v38, %v6968_v62  ;;  %4619 = vmatprep.subr.bf16.mxu1 %v5105_v46 }
 0x395   : > { %v4526_v63 = vpop.f32.mrf.mxu0 }
 0x396   : > { %v3692_v18 = vmax.f32 %v3650_v23, 0.0  ;;  %v4527_v27 = vadd.f32 %v4526_v63, %v4525_v28 }
 0x397   : > { %v4528_v58 = vpop.f32.mrf.mxu0  ;;  %4620 = vmatpush3.bf16.msra.mxu1 %v5105_v46 }
 0x398   : > { %v3704_v9 = vpack.c.bf16 %v3692_v18, %v3691_v30  ;;  %4621 = vmatprep.subr.bf16.mxu1 %v5106_v22  ;;  %v3655_v14 = vadd.f32 %v4527_v27, %v6968_v62 }
 0x399   : > { %v4529_v49 = vpop.f32.mrf.mxu0 }
 0x39a   : > { %v4530_v0 = vadd.f32 %v4529_v49, %v4528_v58  ;;  %4602 = vmatmul.mubr.bf16.gmra.mxu1 %v3704_v9  ;;  %v3693_v61 = vmax.f32 %v3655_v14, 0.0 }
 0x39b   : > { %v4531_v8 = vpop.f32.mrf.mxu0  ;;  %4622 = vmatpush3.bf16.msra.mxu1 %v5106_v22 }
 0x39c   : > { %v3658_v26 = vadd.f32 %v4530_v0, %v6968_v62  ;;  %4623 = vmatprep.subr.bf16.mxu1 %v5107_v42 }
 0x39d   : > { %v4532_v12 = vpop.f32.mrf.mxu0 }
 0x39e   : > { %v3694_v53 = vmax.f32 %v3658_v26, 0.0  ;;  %v4533_v41 = vadd.f32 %v4532_v12, %v4531_v8 }
 0x39f   : > { %v4534_v48 = vpop.f32.mrf.mxu0  ;;  %4624 = vmatpush3.bf16.msra.mxu1 %v5107_v42 }
 0x3a0   : > { %v3705_v40 = vpack.c.bf16 %v3694_v53, %v3693_v61  ;;  %v3663_v56 = vadd.f32 %v4533_v41, %v6968_v62  ;;  %4625 = vmatprep.subr.bf16.mxu1 %v5108_v17 }
 0x3a1   : > { %v4535_v11 = vpop.f32.mrf.mxu0 }
 0x3a2   : > { %v4536_v35 = vadd.f32 %v4535_v11, %v4534_v48  ;;  %4605 = vmatprep.mubr.bf16.mxu1 %v3705_v40  ;;  %v3695_v52 = vmax.f32 %v3663_v56, 0.0 }
 0x3a3   : > { %v4537_v2 = vpop.f32.mrf.mxu0  ;;  %4626 = vmatpush3.bf16.msra.mxu1 %v5108_v17 }
 0x3a4   : > { %v3666_v19 = vadd.f32 %v4536_v35, %v6968_v62 }
 0x3a5   : > { %v4538_v1 = vpop.f32.mrf.mxu0 }
 0x3a6   : > { %v3696_v3 = vmax.f32 %v3666_v19, 0.0  ;;  %v4539_v51 = vadd.f32 %v4538_v1, %v4537_v2 }
 0x3a7   : > { %v4540_v50 = vpop.f32.mrf.mxu0 }
 0x3a8   : > { %v3706_v21 = vpack.c.bf16 %v3696_v3, %v3695_v52  ;;  %v3671_v43 = vadd.f32 %v4539_v51, %v6968_v62 }
 0x3a9   : > { %v4541_v33 = vpop.f32.mrf.mxu0 }
 0x3aa   : > { %v4542_v32 = vadd.f32 %v4541_v33, %v4540_v50  ;;  %4606 = vmatmul.mubr.bf16.gmra.mxu1 %v3706_v21  ;;  %v3697_v31 = vmax.f32 %v3671_v43, 0.0 }
 0x3ab   : > { %v4543_v60 = vpop.f32.mrf.mxu0 }
 0x3ac   : > { %v3674_v36 = vadd.f32 %v4542_v32, %v6968_v62 }
 0x3ad   : > { %v4544_v34 = vpop.f32.mrf.mxu0 }
 0x3ae   : > { %v3698_v47 = vmax.f32 %v3674_v36, 0.0  ;;  %v4545_v45 = vadd.f32 %v4544_v34, %v4543_v60 }
 0x3af   : > { %v4546_v16 = vpop.f32.mrf.mxu0 }
 0x3b0   : > { %v3707_v6 = vpack.c.bf16 %v3698_v47, %v3697_v31  ;;  %v3679_v10 = vadd.f32 %v4545_v45, %v6968_v62 }
 0x3b1   : > { %v4547_v24 = vpop.f32.mrf.mxu0 }
 0x3b2   : > { %v4548_v25 = vadd.f32 %v4547_v24, %v4546_v16  ;;  %4609 = vmatprep.mubr.bf16.mxu1 %v3707_v6  ;;  %v3699_v39 = vmax.f32 %v3679_v10, 0.0 }
 0x3b4   : > { %v3682_v59 = vadd.f32 %v4548_v25, %v6968_v62  ;;  %v5109_v62 = vld [vmem:[%s7094_s9] sm:$0xff]  }
 0x3b5   : > { %4627 = vmatprep.subr.bf16.mxu1 %v5109_v62 }
 0x3b6   : > { %v3700_v37 = vmax.f32 %v3682_v59, 0.0  ;;  %4628 = vmatpush3.bf16.msra.mxu1 %v5109_v62  ;;  %v4470_v59 = vld [vmem:[%s7095_s10] ss:$0 sm:$0xff] }
 0x3b8   : > { %v3708_v7 = vpack.c.bf16 %v3700_v37, %v3699_v39 }
 0x3ba   : > { %4610 = vmatmul.mubr.bf16.gmra.mxu1 %v3708_v7 }
 0x44a   : > { %v4599_v44 = vpop.f32.mrf.mxu1 }
 0x44b   : > { %v3823_v5 = vadd.f32 %v4599_v44, %v4461_v57 }
 0x44c   : > { %v3814_v20 = vpop.f32.mrf.mxu1 }
 0x44d   : > { %v3815_v4 = vadd.f32 %v4461_v57, %v3814_v20  ;;  %v3879_v28 = vmax.f32 %v3823_v5, 0.0 }
 0x44e   : > { %v4600_v29 = vpop.f32.mrf.mxu1 }
 0x44f   : > { %v3826_v15 = vadd.f32 %v4600_v29, %v4461_v57  ;;  %v3877_v13 = vmax.f32 %v3815_v4, 0.0 }
 0x450   : > { %v3817_v55 = vpop.f32.mrf.mxu1 }
 0x451   : > { %v3818_v46 = vadd.f32 %v4461_v57, %v3817_v55  ;;  %v3880_v54 = vmax.f32 %v3826_v15, 0.0 }
 0x453   : > { %v3878_v38 = vmax.f32 %v3818_v46, 0.0  ;;  %v3894_v22 = vpack.c.bf16 %v3880_v54, %v3879_v28 }
 0x455   : > { %v3893_v23 = vpack.c.bf16 %v3878_v38, %v3877_v13 }
 0x457   : > { %4629 = vmatprep.mubr.bf16.mxu1 %v3893_v23 }
 0x458   : > { %4630 = vmatmul.mubr.bf16.vlgmr.msra.gmra.mxu1 %v3894_v22 }
 0x45a   : > { %v4603_v63 = vpop.f32.mrf.mxu1 }
 0x45b   : > { %v3839_v9 = vadd.f32 %v4603_v63, %v4461_v57 }
 0x45c   : > { %v3830_v30 = vpop.f32.mrf.mxu1 }
 0x45d   : > { %v3831_v27 = vadd.f32 %v4461_v57, %v3830_v30  ;;  %v3883_v12 = vmax.f32 %v3839_v9, 0.0 }
 0x45e   : > { %v4604_v18 = vpop.f32.mrf.mxu1 }
 0x45f   : > { %v3842_v58 = vadd.f32 %v4604_v18, %v4461_v57  ;;  %v3881_v8 = vmax.f32 %v3831_v27, 0.0 }
 0x460   : > { %v3833_v49 = vpop.f32.mrf.mxu1 }
 0x461   : > { %v3834_v14 = vadd.f32 %v4461_v57, %v3833_v49  ;;  %v3884_v0 = vmax.f32 %v3842_v58, 0.0 }
 0x463   : > { %v3882_v26 = vmax.f32 %v3834_v14, 0.0  ;;  %v3896_v53 = vpack.c.bf16 %v3884_v0, %v3883_v12 }
 0x465   : > { %v3895_v61 = vpack.c.bf16 %v3882_v26, %v3881_v8 }
 0x467   : > { %4633 = vmatprep.mubr.bf16.mxu1 %v3895_v61 }
 0x468   : > { %4634 = vmatmul.mubr.bf16.gmra.mxu1 %v3896_v53 }
 0x46a   : > { %v4607_v41 = vpop.f32.mrf.mxu1 }
 0x46b   : > { %v3855_v35 = vadd.f32 %v4607_v41, %v4461_v57 }
 0x46c   : > { %v3846_v48 = vpop.f32.mrf.mxu1 }
 0x46d   : > { %v3847_v11 = vadd.f32 %v4461_v57, %v3846_v48  ;;  %v3887_v51 = vmax.f32 %v3855_v35, 0.0 }
 0x46e   : > { %v4608_v40 = vpop.f32.mrf.mxu1 }
 0x46f   : > { %v3858_v56 = vadd.f32 %v4608_v40, %v4461_v57  ;;  %v3885_v52 = vmax.f32 %v3847_v11, 0.0 }
 0x470   : > { %v3849_v2 = vpop.f32.mrf.mxu1 }
 0x471   : > { %v3850_v19 = vadd.f32 %v4461_v57, %v3849_v2  ;;  %v3888_v1 = vmax.f32 %v3858_v56, 0.0 }
 0x473   : > { %v3886_v3 = vmax.f32 %v3850_v19, 0.0  ;;  %v3898_v21 = vpack.c.bf16 %v3888_v1, %v3887_v51 }
 0x475   : > { %v3897_v50 = vpack.c.bf16 %v3886_v3, %v3885_v52 }
 0x477   : > { %4637 = vmatprep.mubr.bf16.mxu1 %v3897_v50 }
 0x478   : > { %4638 = vmatmul.mubr.bf16.gmra.mxu1 %v3898_v21 }
 0x47a   : > { %v4611_v33 = vpop.f32.mrf.mxu1 }
 0x47b   : > { %v3871_v34 = vadd.f32 %v4611_v33, %v4461_v57 }
 0x47c   : > { %v3862_v43 = vpop.f32.mrf.mxu1 }
 0x47d   : > { %v3863_v60 = vadd.f32 %v4461_v57, %v3862_v43  ;;  %v3891_v24 = vmax.f32 %v3871_v34, 0.0 }
 0x47e   : > { %v4612_v32 = vpop.f32.mrf.mxu1 }
 0x47f   : > { %v3874_v36 = vadd.f32 %v4612_v32, %v4461_v57  ;;  %v3889_v16 = vmax.f32 %v3863_v60, 0.0 }
 0x480   : > { %v3865_v31 = vpop.f32.mrf.mxu1 }
 0x481   : > { %v3866_v47 = vadd.f32 %v4461_v57, %v3865_v31  ;;  %v3892_v45 = vmax.f32 %v3874_v36, 0.0 }
 0x483   : > { %v3890_v6 = vmax.f32 %v3866_v47, 0.0  ;;  %v3900_v25 = vpack.c.bf16 %v3892_v45, %v3891_v24 }
 0x485   : > { %v3899_v10 = vpack.c.bf16 %v3890_v6, %v3889_v16 }
 0x487   : > { %4641 = vmatprep.mubr.bf16.mxu1 %v3899_v10 }
 0x488   : > { %4642 = vmatmul.mubr.bf16.gmra.mxu1 %v3900_v25 }
 0x518   : > { %v4631_v39 = vpop.f32.mrf.mxu1 }
 0x519   : > { %v4015_v37 = vadd.f32 %v4631_v39, %v4470_v59 }
 0x51a   : > { %v4006_v7 = vpop.f32.mrf.mxu1 }
 0x51b   : > { %4071 = vst [vmem:[%s7016_s12 + $0x10] sm:$0xff] %v4015_v37  ;;  %v4007_v42 = vadd.f32 %v4470_v59, %v4006_v7 }
 0x51c   : > { %v4632_v17 = vpop.f32.mrf.mxu1 }
 0x51d   : > { %4069 = vst [vmem:[%s7016_s12] sm:$0xff] %v4007_v42  ;;  %v4018_v62 = vadd.f32 %v4632_v17, %v4470_v59 }
 0x51e   : > { %v4009_v44 = vpop.f32.mrf.mxu1 }
 0x51f   : > { %4072 = vst [vmem:[%s7016_s12 + $0x18] sm:$0xff] %v4018_v62  ;;  %v4010_v20 = vadd.f32 %v4470_v59, %v4009_v44 }
 0x521   : > { %4070 = vst [vmem:[%s7016_s12 + $0x8] sm:$0xff] %v4010_v20 }
 0x528   : > { %v4635_v57 = vpop.f32.mrf.mxu1 }
 0x529   : > { %v4031_v29 = vadd.f32 %v4635_v57, %v4470_v59 }
 0x52a   : > { %v4022_v4 = vpop.f32.mrf.mxu1 }
 0x52b   : > { %4075 = vst [vmem:[%s7016_s12 + $0x30] sm:$0xff] %v4031_v29  ;;  %v4023_v15 = vadd.f32 %v4470_v59, %v4022_v4 }
 0x52c   : > { %v4636_v5 = vpop.f32.mrf.mxu1 }
 0x52d   : > { %4073 = vst [vmem:[%s7016_s12 + $0x20] sm:$0xff] %v4023_v15  ;;  %v4034_v55 = vadd.f32 %v4636_v5, %v4470_v59 }
 0x52e   : > { %v4025_v46 = vpop.f32.mrf.mxu1 }
 0x52f   : > { %4076 = vst [vmem:[%s7016_s12 + $0x38] sm:$0xff] %v4034_v55  ;;  %v4026_v54 = vadd.f32 %v4470_v59, %v4025_v46 }
 0x531   : > { %4074 = vst [vmem:[%s7016_s12 + $0x28] sm:$0xff] %v4026_v54 }
 0x538   : > { %v4639_v13 = vpop.f32.mrf.mxu1 }
 0x539   : > { %v4047_v38 = vadd.f32 %v4639_v13, %v4470_v59 }
 0x53a   : > { %v4038_v28 = vpop.f32.mrf.mxu1 }
 0x53b   : > { %4079 = vst [vmem:[%s7016_s12 + $0x50] sm:$0xff] %v4047_v38  ;;  %v4039_v23 = vadd.f32 %v4470_v59, %v4038_v28 }
 0x53c   : > { %v4640_v22 = vpop.f32.mrf.mxu1 }
 0x53d   : > { %4077 = vst [vmem:[%s7016_s12 + $0x40] sm:$0xff] %v4039_v23  ;;  %v4050_v63 = vadd.f32 %v4640_v22, %v4470_v59 }
 0x53e   : > { %v4041_v30 = vpop.f32.mrf.mxu1 }
 0x53f   : > { %4080 = vst [vmem:[%s7016_s12 + $0x58] sm:$0xff] %v4050_v63  ;;  %v4042_v18 = vadd.f32 %v4470_v59, %v4041_v30 }
 0x541   : > { %4078 = vst [vmem:[%s7016_s12 + $0x48] sm:$0xff] %v4042_v18 }
 0x548   : > { %v4643_v27 = vpop.f32.mrf.mxu1 }
 0x549   : > { %v4063_v58 = vadd.f32 %v4643_v27, %v4470_v59 }
 0x54a   : > { %v4054_v9 = vpop.f32.mrf.mxu1 }
 0x54b   : > { %4083 = vst [vmem:[%s7016_s12 + $0x70] sm:$0xff] %v4063_v58  ;;  %v4055_v49 = vadd.f32 %v4470_v59, %v4054_v9 }
 0x54c   : > { %v4644_v14 = vpop.f32.mrf.mxu1 }
 0x54d   : > { %4081 = vst [vmem:[%s7016_s12 + $0x60] sm:$0xff] %v4055_v49  ;;  %v4066_v0 = vadd.f32 %v4644_v14, %v4470_v59 }
 0x54e   : > { %v4057_v8 = vpop.f32.mrf.mxu1 }
 0x54f   : > { %4084 = vst [vmem:[%s7016_s12 + $0x78] sm:$0xff] %v4066_v0  ;;  %v4058_v26 = vadd.f32 %v4470_v59, %v4057_v8 }
 0x551   : > { %4082 = vst [vmem:[%s7016_s12 + $0x68] sm:$0xff] %v4058_v26 }
 0x552   : > { %5123 = shalt.err (!%p5120_p3)
}
 0x553   : > { %s5124_s24 = scalar_lea.hbm %s7037_s16, 2048  ;;  %s5128_s13 = scalar_lea.hbm %s7096_s11, 4096 }
 0x554   : > { %p5125_p4 = scmp.ne.s32.totalorder %s7037_s16, %s5124_s24  ;;  %p5129_p9 = scmp.lt.s32.totalorder %s7037_s16, %s7096_s11 }
 0x555   : > { %p5130_p10 = scmp.lt.s32.totalorder %s5128_s13, %s5124_s24 }
 0x556   : > { %p5126_p7 = pnand %p5125_p4, %p5274_p5 }
 0x557   : > { %p5131_p11 = por %p5130_p10, %p5129_p9 }
 0x558   : > { %p5127_p8 = pneg %p5126_p7 }
 0x55a   : > { %p5132_p12 = pnand %p5131_p11, %p5127_p8 }
 0x55c   : > { %5135 = shalt.err (!%p5132_p12)
}
 0x55d   : > { %s5174_s19 = smov 128   ;;  %s5175_s22 = smov 8  }
 0x55e   : > { %4646 = dma.vmem_to_hbm [thread:$0]  (%p5274_p5), %s7039_s14, 2048, %s7037_s16, %s7045_s21, %s5174_s19, %s5174_s19, %s5175_s22  }
 0x55f PF: > { %p4652_p13 = scmp.ge.s32.totalorder %s5170_s20, 2  ;;  %s4114_s25 = sand.u32 1, %s5158_s17  }
 0x560   : > { %s4115_s26 = scalar_lea.sflag [#allocation3], %s4114_s25 }
 0x561   : > { %p4649_p0 = pnand %p4652_p13, %p5278_p6 }
 0x563   : > { %p4650_p1 = pneg %p4649_p0 }
 0x565   : > { %5153 = dma.done.wait (%p4650_p1), %s4115_s26, 2048  }
 0x566   : > { %5155 = vsyncadd (%p4650_p1), %s4115_s26, 4294965248  ;;  %s7155_s24 = sld [smem:[#allocation5_spill]]  ;;  %p21_p2 = scmp.ge.s32.totalorder %s5261_s23, 4  }
 0x567   : > { %s7156_s19 = sld [smem:[#allocation6_spill]]  ;;  %s7157_s17 = smov %s5162_s18 }
 0x568   : > { %s7159_s20 = smov %s5261_s23  ;;  %23 = sbr.rel (!%p21_p2) target bundleno = 3 (0x3), region = 99 }
 0x56c   : > { %s7158_s18 = smov %s7155_s24 }
 0x56d   :  { %4120 = vsyncpa [#allocation3], 1 }
 0x56e   :  { %4122 = vsyncpa [#allocation3 + $0x1], 1 }

</bundles_post_ra>
